<compile_context>
chip_gen: v5e
topology: v5e:2x2
jax: 0.10.0
libtpu: 0.0.40
codegen_flags: <defaults>
</compile_context>

<pallas_src>
import jax
import jax.numpy as jnp
from jax import lax
from jax.experimental import pallas as pl
from jax.experimental.pallas import tpu as pltpu


# ---------------------------------------------------------------------------
# Kernel: TB decoder timesteps per grid iteration
# ---------------------------------------------------------------------------
def _attn_decoder_block_kernel(
    emb_ref,      # (TB, b, E)   weight dtype (per-block token embeddings)
    h0_ref,       # (b, H)       f32 (initial hidden, read only at grid step 0)
    c0_ref,       # (b, H)       f32 (initial cell)
    enc_ref,      # (b, il, 2H)  weight dtype (encoder outputs, batch-major)
    encT_ref,     # (b, 2H, il)  weight dtype (pre-transposed encoder outputs)
    wlstm_ref,    # (E+H, 4H)    weight dtype, rows [0:E]=Wih^T, [E:]=Whh^T
    bg_ref,       # (1, 4H)      f32, bih + bhh
    wscore_ref,   # (2H, 2H)     weight dtype, rows [0:H] act on h1, [H:] on c1
    bs_ref,       # (1, 2H)      f32
    wattn_ref,    # (4H, A)      weight dtype, rows [0:2H]=context, [2H:3H]=h1, [3H:]=c1
    ba_ref,       # (1, A)       f32
    wout_ref,     # (A, O)       weight dtype
    bo_ref,       # (1, O)       f32
    logp_ref,     # (TB, b, O)   f32 out
    attn_ref,     # (TB, b, il)  f32 out
    hN_ref,       # (b, H)       f32 out (final hidden only; resident block)
    cN_ref,       # (b, H)       f32 out (final cell only; resident block)
    h_s, c_s,     # (b, H) f32 VMEM scratch: recurrent state carried across steps
):
    H = h_s.shape[1]
    E = emb_ref.shape[2]
    TB = emb_ref.shape[0]
    wdtype = wlstm_ref.dtype

    @pl.when(pl.program_id(0) == 0)
    def _():
        h_s[...] = h0_ref[...]
        c_s[...] = c0_ref[...]

    def step(s, carry):
        emb = emb_ref[s]              # (b, E)
        h_prev = h_s[...]             # (b, H) f32
        c_prev = c_s[...]             # (b, H) f32

        # ---- LSTMCell (PyTorch gate order i, f, g, o), fused bias, stacked weights ----
        gates = (
            jnp.dot(emb, wlstm_ref[:E, :], preferred_element_type=jnp.float32)
            + jnp.dot(h_prev.astype(wdtype), wlstm_ref[E:, :],
                      preferred_element_type=jnp.float32)
            + bg_ref[...]
        )  # (b, 4H) f32
        i_g = jax.nn.sigmoid(gates[:, 0 * H:1 * H])
        f_g = jax.nn.sigmoid(gates[:, 1 * H:2 * H])
        g_g = jnp.tanh(gates[:, 2 * H:3 * H])
        o_g = jax.nn.sigmoid(gates[:, 3 * H:4 * H])
        c1 = f_g * c_prev + i_g * g_g
        h1 = o_g * jnp.tanh(c1)

        h1w = h1.astype(wdtype)
        c1w = c1.astype(wdtype)

        # score = [h1 | c1] @ Wscore^T + b   (row-sliced dots; no lane-axis concat)
        score = (
            jnp.dot(h1w, wscore_ref[:H, :], preferred_element_type=jnp.float32)
            + jnp.dot(c1w, wscore_ref[H:, :], preferred_element_type=jnp.float32)
            + bs_ref[...]
        )  # (b, 2H) f32

        # scores[b, l] = sum_d score[b, d] * enc^T[b, d, l]
        # Non-transposed contraction: no per-step XLU transpose of enc.
        scores = jnp.einsum(
            "bod,bdl->bol", score.astype(wdtype)[:, None, :], encT_ref[...],
            preferred_element_type=jnp.float32)           # (b, 1, il)

        # softmax over il (f32 math); EUP reciprocal for the denominator
        m = jnp.max(scores, axis=2, keepdims=True)
        e = jnp.exp(scores - m)
        inv = pl.reciprocal(jnp.sum(e, axis=2, keepdims=True), approx=True)
        attn = e * inv                                    # (b, 1, il)

        # context[b, d] = sum_l attn[b, l] * enc[b, l, d]  -- batched MXU matmul
        context = jnp.einsum(
            "bol,bld->bod", attn.astype(wdtype), enc_ref[...],
            preferred_element_type=jnp.float32)           # (b, 1, 2H)
        ctx = context[:, 0, :]                            # (b, 2H) f32

        # attentional = tanh([context | h1 | c1] @ Wattn^T + b)  (row-sliced dots)
        attentional = jnp.tanh(
            jnp.dot(ctx.astype(wdtype), wattn_ref[:2 * H, :],
                    preferred_element_type=jnp.float32)
            + jnp.dot(h1w, wattn_ref[2 * H:3 * H, :],
                      preferred_element_type=jnp.float32)
            + jnp.dot(c1w, wattn_ref[3 * H:, :],
                      preferred_element_type=jnp.float32)
            + ba_ref[...]
        )  # (b, A) f32

        # output = log_softmax(attentional @ Wout^T + b)
        logits = (jnp.dot(attentional.astype(wdtype), wout_ref[...],
                          preferred_element_type=jnp.float32) + bo_ref[...])
        lm = jnp.max(logits, axis=1, keepdims=True)
        shifted = logits - lm
        lse = jnp.log(jnp.sum(jnp.exp(shifted), axis=1, keepdims=True))

        logp_ref[s] = shifted - lse
        attn_ref[s] = attn[:, 0, :]

        # carry recurrent state to the next timestep
        h_s[...] = h1
        c_s[...] = c1
        return carry

    # TB is static; fully unroll so the LLO scheduler sees the whole window.
    lax.fori_loop(0, TB, step, 0, unroll=True)

    # Final state only: constant-index output block stays VMEM-resident and is
    # written back to HBM once at the end of the grid.
    hN_ref[...] = h_s[...]
    cN_ref[...] = c_s[...]


# ---------------------------------------------------------------------------
# One-time parameter preparation (all transposes / bias folding happen here)
# ---------------------------------------------------------------------------
def prepare_params(raw, compute_dtype=jnp.bfloat16):
    """Convert PyTorch-layout params to kernel layout (once, not per call)."""
    wd = compute_dtype
    return {
        "embedding": raw["embedding"].astype(wd),                          # (O, E)
        "w_lstm": jnp.concatenate(
            [raw["lstm_wih"].T, raw["lstm_whh"].T], axis=0).astype(wd),    # (E+H, 4H)
        "b_gates": (raw["lstm_bih"] + raw["lstm_bhh"]).reshape(1, -1)
                   .astype(jnp.float32),                                   # (1, 4H)
        "w_score": raw["score_w"].T.astype(wd),                            # (2H, 2H)
        "b_score": raw["score_b"].reshape(1, -1).astype(jnp.float32),      # (1, 2H)
        "w_attn": raw["attn_w"].T.astype(wd),                              # (4H, A)
        "b_attn": raw["attn_b"].reshape(1, -1).astype(jnp.float32),        # (1, A)
        "w_out": raw["out_w"].T.astype(wd),                                # (A, O)
        "b_out": raw["out_b"].reshape(1, -1).astype(jnp.float32),          # (1, O)
    }


def _pick_time_block(T, requested):
    """Largest divisor of T that does not exceed the requested block size."""
    tb = max(1, min(int(requested), int(T)))
    while T % tb:
        tb -= 1
    return tb


def _estimate_vmem_limit_bytes(resident_arrays, per_step_bytes, scratch_bytes):
    resident = sum(int(a.size) * a.dtype.itemsize for a in resident_arrays)
    est = 2 * resident + 2 * per_step_bytes + scratch_bytes + (4 << 20)
    # Floor at the usual 32 MiB scoped default; cap well inside physical VMEM.
    return int(min(max(est, 32 << 20), 96 << 20))


# ---------------------------------------------------------------------------
# Wrapper: T decoder steps in one pallas_call (weights stay VMEM-resident)
# ---------------------------------------------------------------------------
def attn_decoder_rnn2_decode(prep, token_ids, hidden, encoder_outputs, *, time_block=4):
    """Teacher-forced T-step decode.

    token_ids: (T, b) int32
    hidden: (h0, c0), each (b, H) f32
    encoder_outputs: (il, b, 2H) f32 (PyTorch layout, re-laid-out ONCE per call)
    returns: (log_probs (T,b,O), (h_final (b,H), c_final (b,H)), attn (T,b,il))
    """
    h0, c0 = hidden
    T, b = token_ids.shape
    H = h0.shape[1]
    il = encoder_outputs.shape[0]
    E = prep["embedding"].shape[1]
    A = prep["w_out"].shape[0]
    O = prep["w_out"].shape[1]
    wd = prep["w_lstm"].dtype

    TB = _pick_time_block(T, time_block)
    n_blocks = T // TB

    # glue: embedding lookup for all steps + dropout (identity in eval mode)
    emb_all = prep["embedding"][token_ids]                          # (T, b, E)
    # glue: encoder outputs in both contraction layouts, computed once per decode
    enc_bm = jnp.transpose(encoder_outputs, (1, 0, 2)).astype(wd)   # (b, il, 2H)
    enc_T = jnp.transpose(encoder_outputs, (1, 2, 0)).astype(wd)    # (b, 2H, il)

    resident = (enc_bm, enc_T, prep["w_lstm"], prep["b_gates"], prep["w_score"],
                prep["b_score"], prep["w_attn"], prep["b_attn"],
                prep["w_out"], prep["b_out"], h0, c0)
    per_step_bytes = (TB * b * E * emb_all.dtype.itemsize
                      + TB * b * O * 4 + TB * b * il * 4 + 2 * b * H * 4)
    vmem_limit = _estimate_vmem_limit_bytes(resident, per_step_bytes, 2 * b * H * 4)

    step3 = lambda t: (t, 0, 0)

    def _call(single_buffer_weights):
        def rspec(shape):
            # Constant-index (resident) block: weights / encoder / initial state.
            kwargs = {}
            if single_buffer_weights:
                # Never-changing blocks don't need double-buffering.
                kwargs["pipeline_mode"] = pl.Buffered(buffer_count=1)
            return pl.BlockSpec(shape, lambda *_: (0,) * len(shape), **kwargs)

        in_specs = [
            pl.BlockSpec((TB, b, E), step3),          # per-block token embeddings
            rspec((b, H)),                            # h0 (read at grid step 0 only)
            rspec((b, H)),                            # c0
            rspec((b, il, 2 * H)),                    # enc (context matmul)
            rspec((b, 2 * H, il)),                    # enc^T (score matmul)
            rspec((E + H, 4 * H)),                    # stacked LSTM weights
            rspec((1, 4 * H)),
            rspec((2 * H, 2 * H)),                    # score weights
            rspec((1, 2 * H)),
            rspec((4 * H, A)),                        # attn weights
            rspec((1, A)),
            rspec((A, O)),                            # out weights
            rspec((1, O)),
        ]
        out_specs = [
            pl.BlockSpec((TB, b, O), step3),          # log-probs per step
            pl.BlockSpec((TB, b, il), step3),         # attention weights per step
            pl.BlockSpec((b, H), lambda t: (0, 0)),   # final hidden (single writeback)
            pl.BlockSpec((b, H), lambda t: (0, 0)),   # final cell
        ]
        out_shapes = (
            jax.ShapeDtypeStruct((T, b, O), jnp.float32),
            jax.ShapeDtypeStruct((T, b, il), jnp.float32),
            jax.ShapeDtypeStruct((b, H), jnp.float32),
            jax.ShapeDtypeStruct((b, H), jnp.float32),
        )
        return pl.pallas_call(
            _attn_decoder_block_kernel,
            out_shape=out_shapes,
            grid_spec=pltpu.PrefetchScalarGridSpec(
                num_scalar_prefetch=0,
                grid=(n_blocks,),
                in_specs=in_specs,
                out_specs=out_specs,
                scratch_shapes=[pltpu.VMEM((b, H), jnp.float32),
                                pltpu.VMEM((b, H), jnp.float32)],
            ),
            compiler_params=pltpu.CompilerParams(
                dimension_semantics=("arbitrary",),   # recurrence over time
                vmem_limit_bytes=vmem_limit),
        )(emb_all, h0, c0, enc_bm, enc_T,
          prep["w_lstm"], prep["b_gates"],
          prep["w_score"], prep["b_score"],
          prep["w_attn"], prep["b_attn"],
          prep["w_out"], prep["b_out"])

    try:
        logp, attn, h_fin, c_fin = _call(True)
    except Exception:
        # Fallback if this JAX build rejects pipeline_mode=pl.Buffered(1) on
        # the resident specs; semantics identical, just double-buffered weights.
        logp, attn, h_fin, c_fin = _call(False)
    return logp, (h_fin, c_fin), attn


def attn_decoder_rnn2_forward(prep, input_ids, hidden, encoder_outputs):
    """Single decoder step (mirrors AttnDecoderRNN2.forward, eval mode)."""
    logp, (h1, c1), attn = attn_decoder_rnn2_decode(
        prep, input_ids[None, :], hidden, encoder_outputs, time_block=1)
    return logp[0], (h1, c1), attn[0]


# ---------------------------------------------------------------------------
# pure-JAX reference (PyTorch semantics, f32) for correctness checks
# ---------------------------------------------------------------------------
def _reference_forward(params, input_ids, hidden, encoder_outputs):
    h0, c0 = hidden
    H = h0.shape[1]
    embedded = params["embedding"][input_ids]
    gates = (embedded @ params["lstm_wih"].T + params["lstm_bih"]
             + h0 @ params["lstm_whh"].T + params["lstm_bhh"])
    i_g = jax.nn.sigmoid(gates[:, 0 * H:1 * H])
    f_g = jax.nn.sigmoid(gates[:, 1 * H:2 * H])
    g_g = jnp.tanh(gates[:, 2 * H:3 * H])
    o_g = jax.nn.sigmoid(gates[:, 3 * H:4 * H])
    c1 = f_g * c0 + i_g * g_g
    h1 = o_g * jnp.tanh(c1)
    dec = jnp.concatenate([h1, c1], axis=1)
    score = dec @ params["score_w"].T + params["score_b"]
    enc_bm = jnp.transpose(encoder_outputs, (1, 0, 2))
    scores = jnp.einsum("bld,bd->bl", enc_bm, score)
    attn = jax.nn.softmax(scores, axis=1)
    context = jnp.einsum("bl,bld->bd", attn, enc_bm)
    concat = jnp.concatenate([context, dec], axis=1)
    attentional = jnp.tanh(concat @ params["attn_w"].T + params["attn_b"])
    logits = attentional @ params["out_w"].T + params["out_b"]
    logp = jax.nn.log_softmax(logits, axis=1)
    return logp, (h1, c1), attn


def _reference_decode(params, token_ids, hidden, encoder_outputs):
    logps, attns = [], []
    hid = hidden
    for t in range(token_ids.shape[0]):
        logp, hid, attn = _reference_forward(params, token_ids[t], hid, encoder_outputs)
        logps.append(logp); attns.append(attn)
    return jnp.stack(logps), hid, jnp.stack(attns)


def init_params(key, emb_size, hidden_size, attn_size, output_size, pad_token=0):
    ks = jax.random.split(key, 12)
    s = 0.1
    emb = s * jax.random.normal(ks[0], (output_size, emb_size), jnp.float32)
    emb = emb.at[pad_token].set(0.0)  # padding_idx behaviour
    return {
        "embedding": emb,
        "lstm_wih": s * jax.random.normal(ks[1], (4 * hidden_size, emb_size), jnp.float32),
        "lstm_whh": s * jax.random.normal(ks[2], (4 * hidden_size, hidden_size), jnp.float32),
        "lstm_bih": s * jax.random.normal(ks[3], (4 * hidden_size,), jnp.float32),
        "lstm_bhh": s * jax.random.normal(ks[4], (4 * hidden_size,), jnp.float32),
        "score_w": s * jax.random.normal(ks[5], (2 * hidden_size, 2 * hidden_size), jnp.float32),
        "score_b": s * jax.random.normal(ks[6], (2 * hidden_size,), jnp.float32),
        "attn_w": s * jax.random.normal(ks[7], (attn_size, 4 * hidden_size), jnp.float32),
        "attn_b": s * jax.random.normal(ks[8], (attn_size,), jnp.float32),
        "out_w": s * jax.random.normal(ks[9], (output_size, attn_size), jnp.float32),
        "out_b": s * jax.random.normal(ks[10], (output_size,), jnp.float32),
    }


if __name__ == "__main__":
    # (8,128)-tile-aligned small shapes: H,2H,A,O multiples of 128, E multiple of 8.
    B, IL, T = 8, 16, 8
    EMB, HID, ATTN, OUT = 32, 128, 128, 256
    TIME_BLOCK = 4

    key = jax.random.PRNGKey(0)
    kp, k1, k2, k3, k4 = jax.random.split(key, 5)

    raw = init_params(kp, EMB, HID, ATTN, OUT)
    prep_f32 = prepare_params(raw, jnp.float32)
    prep_bf16 = prepare_params(raw, jnp.bfloat16)

    token_ids = jax.random.randint(k1, (T, B), 0, OUT, dtype=jnp.int32)
    h0 = 0.1 * jax.random.normal(k2, (B, HID), jnp.float32)
    c0 = 0.1 * jax.random.normal(k3, (B, HID), jnp.float32)
    encoder_outputs = 0.1 * jax.random.normal(k4, (IL, B, 2 * HID), jnp.float32)

    # ---- single decoder step (f32 weights), checked against the reference ----
    logp, (h1, c1), attn = attn_decoder_rnn2_forward(
        prep_f32, token_ids[0], (h0, c0), encoder_outputs)
    jax.block_until_ready((logp, h1, c1, attn))
    r_logp, (r_h1, r_c1), r_attn = _reference_forward(
        raw, token_ids[0], (h0, c0), encoder_outputs)
    assert logp.shape == (B, OUT) and h1.shape == (B, HID) and attn.shape == (B, IL)
    assert jnp.allclose(logp, r_logp, atol=3e-3)
    assert jnp.allclose(h1, r_h1, atol=3e-3)
    assert jnp.allclose(c1, r_c1, atol=3e-3)
    assert jnp.allclose(attn, r_attn, atol=3e-3)

    # ---- multi-step decode: T steps, TB timesteps per grid iteration ----
    d_logp, (d_h, d_c), d_attn = attn_decoder_rnn2_decode(
        prep_f32, token_ids, (h0, c0), encoder_outputs, time_block=TIME_BLOCK)
    jax.block_until_ready((d_logp, d_h, d_c, d_attn))
    rr_logp, (rr_h, rr_c), rr_attn = _reference_decode(
        raw, token_ids, (h0, c0), encoder_outputs)
    assert d_logp.shape == (T, B, OUT) and d_attn.shape == (T, B, IL)
    assert d_h.shape == (B, HID) and d_c.shape == (B, HID)
    assert jnp.allclose(d_logp, rr_logp, atol=5e-3)
    assert jnp.allclose(d_h, rr_h, atol=5e-3)
    assert jnp.allclose(d_c, rr_c, atol=5e-3)
    assert jnp.allclose(d_attn, rr_attn, atol=5e-3)

    # ---- bf16-weight path (f32 accumulation / activations), loose tolerance ----
    b_logp, (b_h1, b_c1), b_attn = attn_decoder_rnn2_forward(
        prep_bf16, token_ids[0], (h0, c0), encoder_outputs)
    jax.block_until_ready((b_logp, b_h1, b_c1, b_attn))
    assert jnp.allclose(b_logp, r_logp, atol=5e-2)
    assert jnp.allclose(b_h1, r_h1, atol=5e-2)
    assert jnp.allclose(b_c1, r_c1, atol=5e-2)
    assert jnp.allclose(b_attn, r_attn, atol=5e-2)

    print("KERNEL_OK")
</pallas_src>

<mosaic_0001>
module attributes {stable_mosaic.version = 11 : i64} {
  func.func @_attn_decoder_block_kernel(%arg0: i32, %arg1: memref<1x8x32xf32, #tpu.memory_space<vmem>>, %arg2: memref<8x128xf32, #tpu.memory_space<vmem>>, %arg3: memref<8x128xf32, #tpu.memory_space<vmem>>, %arg4: memref<8x16x256xf32, #tpu.memory_space<vmem>>, %arg5: memref<8x256x16xf32, #tpu.memory_space<vmem>>, %arg6: memref<160x512xf32, #tpu.memory_space<vmem>>, %arg7: memref<1x512xf32, #tpu.memory_space<vmem>>, %arg8: memref<256x256xf32, #tpu.memory_space<vmem>>, %arg9: memref<1x256xf32, #tpu.memory_space<vmem>>, %arg10: memref<512x128xf32, #tpu.memory_space<vmem>>, %arg11: memref<1x128xf32, #tpu.memory_space<vmem>>, %arg12: memref<128x256xf32, #tpu.memory_space<vmem>>, %arg13: memref<1x256xf32, #tpu.memory_space<vmem>>, %arg14: memref<1x8x256xf32, #tpu.memory_space<vmem>>, %arg15: memref<1x8x16xf32, #tpu.memory_space<vmem>>, %arg16: memref<8x128xf32, #tpu.memory_space<vmem>>, %arg17: memref<8x128xf32, #tpu.memory_space<vmem>>, %arg18: memref<8x128xf32, #tpu.memory_space<vmem>>, %arg19: memref<8x128xf32, #tpu.memory_space<vmem>>) attributes {dimension_semantics = [#tpu.dimension_semantics<arbitrary>], iteration_bounds = array<i64: 1>, scalar_prefetch = 0 : i64, scratch_operands = 2 : i64, tpu.core_type = #tpu.core_type<tc>, window_params = [{transform_indices = @transform_0, window_bounds = array<i64: 1, 8, 32>}, {pipeline_mode = #tpu.pipeline_mode<synchronous>, transform_indices = @transform_1, window_bounds = array<i64: 8, 128>}, {pipeline_mode = #tpu.pipeline_mode<synchronous>, transform_indices = @transform_2, window_bounds = array<i64: 8, 128>}, {pipeline_mode = #tpu.pipeline_mode<synchronous>, transform_indices = @transform_3, window_bounds = array<i64: 8, 16, 256>}, {pipeline_mode = #tpu.pipeline_mode<synchronous>, transform_indices = @transform_4, window_bounds = array<i64: 8, 256, 16>}, {pipeline_mode = #tpu.pipeline_mode<synchronous>, transform_indices = @transform_5, window_bounds = array<i64: 160, 512>}, {pipeline_mode = #tpu.pipeline_mode<synchronous>, transform_indices = @transform_6, window_bounds = array<i64: 1, 512>}, {pipeline_mode = #tpu.pipeline_mode<synchronous>, transform_indices = @transform_7, window_bounds = array<i64: 256, 256>}, {pipeline_mode = #tpu.pipeline_mode<synchronous>, transform_indices = @transform_8, window_bounds = array<i64: 1, 256>}, {pipeline_mode = #tpu.pipeline_mode<synchronous>, transform_indices = @transform_9, window_bounds = array<i64: 512, 128>}, {pipeline_mode = #tpu.pipeline_mode<synchronous>, transform_indices = @transform_10, window_bounds = array<i64: 1, 128>}, {pipeline_mode = #tpu.pipeline_mode<synchronous>, transform_indices = @transform_11, window_bounds = array<i64: 128, 256>}, {pipeline_mode = #tpu.pipeline_mode<synchronous>, transform_indices = @transform_12, window_bounds = array<i64: 1, 256>}, {transform_indices = @transform_13, window_bounds = array<i64: 1, 8, 256>}, {transform_indices = @transform_14, window_bounds = array<i64: 1, 8, 16>}, {pipeline_mode = #tpu.pipeline_mode<synchronous>, transform_indices = @transform_15, window_bounds = array<i64: 8, 128>}, {pipeline_mode = #tpu.pipeline_mode<synchronous>, transform_indices = @transform_16, window_bounds = array<i64: 8, 128>}]} {
    %c0_i32 = arith.constant 0 : i32
    %0 = arith.cmpi eq, %arg0, %c0_i32 : i32
    %1 = arith.extui %0 : i1 to i32
    %c0_i32_0 = arith.constant 0 : i32
    %2 = arith.cmpi ne, %1, %c0_i32_0 : i32
    scf.if %2 {
      %c0_65 = arith.constant 0 : index
      %c0_66 = arith.constant 0 : index
      %107 = vector.load %arg2[%c0_65, %c0_66] : memref<8x128xf32, #tpu.memory_space<vmem>>, vector<8x128xf32>
      %c0_67 = arith.constant 0 : index
      %c0_68 = arith.constant 0 : index
      %108 = vector.load %arg18[%c0_67, %c0_68] : memref<8x128xf32, #tpu.memory_space<vmem>>, vector<8x128xf32>
      tpu.vector_store %arg18[%c0_67, %c0_68], %107 {strides = array<i32>} : memref<8x128xf32, #tpu.memory_space<vmem>>, vector<8x128xf32>,
      %c0_69 = arith.constant 0 : index
      %c0_70 = arith.constant 0 : index
      %109 = vector.load %arg3[%c0_69, %c0_70] : memref<8x128xf32, #tpu.memory_space<vmem>>, vector<8x128xf32>
      %c0_71 = arith.constant 0 : index
      %c0_72 = arith.constant 0 : index
      %110 = vector.load %arg19[%c0_71, %c0_72] : memref<8x128xf32, #tpu.memory_space<vmem>>, vector<8x128xf32>
      tpu.vector_store %arg19[%c0_71, %c0_72], %109 {strides = array<i32>} : memref<8x128xf32, #tpu.memory_space<vmem>>, vector<8x128xf32>,
    } else {
    }
    %c0_i32_1 = arith.constant 0 : i32
    %3 = arith.index_cast %c0_i32_1 : i32 to index
    %c0 = arith.constant 0 : index
    %c0_2 = arith.constant 0 : index
    %4 = vector.load %arg1[%3, %c0, %c0_2] : memref<1x8x32xf32, #tpu.memory_space<vmem>>, vector<1x8x32xf32>
    %5 = vector.shape_cast %4 : vector<1x8x32xf32> to vector<8x32xf32>
    %c0_3 = arith.constant 0 : index
    %c0_4 = arith.constant 0 : index
    %6 = vector.load %arg18[%c0_3, %c0_4] : memref<8x128xf32, #tpu.memory_space<vmem>>, vector<8x128xf32>
    %c0_5 = arith.constant 0 : index
    %c0_6 = arith.constant 0 : index
    %7 = vector.load %arg19[%c0_5, %c0_6] : memref<8x128xf32, #tpu.memory_space<vmem>>, vector<8x128xf32>
    %c0_7 = arith.constant 0 : index
    %c0_8 = arith.constant 0 : index
    %8 = vector.load %arg6[%c0_7, %c0_8] : memref<160x512xf32, #tpu.memory_space<vmem>>, vector<32x512xf32>
    %cst = arith.constant dense<0.000000e+00> : vector<8x512xf32>
    %9 = tpu.matmul %5, %8, %cst {dimension_numbers = #tpu.dot_dimension_numbers<[1], [0], [0], [1], [0, 0, 1, 1], [], []>} : vector<8x32xf32>, vector<32x512xf32>, vector<8x512xf32> -> vector<8x512xf32>
    %c32 = arith.constant 32 : index
    %c0_9 = arith.constant 0 : index
    %10 = vector.load %arg6[%c32, %c0_9] : memref<160x512xf32, #tpu.memory_space<vmem>>, vector<128x512xf32>
    %cst_10 = arith.constant dense<0.000000e+00> : vector<8x512xf32>
    %11 = tpu.matmul %6, %10, %cst_10 {dimension_numbers = #tpu.dot_dimension_numbers<[1], [0], [0], [1], [0, 0, 1, 1], [], []>} : vector<8x128xf32>, vector<128x512xf32>, vector<8x512xf32> -> vector<8x512xf32>
    %12 = arith.addf %9, %11 : vector<8x512xf32>
    %c0_11 = arith.constant 0 : index
    %c0_12 = arith.constant 0 : index
    %13 = vector.load %arg7[%c0_11, %c0_12] : memref<1x512xf32, #tpu.memory_space<vmem>>, vector<1x512xf32>
    %14 = vector.broadcast %13 : vector<1x512xf32> to vector<8x512xf32>
    %15 = arith.addf %12, %14 : vector<8x512xf32>
    %16 = vector.extract_strided_slice %15 {offsets = [0, 0], sizes = [8, 128], strides = [1, 1]} : vector<8x512xf32> to vector<8x128xf32>
    %17 = arith.negf %16 : vector<8x128xf32>
    %18 = math.exp %17 : vector<8x128xf32>
    %cst_13 = arith.constant 1.000000e+00 : f32
    %19 = vector.broadcast %cst_13 : f32 to vector<8x128xf32>
    %20 = arith.addf %19, %18 : vector<8x128xf32>
    %21 = arith.divf %19, %20 : vector<8x128xf32>
    %22 = vector.extract_strided_slice %15 {offsets = [0, 128], sizes = [8, 128], strides = [1, 1]} : vector<8x512xf32> to vector<8x128xf32>
    %23 = arith.negf %22 : vector<8x128xf32>
    %24 = math.exp %23 : vector<8x128xf32>
    %cst_14 = arith.constant 1.000000e+00 : f32
    %25 = vector.broadcast %cst_14 : f32 to vector<8x128xf32>
    %26 = arith.addf %25, %24 : vector<8x128xf32>
    %27 = arith.divf %25, %26 : vector<8x128xf32>
    %28 = vector.extract_strided_slice %15 {offsets = [0, 256], sizes = [8, 128], strides = [1, 1]} : vector<8x512xf32> to vector<8x128xf32>
    %29 = math.tanh %28 : vector<8x128xf32>
    %30 = vector.extract_strided_slice %15 {offsets = [0, 384], sizes = [8, 128], strides = [1, 1]} : vector<8x512xf32> to vector<8x128xf32>
    %31 = arith.negf %30 : vector<8x128xf32>
    %32 = math.exp %31 : vector<8x128xf32>
    %cst_15 = arith.constant 1.000000e+00 : f32
    %33 = vector.broadcast %cst_15 : f32 to vector<8x128xf32>
    %34 = arith.addf %33, %32 : vector<8x128xf32>
    %35 = arith.divf %33, %34 : vector<8x128xf32>
    %36 = arith.mulf %27, %7 : vector<8x128xf32>
    %37 = arith.mulf %21, %29 : vector<8x128xf32>
    %38 = arith.addf %36, %37 : vector<8x128xf32>
    %39 = math.tanh %38 : vector<8x128xf32>
    %40 = arith.mulf %35, %39 : vector<8x128xf32>
    %c0_16 = arith.constant 0 : index
    %c0_17 = arith.constant 0 : index
    %41 = vector.load %arg8[%c0_16, %c0_17] : memref<256x256xf32, #tpu.memory_space<vmem>>, vector<128x256xf32>
    %cst_18 = arith.constant dense<0.000000e+00> : vector<8x256xf32>
    %42 = tpu.matmul %40, %41, %cst_18 {dimension_numbers = #tpu.dot_dimension_numbers<[1], [0], [0], [1], [0, 0, 1, 1], [], []>} : vector<8x128xf32>, vector<128x256xf32>, vector<8x256xf32> -> vector<8x256xf32>
    %c128 = arith.constant 128 : index
    %c0_19 = arith.constant 0 : index
    %43 = vector.load %arg8[%c128, %c0_19] : memref<256x256xf32, #tpu.memory_space<vmem>>, vector<128x256xf32>
    %cst_20 = arith.constant dense<0.000000e+00> : vector<8x256xf32>
    %44 = tpu.matmul %38, %43, %cst_20 {dimension_numbers = #tpu.dot_dimension_numbers<[1], [0], [0], [1], [0, 0, 1, 1], [], []>} : vector<8x128xf32>, vector<128x256xf32>, vector<8x256xf32> -> vector<8x256xf32>
    %45 = arith.addf %42, %44 : vector<8x256xf32>
    %c0_21 = arith.constant 0 : index
    %c0_22 = arith.constant 0 : index
    %46 = vector.load %arg9[%c0_21, %c0_22] : memref<1x256xf32, #tpu.memory_space<vmem>>, vector<1x256xf32>
    %47 = vector.broadcast %46 : vector<1x256xf32> to vector<8x256xf32>
    %48 = arith.addf %45, %47 : vector<8x256xf32>
    %49 = vector.shape_cast %48 : vector<8x256xf32> to vector<8x1x256xf32>
    %c0_23 = arith.constant 0 : index
    %c0_24 = arith.constant 0 : index
    %c0_25 = arith.constant 0 : index
    %50 = vector.load %arg5[%c0_23, %c0_24, %c0_25] : memref<8x256x16xf32, #tpu.memory_space<vmem>>, vector<8x256x16xf32>
    "tpu.trace_start"() <{level = 10 : i32, message = "bod,bdl->bol"}> : () -> ()
    %cst_26 = arith.constant dense<0.000000e+00> : vector<8x1x16xf32>
    %51 = tpu.matmul %49, %50, %cst_26 {dimension_numbers = #tpu.dot_dimension_numbers<[2], [1], [1], [2], [0, 0, 0, 1, 1, 2], [0], [0]>} : vector<8x1x256xf32>, vector<8x256x16xf32>, vector<8x1x16xf32> -> vector<8x1x16xf32>
    "tpu.trace_stop"() : () -> ()
    %cst_27 = arith.constant dense<0xFF800000> : vector<8x1xf32>
    %52 = vector.multi_reduction <maximumf>, %51, %cst_27 [2] : vector<8x1x16xf32> to vector<8x1xf32>
    %53 = vector.shape_cast %52 : vector<8x1xf32> to vector<8x1x1xf32>
    %54 = vector.broadcast %53 : vector<8x1x1xf32> to vector<8x1x16xf32>
    %55 = arith.subf %51, %54 : vector<8x1x16xf32>
    %56 = math.exp %55 : vector<8x1x16xf32>
    %cst_28 = arith.constant dense<0.000000e+00> : vector<8x1xf32>
    %57 = vector.multi_reduction <add>, %56, %cst_28 [2] : vector<8x1x16xf32> to vector<8x1xf32>
    %58 = vector.shape_cast %57 : vector<8x1xf32> to vector<8x1x1xf32>
    %59 = tpu.reciprocal %58 {approx = true} : vector<8x1x1xf32> -> vector<8x1x1xf32>
    %60 = vector.broadcast %59 : vector<8x1x1xf32> to vector<8x1x16xf32>
    %61 = arith.mulf %56, %60 : vector<8x1x16xf32>
    %c0_29 = arith.constant 0 : index
    %c0_30 = arith.constant 0 : index
    %c0_31 = arith.constant 0 : index
    %62 = vector.load %arg4[%c0_29, %c0_30, %c0_31] : memref<8x16x256xf32, #tpu.memory_space<vmem>>, vector<8x16x256xf32>
    "tpu.trace_start"() <{level = 10 : i32, message = "bol,bld->bod"}> : () -> ()
    %cst_32 = arith.constant dense<0.000000e+00> : vector<8x1x256xf32>
    %63 = tpu.matmul %61, %62, %cst_32 {dimension_numbers = #tpu.dot_dimension_numbers<[2], [1], [1], [2], [0, 0, 0, 1, 1, 2], [0], [0]>} : vector<8x1x16xf32>, vector<8x16x256xf32>, vector<8x1x256xf32> -> vector<8x1x256xf32>
    "tpu.trace_stop"() : () -> ()
    %64 = vector.shape_cast %63 : vector<8x1x256xf32> to vector<8x256xf32>
    %c0_33 = arith.constant 0 : index
    %c0_34 = arith.constant 0 : index
    %65 = vector.load %arg10[%c0_33, %c0_34] : memref<512x128xf32, #tpu.memory_space<vmem>>, vector<256x128xf32>
    %cst_35 = arith.constant dense<0.000000e+00> : vector<8x128xf32>
    %66 = tpu.matmul %64, %65, %cst_35 {dimension_numbers = #tpu.dot_dimension_numbers<[1], [0], [0], [1], [0, 0, 1, 1], [], []>} : vector<8x256xf32>, vector<256x128xf32>, vector<8x128xf32> -> vector<8x128xf32>
    %c256 = arith.constant 256 : index
    %c0_36 = arith.constant 0 : index
    %67 = vector.load %arg10[%c256, %c0_36] : memref<512x128xf32, #tpu.memory_space<vmem>>, vector<128x128xf32>
    %cst_37 = arith.constant dense<0.000000e+00> : vector<8x128xf32>
    %68 = tpu.matmul %40, %67, %cst_37 {dimension_numbers = #tpu.dot_dimension_numbers<[1], [0], [0], [1], [0, 0, 1, 1], [], []>} : vector<8x128xf32>, vector<128x128xf32>, vector<8x128xf32> -> vector<8x128xf32>
    %69 = arith.addf %66, %68 : vector<8x128xf32>
    %c384 = arith.constant 384 : index
    %c0_38 = arith.constant 0 : index
    %70 = vector.load %arg10[%c384, %c0_38] : memref<512x128xf32, #tpu.memory_space<vmem>>, vector<128x128xf32>
    %cst_39 = arith.constant dense<0.000000e+00> : vector<8x128xf32>
    %71 = tpu.matmul %38, %70, %cst_39 {dimension_numbers = #tpu.dot_dimension_numbers<[1], [0], [0], [1], [0, 0, 1, 1], [], []>} : vector<8x128xf32>, vector<128x128xf32>, vector<8x128xf32> -> vector<8x128xf32>
    %72 = arith.addf %69, %71 : vector<8x128xf32>
    %c0_40 = arith.constant 0 : index
    %c0_41 = arith.constant 0 : index
    %73 = vector.load %arg11[%c0_40, %c0_41] : memref<1x128xf32, #tpu.memory_space<vmem>>, vector<1x128xf32>
    %74 = vector.broadcast %73 : vector<1x128xf32> to vector<8x128xf32>
    %75 = arith.addf %72, %74 : vector<8x128xf32>
    %76 = math.tanh %75 : vector<8x128xf32>
    %c0_42 = arith.constant 0 : index
    %c0_43 = arith.constant 0 : index
    %77 = vector.load %arg12[%c0_42, %c0_43] : memref<128x256xf32, #tpu.memory_space<vmem>>, vector<128x256xf32>
    %cst_44 = arith.constant dense<0.000000e+00> : vector<8x256xf32>
    %78 = tpu.matmul %76, %77, %cst_44 {dimension_numbers = #tpu.dot_dimension_numbers<[1], [0], [0], [1], [0, 0, 1, 1], [], []>} : vector<8x128xf32>, vector<128x256xf32>, vector<8x256xf32> -> vector<8x256xf32>
    %c0_45 = arith.constant 0 : index
    %c0_46 = arith.constant 0 : index
    %79 = vector.load %arg13[%c0_45, %c0_46] : memref<1x256xf32, #tpu.memory_space<vmem>>, vector<1x256xf32>
    %80 = vector.broadcast %79 : vector<1x256xf32> to vector<8x256xf32>
    %81 = arith.addf %78, %80 : vector<8x256xf32>
    %cst_47 = arith.constant dense<0xFF800000> : vector<8xf32>
    %82 = vector.multi_reduction <maximumf>, %81, %cst_47 [1] : vector<8x256xf32> to vector<8xf32>
    %83 = vector.shape_cast %82 : vector<8xf32> to vector<8x1xf32>
    %84 = vector.broadcast %83 : vector<8x1xf32> to vector<8x256xf32>
    %85 = arith.subf %81, %84 : vector<8x256xf32>
    %86 = math.exp %85 : vector<8x256xf32>
    %cst_48 = arith.constant dense<0.000000e+00> : vector<8xf32>
    %87 = vector.multi_reduction <add>, %86, %cst_48 [1] : vector<8x256xf32> to vector<8xf32>
    %88 = vector.shape_cast %87 : vector<8xf32> to vector<8x1xf32>
    %89 = math.log %88 : vector<8x1xf32>
    %90 = vector.broadcast %89 : vector<8x1xf32> to vector<8x256xf32>
    %91 = arith.subf %85, %90 : vector<8x256xf32>
    %92 = arith.index_cast %c0_i32_1 : i32 to index
    %c0_49 = arith.constant 0 : index
    %c0_50 = arith.constant 0 : index
    %93 = vector.load %arg14[%92, %c0_49, %c0_50] : memref<1x8x256xf32, #tpu.memory_space<vmem>>, vector<1x8x256xf32>
    %94 = vector.shape_cast %93 : vector<1x8x256xf32> to vector<8x256xf32>
    %95 = vector.shape_cast %91 : vector<8x256xf32> to vector<1x8x256xf32>
    tpu.vector_store %arg14[%92, %c0_49, %c0_50], %95 {strides = array<i32>} : memref<1x8x256xf32, #tpu.memory_space<vmem>>, vector<1x8x256xf32>,
    %96 = vector.shape_cast %61 : vector<8x1x16xf32> to vector<8x16xf32>
    %97 = arith.index_cast %c0_i32_1 : i32 to index
    %c0_51 = arith.constant 0 : index
    %c0_52 = arith.constant 0 : index
    %98 = vector.load %arg15[%97, %c0_51, %c0_52] : memref<1x8x16xf32, #tpu.memory_space<vmem>>, vector<1x8x16xf32>
    %99 = vector.shape_cast %98 : vector<1x8x16xf32> to vector<8x16xf32>
    %100 = vector.shape_cast %96 : vector<8x16xf32> to vector<1x8x16xf32>
    tpu.vector_store %arg15[%97, %c0_51, %c0_52], %100 {strides = array<i32>} : memref<1x8x16xf32, #tpu.memory_space<vmem>>, vector<1x8x16xf32>,
    %c0_53 = arith.constant 0 : index
    %c0_54 = arith.constant 0 : index
    %101 = vector.load %arg18[%c0_53, %c0_54] : memref<8x128xf32, #tpu.memory_space<vmem>>, vector<8x128xf32>
    tpu.vector_store %arg18[%c0_53, %c0_54], %40 {strides = array<i32>} : memref<8x128xf32, #tpu.memory_space<vmem>>, vector<8x128xf32>,
    %c0_55 = arith.constant 0 : index
    %c0_56 = arith.constant 0 : index
    %102 = vector.load %arg19[%c0_55, %c0_56] : memref<8x128xf32, #tpu.memory_space<vmem>>, vector<8x128xf32>
    tpu.vector_store %arg19[%c0_55, %c0_56], %38 {strides = array<i32>} : memref<8x128xf32, #tpu.memory_space<vmem>>, vector<8x128xf32>,
    %c1_i32 = arith.constant 1 : i32
    %c0_57 = arith.constant 0 : index
    %c0_58 = arith.constant 0 : index
    %103 = vector.load %arg18[%c0_57, %c0_58] : memref<8x128xf32, #tpu.memory_space<vmem>>, vector<8x128xf32>
    %c0_59 = arith.constant 0 : index
    %c0_60 = arith.constant 0 : index
    %104 = vector.load %arg16[%c0_59, %c0_60] : memref<8x128xf32, #tpu.memory_space<vmem>>, vector<8x128xf32>
    tpu.vector_store %arg16[%c0_59, %c0_60], %103 {strides = array<i32>} : memref<8x128xf32, #tpu.memory_space<vmem>>, vector<8x128xf32>,
    %c0_61 = arith.constant 0 : index
    %c0_62 = arith.constant 0 : index
    %105 = vector.load %arg19[%c0_61, %c0_62] : memref<8x128xf32, #tpu.memory_space<vmem>>, vector<8x128xf32>
    %c0_63 = arith.constant 0 : index
    %c0_64 = arith.constant 0 : index
    %106 = vector.load %arg17[%c0_63, %c0_64] : memref<8x128xf32, #tpu.memory_space<vmem>>, vector<8x128xf32>
    tpu.vector_store %arg17[%c0_63, %c0_64], %105 {strides = array<i32>} : memref<8x128xf32, #tpu.memory_space<vmem>>, vector<8x128xf32>,
    return
  }
  func.func @transform_0(%arg0: i32) -> (i32, i32, i32) {
    %c0_i32 = arith.constant 0 : i32
    %c0_i32_0 = arith.constant 0 : i32
    %c0_i32_1 = arith.constant 0 : i32
    return %arg0, %c0_i32, %c0_i32_0 : i32, i32, i32
  }
  func.func @transform_1(%arg0: i32) -> (i32, i32) {
    %c0_i32 = arith.constant 0 : i32
    %c0_i32_0 = arith.constant 0 : i32
    %c0_i32_1 = arith.constant 0 : i32
    return %c0_i32, %c0_i32_0 : i32, i32
  }
  func.func @transform_2(%arg0: i32) -> (i32, i32) {
    %c0_i32 = arith.constant 0 : i32
    %c0_i32_0 = arith.constant 0 : i32
    %c0_i32_1 = arith.constant 0 : i32
    return %c0_i32, %c0_i32_0 : i32, i32
  }
  func.func @transform_3(%arg0: i32) -> (i32, i32, i32) {
    %c0_i32 = arith.constant 0 : i32
    %c0_i32_0 = arith.constant 0 : i32
    %c0_i32_1 = arith.constant 0 : i32
    %c0_i32_2 = arith.constant 0 : i32
    return %c0_i32, %c0_i32_0, %c0_i32_1 : i32, i32, i32
  }
  func.func @transform_4(%arg0: i32) -> (i32, i32, i32) {
    %c0_i32 = arith.constant 0 : i32
    %c0_i32_0 = arith.constant 0 : i32
    %c0_i32_1 = arith.constant 0 : i32
    %c0_i32_2 = arith.constant 0 : i32
    return %c0_i32, %c0_i32_0, %c0_i32_1 : i32, i32, i32
  }
  func.func @transform_5(%arg0: i32) -> (i32, i32) {
    %c0_i32 = arith.constant 0 : i32
    %c0_i32_0 = arith.constant 0 : i32
    %c0_i32_1 = arith.constant 0 : i32
    return %c0_i32, %c0_i32_0 : i32, i32
  }
  func.func @transform_6(%arg0: i32) -> (i32, i32) {
    %c0_i32 = arith.constant 0 : i32
    %c0_i32_0 = arith.constant 0 : i32
    %c0_i32_1 = arith.constant 0 : i32
    return %c0_i32, %c0_i32_0 : i32, i32
  }
  func.func @transform_7(%arg0: i32) -> (i32, i32) {
    %c0_i32 = arith.constant 0 : i32
    %c0_i32_0 = arith.constant 0 : i32
    %c0_i32_1 = arith.constant 0 : i32
    return %c0_i32, %c0_i32_0 : i32, i32
  }
  func.func @transform_8(%arg0: i32) -> (i32, i32) {
    %c0_i32 = arith.constant 0 : i32
    %c0_i32_0 = arith.constant 0 : i32
    %c0_i32_1 = arith.constant 0 : i32
    return %c0_i32, %c0_i32_0 : i32, i32
  }
  func.func @transform_9(%arg0: i32) -> (i32, i32) {
    %c0_i32 = arith.constant 0 : i32
    %c0_i32_0 = arith.constant 0 : i32
    %c0_i32_1 = arith.constant 0 : i32
    return %c0_i32, %c0_i32_0 : i32, i32
  }
  func.func @transform_10(%arg0: i32) -> (i32, i32) {
    %c0_i32 = arith.constant 0 : i32
    %c0_i32_0 = arith.constant 0 : i32
    %c0_i32_1 = arith.constant 0 : i32
    return %c0_i32, %c0_i32_0 : i32, i32
  }
  func.func @transform_11(%arg0: i32) -> (i32, i32) {
    %c0_i32 = arith.constant 0 : i32
    %c0_i32_0 = arith.constant 0 : i32
    %c0_i32_1 = arith.constant 0 : i32
    return %c0_i32, %c0_i32_0 : i32, i32
  }
  func.func @transform_12(%arg0: i32) -> (i32, i32) {
    %c0_i32 = arith.constant 0 : i32
    %c0_i32_0 = arith.constant 0 : i32
    %c0_i32_1 = arith.constant 0 : i32
    return %c0_i32, %c0_i32_0 : i32, i32
  }
  func.func @transform_13(%arg0: i32) -> (i32, i32, i32) {
    %c0_i32 = arith.constant 0 : i32
    %c0_i32_0 = arith.constant 0 : i32
    %c0_i32_1 = arith.constant 0 : i32
    return %arg0, %c0_i32, %c0_i32_0 : i32, i32, i32
  }
  func.func @transform_14(%arg0: i32) -> (i32, i32, i32) {
    %c0_i32 = arith.constant 0 : i32
    %c0_i32_0 = arith.constant 0 : i32
    %c0_i32_1 = arith.constant 0 : i32
    return %arg0, %c0_i32, %c0_i32_0 : i32, i32, i32
  }
  func.func @transform_15(%arg0: i32) -> (i32, i32) {
    %c0_i32 = arith.constant 0 : i32
    %c0_i32_0 = arith.constant 0 : i32
    %c0_i32_1 = arith.constant 0 : i32
    return %c0_i32, %c0_i32_0 : i32, i32
  }
  func.func @transform_16(%arg0: i32) -> (i32, i32) {
    %c0_i32 = arith.constant 0 : i32
    %c0_i32_0 = arith.constant 0 : i32
    %c0_i32_1 = arith.constant 0 : i32
    return %c0_i32, %c0_i32_0 : i32, i32
  }
}

module attributes {stable_mosaic.version = 11 : i64} {
  func.func @_attn_decoder_block_kernel(%arg0: i32, %arg1: memref<1x8x32xf32, #tpu.memory_space<vmem>>, %arg2: memref<8x128xf32, #tpu.memory_space<vmem>>, %arg3: memref<8x128xf32, #tpu.memory_space<vmem>>, %arg4: memref<8x16x256xf32, #tpu.memory_space<vmem>>, %arg5: memref<8x256x16xf32, #tpu.memory_space<vmem>>, %arg6: memref<160x512xf32, #tpu.memory_space<vmem>>, %arg7: memref<1x512xf32, #tpu.memory_space<vmem>>, %arg8: memref<256x256xf32, #tpu.memory_space<vmem>>, %arg9: memref<1x256xf32, #tpu.memory_space<vmem>>, %arg10: memref<512x128xf32, #tpu.memory_space<vmem>>, %arg11: memref<1x128xf32, #tpu.memory_space<vmem>>, %arg12: memref<128x256xf32, #tpu.memory_space<vmem>>, %arg13: memref<1x256xf32, #tpu.memory_space<vmem>>, %arg14: memref<1x8x256xf32, #tpu.memory_space<vmem>>, %arg15: memref<1x8x16xf32, #tpu.memory_space<vmem>>, %arg16: memref<8x128xf32, #tpu.memory_space<vmem>>, %arg17: memref<8x128xf32, #tpu.memory_space<vmem>>, %arg18: memref<8x128xf32, #tpu.memory_space<vmem>>, %arg19: memref<8x128xf32, #tpu.memory_space<vmem>>) attributes {dimension_semantics = [#tpu.dimension_semantics<arbitrary>], iteration_bounds = array<i64: 1>, scalar_prefetch = 0 : i64, scratch_operands = 2 : i64, tpu.core_type = #tpu.core_type<tc>, window_params = [{transform_indices = @transform_0, window_bounds = array<i64: 1, 8, 32>}, {pipeline_mode = #tpu.pipeline_mode<synchronous>, transform_indices = @transform_1, window_bounds = array<i64: 8, 128>}, {pipeline_mode = #tpu.pipeline_mode<synchronous>, transform_indices = @transform_2, window_bounds = array<i64: 8, 128>}, {pipeline_mode = #tpu.pipeline_mode<synchronous>, transform_indices = @transform_3, window_bounds = array<i64: 8, 16, 256>}, {pipeline_mode = #tpu.pipeline_mode<synchronous>, transform_indices = @transform_4, window_bounds = array<i64: 8, 256, 16>}, {pipeline_mode = #tpu.pipeline_mode<synchronous>, transform_indices = @transform_5, window_bounds = array<i64: 160, 512>}, {pipeline_mode = #tpu.pipeline_mode<synchronous>, transform_indices = @transform_6, window_bounds = array<i64: 1, 512>}, {pipeline_mode = #tpu.pipeline_mode<synchronous>, transform_indices = @transform_7, window_bounds = array<i64: 256, 256>}, {pipeline_mode = #tpu.pipeline_mode<synchronous>, transform_indices = @transform_8, window_bounds = array<i64: 1, 256>}, {pipeline_mode = #tpu.pipeline_mode<synchronous>, transform_indices = @transform_9, window_bounds = array<i64: 512, 128>}, {pipeline_mode = #tpu.pipeline_mode<synchronous>, transform_indices = @transform_10, window_bounds = array<i64: 1, 128>}, {pipeline_mode = #tpu.pipeline_mode<synchronous>, transform_indices = @transform_11, window_bounds = array<i64: 128, 256>}, {pipeline_mode = #tpu.pipeline_mode<synchronous>, transform_indices = @transform_12, window_bounds = array<i64: 1, 256>}, {transform_indices = @transform_13, window_bounds = array<i64: 1, 8, 256>}, {transform_indices = @transform_14, window_bounds = array<i64: 1, 8, 16>}, {pipeline_mode = #tpu.pipeline_mode<synchronous>, transform_indices = @transform_15, window_bounds = array<i64: 8, 128>}, {pipeline_mode = #tpu.pipeline_mode<synchronous>, transform_indices = @transform_16, window_bounds = array<i64: 8, 128>}]} {
    %c0_i32 = arith.constant 0 : i32
    %0 = arith.cmpi eq, %arg0, %c0_i32 : i32
    %1 = arith.extui %0 : i1 to i32
    %c0_i32_0 = arith.constant 0 : i32
    %2 = arith.cmpi ne, %1, %c0_i32_0 : i32
    scf.if %2 {
      %c0_65 = arith.constant 0 : index
      %c0_66 = arith.constant 0 : index
      %107 = vector.load %arg2[%c0_65, %c0_66] : memref<8x128xf32, #tpu.memory_space<vmem>>, vector<8x128xf32>
      %c0_67 = arith.constant 0 : index
      %c0_68 = arith.constant 0 : index
      %108 = vector.load %arg18[%c0_67, %c0_68] : memref<8x128xf32, #tpu.memory_space<vmem>>, vector<8x128xf32>
      tpu.vector_store %arg18[%c0_67, %c0_68], %107 {strides = array<i32>} : memref<8x128xf32, #tpu.memory_space<vmem>>, vector<8x128xf32>,
      %c0_69 = arith.constant 0 : index
      %c0_70 = arith.constant 0 : index
      %109 = vector.load %arg3[%c0_69, %c0_70] : memref<8x128xf32, #tpu.memory_space<vmem>>, vector<8x128xf32>
      %c0_71 = arith.constant 0 : index
      %c0_72 = arith.constant 0 : index
      %110 = vector.load %arg19[%c0_71, %c0_72] : memref<8x128xf32, #tpu.memory_space<vmem>>, vector<8x128xf32>
      tpu.vector_store %arg19[%c0_71, %c0_72], %109 {strides = array<i32>} : memref<8x128xf32, #tpu.memory_space<vmem>>, vector<8x128xf32>,
    } else {
    }
    %c0_i32_1 = arith.constant 0 : i32
    %3 = arith.index_cast %c0_i32_1 : i32 to index
    %c0 = arith.constant 0 : index
    %c0_2 = arith.constant 0 : index
    %4 = vector.load %arg1[%3, %c0, %c0_2] : memref<1x8x32xf32, #tpu.memory_space<vmem>>, vector<1x8x32xf32>
    %5 = vector.shape_cast %4 : vector<1x8x32xf32> to vector<8x32xf32>
    %c0_3 = arith.constant 0 : index
    %c0_4 = arith.constant 0 : index
    %6 = vector.load %arg18[%c0_3, %c0_4] : memref<8x128xf32, #tpu.memory_space<vmem>>, vector<8x128xf32>
    %c0_5 = arith.constant 0 : index
    %c0_6 = arith.constant 0 : index
    %7 = vector.load %arg19[%c0_5, %c0_6] : memref<8x128xf32, #tpu.memory_space<vmem>>, vector<8x128xf32>
    %c0_7 = arith.constant 0 : index
    %c0_8 = arith.constant 0 : index
    %8 = vector.load %arg6[%c0_7, %c0_8] : memref<160x512xf32, #tpu.memory_space<vmem>>, vector<32x512xf32>
    %cst = arith.constant dense<0.000000e+00> : vector<8x512xf32>
    %9 = tpu.matmul %5, %8, %cst {dimension_numbers = #tpu.dot_dimension_numbers<[1], [0], [0], [1], [0, 0, 1, 1], [], []>} : vector<8x32xf32>, vector<32x512xf32>, vector<8x512xf32> -> vector<8x512xf32>
    %c32 = arith.constant 32 : index
    %c0_9 = arith.constant 0 : index
    %10 = vector.load %arg6[%c32, %c0_9] : memref<160x512xf32, #tpu.memory_space<vmem>>, vector<128x512xf32>
    %cst_10 = arith.constant dense<0.000000e+00> : vector<8x512xf32>
    %11 = tpu.matmul %6, %10, %cst_10 {dimension_numbers = #tpu.dot_dimension_numbers<[1], [0], [0], [1], [0, 0, 1, 1], [], []>} : vector<8x128xf32>, vector<128x512xf32>, vector<8x512xf32> -> vector<8x512xf32>
    %12 = arith.addf %9, %11 : vector<8x512xf32>
    %c0_11 = arith.constant 0 : index
    %c0_12 = arith.constant 0 : index
    %13 = vector.load %arg7[%c0_11, %c0_12] : memref<1x512xf32, #tpu.memory_space<vmem>>, vector<1x512xf32>
    %14 = vector.broadcast %13 : vector<1x512xf32> to vector<8x512xf32>
    %15 = arith.addf %12, %14 : vector<8x512xf32>
    %16 = vector.extract_strided_slice %15 {offsets = [0, 0], sizes = [8, 128], strides = [1, 1]} : vector<8x512xf32> to vector<8x128xf32>
    %17 = arith.negf %16 : vector<8x128xf32>
    %18 = math.exp %17 : vector<8x128xf32>
    %cst_13 = arith.constant 1.000000e+00 : f32
    %19 = vector.broadcast %cst_13 : f32 to vector<8x128xf32>
    %20 = arith.addf %19, %18 : vector<8x128xf32>
    %21 = arith.divf %19, %20 : vector<8x128xf32>
    %22 = vector.extract_strided_slice %15 {offsets = [0, 128], sizes = [8, 128], strides = [1, 1]} : vector<8x512xf32> to vector<8x128xf32>
    %23 = arith.negf %22 : vector<8x128xf32>
    %24 = math.exp %23 : vector<8x128xf32>
    %cst_14 = arith.constant 1.000000e+00 : f32
    %25 = vector.broadcast %cst_14 : f32 to vector<8x128xf32>
    %26 = arith.addf %25, %24 : vector<8x128xf32>
    %27 = arith.divf %25, %26 : vector<8x128xf32>
    %28 = vector.extract_strided_slice %15 {offsets = [0, 256], sizes = [8, 128], strides = [1, 1]} : vector<8x512xf32> to vector<8x128xf32>
    %29 = math.tanh %28 : vector<8x128xf32>
    %30 = vector.extract_strided_slice %15 {offsets = [0, 384], sizes = [8, 128], strides = [1, 1]} : vector<8x512xf32> to vector<8x128xf32>
    %31 = arith.negf %30 : vector<8x128xf32>
    %32 = math.exp %31 : vector<8x128xf32>
    %cst_15 = arith.constant 1.000000e+00 : f32
    %33 = vector.broadcast %cst_15 : f32 to vector<8x128xf32>
    %34 = arith.addf %33, %32 : vector<8x128xf32>
    %35 = arith.divf %33, %34 : vector<8x128xf32>
    %36 = arith.mulf %27, %7 : vector<8x128xf32>
    %37 = arith.mulf %21, %29 : vector<8x128xf32>
    %38 = arith.addf %36, %37 : vector<8x128xf32>
    %39 = math.tanh %38 : vector<8x128xf32>
    %40 = arith.mulf %35, %39 : vector<8x128xf32>
    %c0_16 = arith.constant 0 : index
    %c0_17 = arith.constant 0 : index
    %41 = vector.load %arg8[%c0_16, %c0_17] : memref<256x256xf32, #tpu.memory_space<vmem>>, vector<128x256xf32>
    %cst_18 = arith.constant dense<0.000000e+00> : vector<8x256xf32>
    %42 = tpu.matmul %40, %41, %cst_18 {dimension_numbers = #tpu.dot_dimension_numbers<[1], [0], [0], [1], [0, 0, 1, 1], [], []>} : vector<8x128xf32>, vector<128x256xf32>, vector<8x256xf32> -> vector<8x256xf32>
    %c128 = arith.constant 128 : index
    %c0_19 = arith.constant 0 : index
    %43 = vector.load %arg8[%c128, %c0_19] : memref<256x256xf32, #tpu.memory_space<vmem>>, vector<128x256xf32>
    %cst_20 = arith.constant dense<0.000000e+00> : vector<8x256xf32>
    %44 = tpu.matmul %38, %43, %cst_20 {dimension_numbers = #tpu.dot_dimension_numbers<[1], [0], [0], [1], [0, 0, 1, 1], [], []>} : vector<8x128xf32>, vector<128x256xf32>, vector<8x256xf32> -> vector<8x256xf32>
    %45 = arith.addf %42, %44 : vector<8x256xf32>
    %c0_21 = arith.constant 0 : index
    %c0_22 = arith.constant 0 : index
    %46 = vector.load %arg9[%c0_21, %c0_22] : memref<1x256xf32, #tpu.memory_space<vmem>>, vector<1x256xf32>
    %47 = vector.broadcast %46 : vector<1x256xf32> to vector<8x256xf32>
    %48 = arith.addf %45, %47 : vector<8x256xf32>
    %49 = vector.shape_cast %48 : vector<8x256xf32> to vector<8x1x256xf32>
    %c0_23 = arith.constant 0 : index
    %c0_24 = arith.constant 0 : index
    %c0_25 = arith.constant 0 : index
    %50 = vector.load %arg5[%c0_23, %c0_24, %c0_25] : memref<8x256x16xf32, #tpu.memory_space<vmem>>, vector<8x256x16xf32>
    "tpu.trace_start"() <{level = 10 : i32, message = "bod,bdl->bol"}> : () -> ()
    %cst_26 = arith.constant dense<0.000000e+00> : vector<8x1x16xf32>
    %51 = tpu.matmul %49, %50, %cst_26 {dimension_numbers = #tpu.dot_dimension_numbers<[2], [1], [1], [2], [0, 0, 0, 1, 1, 2], [0], [0]>} : vector<8x1x256xf32>, vector<8x256x16xf32>, vector<8x1x16xf32> -> vector<8x1x16xf32>
    "tpu.trace_stop"() : () -> ()
    %cst_27 = arith.constant dense<0xFF800000> : vector<8x1xf32>
    %52 = vector.multi_reduction <maximumf>, %51, %cst_27 [2] : vector<8x1x16xf32> to vector<8x1xf32>
    %53 = vector.shape_cast %52 : vector<8x1xf32> to vector<8x1x1xf32>
    %54 = vector.broadcast %53 : vector<8x1x1xf32> to vector<8x1x16xf32>
    %55 = arith.subf %51, %54 : vector<8x1x16xf32>
    %56 = math.exp %55 : vector<8x1x16xf32>
    %cst_28 = arith.constant dense<0.000000e+00> : vector<8x1xf32>
    %57 = vector.multi_reduction <add>, %56, %cst_28 [2] : vector<8x1x16xf32> to vector<8x1xf32>
    %58 = vector.shape_cast %57 : vector<8x1xf32> to vector<8x1x1xf32>
    %59 = tpu.reciprocal %58 {approx = true} : vector<8x1x1xf32> -> vector<8x1x1xf32>
    %60 = vector.broadcast %59 : vector<8x1x1xf32> to vector<8x1x16xf32>
    %61 = arith.mulf %56, %60 : vector<8x1x16xf32>
    %c0_29 = arith.constant 0 : index
    %c0_30 = arith.constant 0 : index
    %c0_31 = arith.constant 0 : index
    %62 = vector.load %arg4[%c0_29, %c0_30, %c0_31] : memref<8x16x256xf32, #tpu.memory_space<vmem>>, vector<8x16x256xf32>
    "tpu.trace_start"() <{level = 10 : i32, message = "bol,bld->bod"}> : () -> ()
    %cst_32 = arith.constant dense<0.000000e+00> : vector<8x1x256xf32>
    %63 = tpu.matmul %61, %62, %cst_32 {dimension_numbers = #tpu.dot_dimension_numbers<[2], [1], [1], [2], [0, 0, 0, 1, 1, 2], [0], [0]>} : vector<8x1x16xf32>, vector<8x16x256xf32>, vector<8x1x256xf32> -> vector<8x1x256xf32>
    "tpu.trace_stop"() : () -> ()
    %64 = vector.shape_cast %63 : vector<8x1x256xf32> to vector<8x256xf32>
    %c0_33 = arith.constant 0 : index
    %c0_34 = arith.constant 0 : index
    %65 = vector.load %arg10[%c0_33, %c0_34] : memref<512x128xf32, #tpu.memory_space<vmem>>, vector<256x128xf32>
    %cst_35 = arith.constant dense<0.000000e+00> : vector<8x128xf32>
    %66 = tpu.matmul %64, %65, %cst_35 {dimension_numbers = #tpu.dot_dimension_numbers<[1], [0], [0], [1], [0, 0, 1, 1], [], []>} : vector<8x256xf32>, vector<256x128xf32>, vector<8x128xf32> -> vector<8x128xf32>
    %c256 = arith.constant 256 : index
    %c0_36 = arith.constant 0 : index
    %67 = vector.load %arg10[%c256, %c0_36] : memref<512x128xf32, #tpu.memory_space<vmem>>, vector<128x128xf32>
    %cst_37 = arith.constant dense<0.000000e+00> : vector<8x128xf32>
    %68 = tpu.matmul %40, %67, %cst_37 {dimension_numbers = #tpu.dot_dimension_numbers<[1], [0], [0], [1], [0, 0, 1, 1], [], []>} : vector<8x128xf32>, vector<128x128xf32>, vector<8x128xf32> -> vector<8x128xf32>
    %69 = arith.addf %66, %68 : vector<8x128xf32>
    %c384 = arith.constant 384 : index
    %c0_38 = arith.constant 0 : index
    %70 = vector.load %arg10[%c384, %c0_38] : memref<512x128xf32, #tpu.memory_space<vmem>>, vector<128x128xf32>
    %cst_39 = arith.constant dense<0.000000e+00> : vector<8x128xf32>
    %71 = tpu.matmul %38, %70, %cst_39 {dimension_numbers = #tpu.dot_dimension_numbers<[1], [0], [0], [1], [0, 0, 1, 1], [], []>} : vector<8x128xf32>, vector<128x128xf32>, vector<8x128xf32> -> vector<8x128xf32>
    %72 = arith.addf %69, %71 : vector<8x128xf32>
    %c0_40 = arith.constant 0 : index
    %c0_41 = arith.constant 0 : index
    %73 = vector.load %arg11[%c0_40, %c0_41] : memref<1x128xf32, #tpu.memory_space<vmem>>, vector<1x128xf32>
    %74 = vector.broadcast %73 : vector<1x128xf32> to vector<8x128xf32>
    %75 = arith.addf %72, %74 : vector<8x128xf32>
    %76 = math.tanh %75 : vector<8x128xf32>
    %c0_42 = arith.constant 0 : index
    %c0_43 = arith.constant 0 : index
    %77 = vector.load %arg12[%c0_42, %c0_43] : memref<128x256xf32, #tpu.memory_space<vmem>>, vector<128x256xf32>
    %cst_44 = arith.constant dense<0.000000e+00> : vector<8x256xf32>
    %78 = tpu.matmul %76, %77, %cst_44 {dimension_numbers = #tpu.dot_dimension_numbers<[1], [0], [0], [1], [0, 0, 1, 1], [], []>} : vector<8x128xf32>, vector<128x256xf32>, vector<8x256xf32> -> vector<8x256xf32>
    %c0_45 = arith.constant 0 : index
    %c0_46 = arith.constant 0 : index
    %79 = vector.load %arg13[%c0_45, %c0_46] : memref<1x256xf32, #tpu.memory_space<vmem>>, vector<1x256xf32>
    %80 = vector.broadcast %79 : vector<1x256xf32> to vector<8x256xf32>
    %81 = arith.addf %78, %80 : vector<8x256xf32>
    %cst_47 = arith.constant dense<0xFF800000> : vector<8xf32>
    %82 = vector.multi_reduction <maximumf>, %81, %cst_47 [1] : vector<8x256xf32> to vector<8xf32>
    %83 = vector.shape_cast %82 : vector<8xf32> to vector<8x1xf32>
    %84 = vector.broadcast %83 : vector<8x1xf32> to vector<8x256xf32>
    %85 = arith.subf %81, %84 : vector<8x256xf32>
    %86 = math.exp %85 : vector<8x256xf32>
    %cst_48 = arith.constant dense<0.000000e+00> : vector<8xf32>
    %87 = vector.multi_reduction <add>, %86, %cst_48 [1] : vector<8x256xf32> to vector<8xf32>
    %88 = vector.shape_cast %87 : vector<8xf32> to vector<8x1xf32>
    %89 = math.log %88 : vector<8x1xf32>
    %90 = vector.broadcast %89 : vector<8x1xf32> to vector<8x256xf32>
    %91 = arith.subf %85, %90 : vector<8x256xf32>
    %92 = arith.index_cast %c0_i32_1 : i32 to index
    %c0_49 = arith.constant 0 : index
    %c0_50 = arith.constant 0 : index
    %93 = vector.load %arg14[%92, %c0_49, %c0_50] : memref<1x8x256xf32, #tpu.memory_space<vmem>>, vector<1x8x256xf32>
    %94 = vector.shape_cast %93 : vector<1x8x256xf32> to vector<8x256xf32>
    %95 = vector.shape_cast %91 : vector<8x256xf32> to vector<1x8x256xf32>
    tpu.vector_store %arg14[%92, %c0_49, %c0_50], %95 {strides = array<i32>} : memref<1x8x256xf32, #tpu.memory_space<vmem>>, vector<1x8x256xf32>,
    %96 = vector.shape_cast %61 : vector<8x1x16xf32> to vector<8x16xf32>
    %97 = arith.index_cast %c0_i32_1 : i32 to index
    %c0_51 = arith.constant 0 : index
    %c0_52 = arith.constant 0 : index
    %98 = vector.load %arg15[%97, %c0_51, %c0_52] : memref<1x8x16xf32, #tpu.memory_space<vmem>>, vector<1x8x16xf32>
    %99 = vector.shape_cast %98 : vector<1x8x16xf32> to vector<8x16xf32>
    %100 = vector.shape_cast %96 : vector<8x16xf32> to vector<1x8x16xf32>
    tpu.vector_store %arg15[%97, %c0_51, %c0_52], %100 {strides = array<i32>} : memref<1x8x16xf32, #tpu.memory_space<vmem>>, vector<1x8x16xf32>,
    %c0_53 = arith.constant 0 : index
    %c0_54 = arith.constant 0 : index
    %101 = vector.load %arg18[%c0_53, %c0_54] : memref<8x128xf32, #tpu.memory_space<vmem>>, vector<8x128xf32>
    tpu.vector_store %arg18[%c0_53, %c0_54], %40 {strides = array<i32>} : memref<8x128xf32, #tpu.memory_space<vmem>>, vector<8x128xf32>,
    %c0_55 = arith.constant 0 : index
    %c0_56 = arith.constant 0 : index
    %102 = vector.load %arg19[%c0_55, %c0_56] : memref<8x128xf32, #tpu.memory_space<vmem>>, vector<8x128xf32>
    tpu.vector_store %arg19[%c0_55, %c0_56], %38 {strides = array<i32>} : memref<8x128xf32, #tpu.memory_space<vmem>>, vector<8x128xf32>,
    %c1_i32 = arith.constant 1 : i32
    %c0_57 = arith.constant 0 : index
    %c0_58 = arith.constant 0 : index
    %103 = vector.load %arg18[%c0_57, %c0_58] : memref<8x128xf32, #tpu.memory_space<vmem>>, vector<8x128xf32>
    %c0_59 = arith.constant 0 : index
    %c0_60 = arith.constant 0 : index
    %104 = vector.load %arg16[%c0_59, %c0_60] : memref<8x128xf32, #tpu.memory_space<vmem>>, vector<8x128xf32>
    tpu.vector_store %arg16[%c0_59, %c0_60], %103 {strides = array<i32>} : memref<8x128xf32, #tpu.memory_space<vmem>>, vector<8x128xf32>,
    %c0_61 = arith.constant 0 : index
    %c0_62 = arith.constant 0 : index
    %105 = vector.load %arg19[%c0_61, %c0_62] : memref<8x128xf32, #tpu.memory_space<vmem>>, vector<8x128xf32>
    %c0_63 = arith.constant 0 : index
    %c0_64 = arith.constant 0 : index
    %106 = vector.load %arg17[%c0_63, %c0_64] : memref<8x128xf32, #tpu.memory_space<vmem>>, vector<8x128xf32>
    tpu.vector_store %arg17[%c0_63, %c0_64], %105 {strides = array<i32>} : memref<8x128xf32, #tpu.memory_space<vmem>>, vector<8x128xf32>,
    return
  }
  func.func @transform_0(%arg0: i32) -> (i32, i32, i32) {
    %c0_i32 = arith.constant 0 : i32
    %c0_i32_0 = arith.constant 0 : i32
    %c0_i32_1 = arith.constant 0 : i32
    return %arg0, %c0_i32, %c0_i32_0 : i32, i32, i32
  }
  func.func @transform_1(%arg0: i32) -> (i32, i32) {
    %c0_i32 = arith.constant 0 : i32
    %c0_i32_0 = arith.constant 0 : i32
    %c0_i32_1 = arith.constant 0 : i32
    return %c0_i32, %c0_i32_0 : i32, i32
  }
  func.func @transform_2(%arg0: i32) -> (i32, i32) {
    %c0_i32 = arith.constant 0 : i32
    %c0_i32_0 = arith.constant 0 : i32
    %c0_i32_1 = arith.constant 0 : i32
    return %c0_i32, %c0_i32_0 : i32, i32
  }
  func.func @transform_3(%arg0: i32) -> (i32, i32, i32) {
    %c0_i32 = arith.constant 0 : i32
    %c0_i32_0 = arith.constant 0 : i32
    %c0_i32_1 = arith.constant 0 : i32
    %c0_i32_2 = arith.constant 0 : i32
    return %c0_i32, %c0_i32_0, %c0_i32_1 : i32, i32, i32
  }
  func.func @transform_4(%arg0: i32) -> (i32, i32, i32) {
    %c0_i32 = arith.constant 0 : i32
    %c0_i32_0 = arith.constant 0 : i32
    %c0_i32_1 = arith.constant 0 : i32
    %c0_i32_2 = arith.constant 0 : i32
    return %c0_i32, %c0_i32_0, %c0_i32_1 : i32, i32, i32
  }
  func.func @transform_5(%arg0: i32) -> (i32, i32) {
    %c0_i32 = arith.constant 0 : i32
    %c0_i32_0 = arith.constant 0 : i32
    %c0_i32_1 = arith.constant 0 : i32
    return %c0_i32, %c0_i32_0 : i32, i32
  }
  func.func @transform_6(%arg0: i32) -> (i32, i32) {
    %c0_i32 = arith.constant 0 : i32
    %c0_i32_0 = arith.constant 0 : i32
    %c0_i32_1 = arith.constant 0 : i32
    return %c0_i32, %c0_i32_0 : i32, i32
  }
  func.func @transform_7(%arg0: i32) -> (i32, i32) {
    %c0_i32 = arith.constant 0 : i32
    %c0_i32_0 = arith.constant 0 : i32
    %c0_i32_1 = arith.constant 0 : i32
    return %c0_i32, %c0_i32_0 : i32, i32
  }
  func.func @transform_8(%arg0: i32) -> (i32, i32) {
    %c0_i32 = arith.constant 0 : i32
    %c0_i32_0 = arith.constant 0 : i32
    %c0_i32_1 = arith.constant 0 : i32
    return %c0_i32, %c0_i32_0 : i32, i32
  }
  func.func @transform_9(%arg0: i32) -> (i32, i32) {
    %c0_i32 = arith.constant 0 : i32
    %c0_i32_0 = arith.constant 0 : i32
    %c0_i32_1 = arith.constant 0 : i32
    return %c0_i32, %c0_i32_0 : i32, i32
  }
  func.func @transform_10(%arg0: i32) -> (i32, i32) {
    %c0_i32 = arith.constant 0 : i32
    %c0_i32_0 = arith.constant 0 : i32
    %c0_i32_1 = arith.constant 0 : i32
    return %c0_i32, %c0_i32_0 : i32, i32
  }
  func.func @transform_11(%arg0: i32) -> (i32, i32) {
    %c0_i32 = arith.constant 0 : i32
    %c0_i32_0 = arith.constant 0 : i32
    %c0_i32_1 = arith.constant 0 : i32
    return %c0_i32, %c0_i32_0 : i32, i32
  }
  func.func @transform_12(%arg0: i32) -> (i32, i32) {
    %c0_i32 = arith.constant 0 : i32
    %c0_i32_0 = arith.constant 0 : i32
    %c0_i32_1 = arith.constant 0 : i32
    return %c0_i32, %c0_i32_0 : i32, i32
  }
  func.func @transform_13(%arg0: i32) -> (i32, i32, i32) {
    %c0_i32 = arith.constant 0 : i32
    %c0_i32_0 = arith.constant 0 : i32
    %c0_i32_1 = arith.constant 0 : i32
    return %arg0, %c0_i32, %c0_i32_0 : i32, i32, i32
  }
  func.func @transform_14(%arg0: i32) -> (i32, i32, i32) {
    %c0_i32 = arith.constant 0 : i32
    %c0_i32_0 = arith.constant 0 : i32
    %c0_i32_1 = arith.constant 0 : i32
    return %arg0, %c0_i32, %c0_i32_0 : i32, i32, i32
  }
  func.func @transform_15(%arg0: i32) -> (i32, i32) {
    %c0_i32 = arith.constant 0 : i32
    %c0_i32_0 = arith.constant 0 : i32
    %c0_i32_1 = arith.constant 0 : i32
    return %c0_i32, %c0_i32_0 : i32, i32
  }
  func.func @transform_16(%arg0: i32) -> (i32, i32) {
    %c0_i32 = arith.constant 0 : i32
    %c0_i32_0 = arith.constant 0 : i32
    %c0_i32_1 = arith.constant 0 : i32
    return %c0_i32, %c0_i32_0 : i32, i32
  }
}

</mosaic_0001>

<bundles_post_ra>
// kernel: tpu_custom_call.1
= control target key start
LH: loop header
LB: loop body
LE: loop exit
PB: predicated region body
PF: predicated region fallthrough
CT: control target
= control target key end

     0   :  { %s4131_s0 = inlined_call_operand.vmem [shape: f32[1,8,32], index: 0, kind: input, shape index: {}]   ;;  %s4132_s1 = inlined_call_operand.vmem [shape: f32[8,128], index: 1, kind: input, shape index: {}]   ;;  %s4133_s2 = inlined_call_operand.vmem [shape: f32[8,128], index: 2, kind: input, shape index: {}]   ;;  %s4134_s3 = inlined_call_operand.vmem [shape: f32[8,16,256], index: 3, kind: input, shape index: {}]   ;;  %s4135_s4 = inlined_call_operand.vmem [shape: f32[8,256,16], index: 4, kind: input, shape index: {}]   ;;  %s4136_s5 = inlined_call_operand.vmem [shape: f32[160,512], index: 5, kind: input, shape index: {}]   ;;  %s4137_s6 = inlined_call_operand.vmem [shape: f32[1,512], index: 6, kind: input, shape index: {}]   ;;  %s4138_s7 = inlined_call_operand.vmem [shape: f32[256,256], index: 7, kind: input, shape index: {}]   ;;  %s4139_s8 = inlined_call_operand.vmem [shape: f32[1,256], index: 8, kind: input, shape index: {}]   ;;  %s4140_s9 = inlined_call_operand.vmem [shape: f32[512,128], index: 9, kind: input, shape index: {}]   ;;  %s4141_s10 = inlined_call_operand.vmem [shape: f32[1,128], index: 10, kind: input, shape index: {}]   ;;  %s4142_s11 = inlined_call_operand.vmem [shape: f32[128,256], index: 11, kind: input, shape index: {}]   ;;  %s4143_s12 = inlined_call_operand.vmem [shape: f32[1,256], index: 12, kind: input, shape index: {}]   ;;  %s4144_s13 = inlined_call_operand.hbm [shape: f32[1,8,256], index: 13, kind: output, shape index: {0}]   ;;  %s4145_s14 = inlined_call_operand.hbm [shape: f32[1,8,16], index: 14, kind: output, shape index: {1}]   ;;  %s4146_s15 = inlined_call_operand.hbm [shape: f32[8,128], index: 15, kind: output, shape index: {2}]   ;;  %s4147_s16 = inlined_call_operand.hbm [shape: f32[8,128], index: 16, kind: output, shape index: {3}]  }
   0x1   :  { %4148 = sst [smem:[#allocation14_spill]] %s4131_s0 }
   0x2   :  { %22 = vsyncpa [#allocation5], 0 }
   0x3   :  { %23 = vsyncpa [#allocation7], 0  ;;  %v140_v0 = vld [vmem:[%s4136_s5 + $0x270] sm:$0xff]  ;;  %v141_v1 = vld [vmem:[%s4136_s5 + $0x278] sm:$0xff] }
   0x4   :  { %v136_v2 = vld [vmem:[%s4136_s5 + $0x250] sm:$0xff]  ;;  %182 = vmatpush.msra.mxu2 %v140_v0  ;;  %202 = vmatpush.msra.mxu3 %v141_v1  ;;  %v137_v3 = vld [vmem:[%s4136_s5 + $0x258] sm:$0xff]  ;;  %v138_v8 = vld [vmem:[%s4136_s5 + $0x260] sm:$0xff] }
   0x5   :  { %v132_v4 = vld [vmem:[%s4136_s5 + $0x230] sm:$0xff]  ;;  %v133_v5 = vld [vmem:[%s4136_s5 + $0x238] sm:$0xff]  ;;  %v139_v10 = vld [vmem:[%s4136_s5 + $0x268] sm:$0xff]  ;;  %142 = vmatpush.msra.mxu0 %v138_v8 }
   0x6   :  { %183 = vmatpush.msra.mxu2 %v136_v2  ;;  %203 = vmatpush.msra.mxu3 %v137_v3  ;;  %v128_v6 = vld [vmem:[%s4136_s5 + $0x210] sm:$0xff]  ;;  %v129_v7 = vld [vmem:[%s4136_s5 + $0x218] sm:$0xff]  ;;  %v134_v12 = vld [vmem:[%s4136_s5 + $0x240] sm:$0xff] }
   0x7   :  { %v124_v9 = vld [vmem:[%s4136_s5 + $0x1f0] sm:$0xff]  ;;  %v125_v11 = vld [vmem:[%s4136_s5 + $0x1f8] sm:$0xff]  ;;  %162 = vmatpush.msra.mxu1 %v139_v10  ;;  %v135_v13 = vld [vmem:[%s4136_s5 + $0x248] sm:$0xff]  ;;  %143 = vmatpush.msra.mxu0 %v134_v12 }
   0x8   :  { %184 = vmatpush.msra.mxu2 %v132_v4  ;;  %204 = vmatpush.msra.mxu3 %v133_v5  ;;  %v130_v14 = vld [vmem:[%s4136_s5 + $0x220] sm:$0xff]  ;;  %v131_v15 = vld [vmem:[%s4136_s5 + $0x228] sm:$0xff]  ;;  %v120_v16 = vld [vmem:[%s4136_s5 + $0x1d0] sm:$0xff] }
   0x9   :  { %v121_v17 = vld [vmem:[%s4136_s5 + $0x1d8] sm:$0xff]  ;;  %163 = vmatpush.msra.mxu1 %v135_v13  ;;  %v126_v18 = vld [vmem:[%s4136_s5 + $0x200] sm:$0xff]  ;;  %v127_v19 = vld [vmem:[%s4136_s5 + $0x208] sm:$0xff]  ;;  %144 = vmatpush.msra.mxu0 %v130_v14 }
   0xa   :  { %185 = vmatpush.msra.mxu2 %v128_v6  ;;  %205 = vmatpush.msra.mxu3 %v129_v7  ;;  %v116_v20 = vld [vmem:[%s4136_s5 + $0x1b0] sm:$0xff]  ;;  %v117_v21 = vld [vmem:[%s4136_s5 + $0x1b8] sm:$0xff]  ;;  %v122_v22 = vld [vmem:[%s4136_s5 + $0x1e0] sm:$0xff] }
   0xb   :  { %164 = vmatpush.msra.mxu1 %v131_v15  ;;  %v123_v23 = vld [vmem:[%s4136_s5 + $0x1e8] sm:$0xff]  ;;  %v112_v24 = vld [vmem:[%s4136_s5 + $0x190] sm:$0xff]  ;;  %v113_v25 = vld [vmem:[%s4136_s5 + $0x198] sm:$0xff]  ;;  %145 = vmatpush.msra.mxu0 %v126_v18 }
   0xc   :  { %186 = vmatpush.msra.mxu2 %v124_v9  ;;  %206 = vmatpush.msra.mxu3 %v125_v11  ;;  %v118_v26 = vld [vmem:[%s4136_s5 + $0x1c0] sm:$0xff]  ;;  %v119_v27 = vld [vmem:[%s4136_s5 + $0x1c8] sm:$0xff]  ;;  %v108_v28 = vld [vmem:[%s4136_s5 + $0x170] sm:$0xff] }
   0xd   :  { %165 = vmatpush.msra.mxu1 %v127_v19  ;;  %v109_v29 = vld [vmem:[%s4136_s5 + $0x178] sm:$0xff]  ;;  %146 = vmatpush.msra.mxu0 %v122_v22  ;;  %v114_v30 = vld [vmem:[%s4136_s5 + $0x1a0] sm:$0xff]  ;;  %v115_v31 = vld [vmem:[%s4136_s5 + $0x1a8] sm:$0xff] }
   0xe   :  { %187 = vmatpush.msra.mxu2 %v120_v16  ;;  %207 = vmatpush.msra.mxu3 %v121_v17  ;;  %v104_v32 = vld [vmem:[%s4136_s5 + $0x150] sm:$0xff]  ;;  %v105_v33 = vld [vmem:[%s4136_s5 + $0x158] sm:$0xff]  ;;  %v110_v34 = vld [vmem:[%s4136_s5 + $0x180] sm:$0xff] }
   0xf   :  { %166 = vmatpush.msra.mxu1 %v123_v23  ;;  %147 = vmatpush.msra.mxu0 %v118_v26  ;;  %v111_v35 = vld [vmem:[%s4136_s5 + $0x188] sm:$0xff]  ;;  %v100_v36 = vld [vmem:[%s4136_s5 + $0x130] sm:$0xff]  ;;  %v101_v37 = vld [vmem:[%s4136_s5 + $0x138] sm:$0xff] }
  0x10   :  { %188 = vmatpush.msra.mxu2 %v116_v20  ;;  %208 = vmatpush.msra.mxu3 %v117_v21  ;;  %v106_v38 = vld [vmem:[%s4136_s5 + $0x160] sm:$0xff]  ;;  %v107_v39 = vld [vmem:[%s4136_s5 + $0x168] sm:$0xff]  ;;  %v96_v40 = vld [vmem:[%s4136_s5 + $0x110] sm:$0xff] }
  0x11   :  { %167 = vmatpush.msra.mxu1 %v119_v27  ;;  %148 = vmatpush.msra.mxu0 %v114_v30  ;;  %v97_v41 = vld [vmem:[%s4136_s5 + $0x118] sm:$0xff]  ;;  %v102_v42 = vld [vmem:[%s4136_s5 + $0x140] sm:$0xff]  ;;  %v103_v43 = vld [vmem:[%s4136_s5 + $0x148] sm:$0xff] }
  0x12   :  { %189 = vmatpush.msra.mxu2 %v112_v24  ;;  %209 = vmatpush.msra.mxu3 %v113_v25  ;;  %v92_v44 = vld [vmem:[%s4136_s5 + $0xf0] sm:$0xff]  ;;  %v93_v45 = vld [vmem:[%s4136_s5 + $0xf8] sm:$0xff]  ;;  %v98_v46 = vld [vmem:[%s4136_s5 + $0x120] sm:$0xff] }
  0x13   :  { %168 = vmatpush.msra.mxu1 %v115_v31  ;;  %149 = vmatpush.msra.mxu0 %v110_v34  ;;  %v99_v47 = vld [vmem:[%s4136_s5 + $0x128] sm:$0xff]  ;;  %v88_v48 = vld [vmem:[%s4136_s5 + $0xd0] sm:$0xff]  ;;  %v89_v49 = vld [vmem:[%s4136_s5 + $0xd8] sm:$0xff] }
  0x14   :  { %190 = vmatpush.msra.mxu2 %v108_v28  ;;  %210 = vmatpush.msra.mxu3 %v109_v29  ;;  %v94_v50 = vld [vmem:[%s4136_s5 + $0x100] sm:$0xff]  ;;  %v95_v51 = vld [vmem:[%s4136_s5 + $0x108] sm:$0xff]  ;;  %v84_v52 = vld [vmem:[%s4136_s5 + $0xb0] sm:$0xff] }
  0x15   :  { %169 = vmatpush.msra.mxu1 %v111_v35  ;;  %150 = vmatpush.msra.mxu0 %v106_v38  ;;  %v85_v53 = vld [vmem:[%s4136_s5 + $0xb8] sm:$0xff]  ;;  %v90_v54 = vld [vmem:[%s4136_s5 + $0xe0] sm:$0xff]  ;;  %v91_v55 = vld [vmem:[%s4136_s5 + $0xe8] sm:$0xff] }
  0x16   :  { %191 = vmatpush.msra.mxu2 %v104_v32  ;;  %211 = vmatpush.msra.mxu3 %v105_v33 }
  0x17   :  { %170 = vmatpush.msra.mxu1 %v107_v39  ;;  %151 = vmatpush.msra.mxu0 %v102_v42 }
  0x18   :  { %192 = vmatpush.msra.mxu2 %v100_v36  ;;  %212 = vmatpush.msra.mxu3 %v101_v37 }
  0x19   :  { %171 = vmatpush.msra.mxu1 %v103_v43  ;;  %152 = vmatpush.msra.mxu0 %v98_v46 }
  0x1a   :  { %193 = vmatpush.msra.mxu2 %v96_v40  ;;  %213 = vmatpush.msra.mxu3 %v97_v41 }
  0x1b   :  { %172 = vmatpush.msra.mxu1 %v99_v47 }
  0x1c   :  { %194 = vmatpush.msra.mxu2 %v92_v44  ;;  %214 = vmatpush.msra.mxu3 %v93_v45 }
  0x1e   :  { %195 = vmatpush.msra.mxu2 %v88_v48  ;;  %215 = vmatpush.msra.mxu3 %v89_v49 }
  0x1f   :  { %24 = vsyncpa [#allocation10], 0  ;;  %v80_v56 = vld [vmem:[%s4136_s5 + $0x90] sm:$0xff]  ;;  %v81_v57 = vld [vmem:[%s4136_s5 + $0x98] sm:$0xff]  ;;  %153 = vmatpush.msra.mxu0 %v94_v50  ;;  %173 = vmatpush.msra.mxu1 %v95_v51  ;;  %s4149_s17 = sld [smem:[#allocation14_spill]]  ;;  %vm222_vm0 = vcmask 261120  }
  0x20   :  { %196 = vmatpush.msra.mxu2 %v84_v52  ;;  %216 = vmatpush.msra.mxu3 %v85_v53  ;;  %v55_v58 = vld [vmem:[%s4132_s1] sm:$0xff]  ;;  %v75_v60 = vld [vmem:[%s4136_s5 + $0x68] sm:$0xff]  ;;  %v76_v10 = vld [vmem:[%s4136_s5 + $0x70] sm:$0xff]  ;;  %vm538_vm13 = vcmask 1040384   ;;  %vm540_vm14 = vcmask 1041409   ;;  %vm555_vm15 = vcmask 1046534  }
  0x21   :  { %v74_v59 = vld [vmem:[%s4136_s5 + $0x60] sm:$0xff]  ;;  %154 = vmatpush.msra.mxu0 %v90_v54  ;;  %174 = vmatpush.msra.mxu1 %v91_v55  ;;  %v87_v62 = vld [vmem:[%s4136_s5 + $0xc8] sm:$0xff]  ;;  %v77_v11 = vld [vmem:[%s4136_s5 + $0x78] sm:$0xff]  ;;  %s1969_s19 = sshll.u32 %s4145_s14, 4  ;;  %s1991_s25 = sshll.u32 %s4147_s16, 4  ;;  %s1970_s19 = int_to_ptr.hbm [resolvable:$true] %s1969_s19  ;;  %s1992_s25 = int_to_ptr.hbm [resolvable:$true] %s1991_s25 }
  0x22   :  { %197 = vmatpush.msra.mxu2 %v80_v56  ;;  %217 = vmatpush.msra.mxu3 %v81_v57  ;;  %v86_v61 = vld [vmem:[%s4136_s5 + $0xc0] sm:$0xff]  ;;  %v71_v0 = vld [vmem:[%s4136_s5 + $0x48] sm:$0xff]  ;;  %v72_v12 = vld [vmem:[%s4136_s5 + $0x50] sm:$0xff]  ;;  %s2204_s26 = smov [#allocation9]   ;;  %s2205_s14 = smov [#allocation4]  }
  0x23   :  { %198 = vmatmul.f32.vlgmr.msra.gmra.mxu2 %v55_v58  ;;  %218 = vmatmul.f32.vlgmr.msra.gmra.mxu3 %v55_v58  ;;  %v70_v63 = vld [vmem:[%s4136_s5 + $0x40] sm:$0xff]  ;;  %v83_v2 = vld [vmem:[%s4136_s5 + $0xa8] sm:$0xff]  ;;  %v73_v13 = vld [vmem:[%s4136_s5 + $0x58] sm:$0xff]  ;;  %s1956_s1 = sshll.u32 %s2205_s14, 4  ;;  %s1958_s27 = sshll.u32 %s4144_s13, 4  ;;  %s1957_s1 = int_to_ptr.vmem [resolvable:$true] %s1956_s1  ;;  %s1959_s27 = int_to_ptr.hbm [resolvable:$true] %s1958_s27 }
  0x24   :  { %238 = vmatpush.msrb.mxu2 %v74_v59  ;;  %258 = vmatpush.msrb.mxu3 %v75_v60  ;;  %v82_v1 = vld [vmem:[%s4136_s5 + $0xa0] sm:$0xff]  ;;  %v67_v4 = vld [vmem:[%s4136_s5 + $0x28] sm:$0xff]  ;;  %v68_v14 = vld [vmem:[%s4136_s5 + $0x30] sm:$0xff] }
  0x25   :  { %v66_v3 = vld [vmem:[%s4136_s5 + $0x20] sm:$0xff]  ;;  %155 = vmatpush.msra.mxu0 %v86_v61  ;;  %175 = vmatpush.msra.mxu1 %v87_v62  ;;  %v79_v6 = vld [vmem:[%s4136_s5 + $0x88] sm:$0xff]  ;;  %v69_v15 = vld [vmem:[%s4136_s5 + $0x38] sm:$0xff] }
  0x26   :  { %239 = vmatpush.msrb.mxu2 %v70_v63  ;;  %259 = vmatpush.msrb.mxu3 %v71_v0  ;;  %v78_v5 = vld [vmem:[%s4136_s5 + $0x80] sm:$0xff]  ;;  %v63_v8 = vld [vmem:[%s4136_s5 + $0x8] sm:$0xff]  ;;  %v64_v16 = vld [vmem:[%s4136_s5 + $0x10] sm:$0xff] }
  0x27   :  { %v62_v7 = vld [vmem:[%s4136_s5] sm:$0xff]  ;;  %156 = vmatpush.msra.mxu0 %v82_v1  ;;  %176 = vmatpush.msra.mxu1 %v83_v2  ;;  %v65_v17 = vld [vmem:[%s4136_s5 + $0x18] sm:$0xff]  ;;  %v445_v18 = vld [vmem:[%s4138_s7 + $0x1f0] sm:$0xff]  ;;  %s1980_s5 = sshll.u32 %s4146_s15, 4  ;;  %s1981_s5 = int_to_ptr.hbm [resolvable:$true] %s1980_s5 }
  0x28   :  { %240 = vmatpush.msrb.mxu2 %v66_v3  ;;  %260 = vmatpush.msrb.mxu3 %v67_v4  ;;  %v59_v9 = vld [vmem:[%s4149_s17] sm:$0xff]  ;;  %v446_v19 = vld [vmem:[%s4138_s7 + $0x1f8] sm:$0xff]  ;;  %v444_v21 = vld [vmem:[%s4138_s7 + $0x1e8] sm:$0xff] }
  0x29   :  { %157 = vmatpush.msra.mxu0 %v78_v5  ;;  %177 = vmatpush.msra.mxu1 %v79_v6  ;;  %v443_v20 = vld [vmem:[%s4138_s7 + $0x1e0] sm:$0xff]  ;;  %v441_v22 = vld [vmem:[%s4138_s7 + $0x1d0] sm:$0xff]  ;;  %v442_v23 = vld [vmem:[%s4138_s7 + $0x1d8] sm:$0xff] }
  0x2a   :  { %241 = vmatpush.msrb.mxu2 %v62_v7  ;;  %261 = vmatpush.msrb.mxu3 %v63_v8  ;;  %v439_v24 = vld [vmem:[%s4138_s7 + $0x1c0] sm:$0xff]  ;;  %v440_v25 = vld [vmem:[%s4138_s7 + $0x1c8] sm:$0xff]  ;;  %v437_v26 = vld [vmem:[%s4138_s7 + $0x1b0] sm:$0xff] }
  0x2b   :  { %2014 = vmatmul.msk.f32.vlgmr.msrb.gmra.mxu2 %vm222_vm0, %v59_v9  ;;  %2015 = vmatmul.msk.f32.vlgmr.msrb.gmra.mxu3 %vm222_vm0, %v59_v9  ;;  %v438_v27 = vld [vmem:[%s4138_s7 + $0x1b8] sm:$0xff]  ;;  %v413_v28 = vld [vmem:[%s4138_s7 + $0xf0] sm:$0xff]  ;;  %v435_v30 = vld [vmem:[%s4138_s7 + $0x1a0] sm:$0xff] }
  0x2c   :  { %278 = vmatpush.msra.mxu2 %v76_v10  ;;  %298 = vmatpush.msra.mxu3 %v77_v11  ;;  %v414_v29 = vld [vmem:[%s4138_s7 + $0xf8] sm:$0xff]  ;;  %v436_v31 = vld [vmem:[%s4138_s7 + $0x1a8] sm:$0xff]  ;;  %v411_v32 = vld [vmem:[%s4138_s7 + $0xe0] sm:$0xff] }
  0x2d   :  { %158 = vmatmul.f32.vlgmr.msra.gmra.mxu0 %v55_v58  ;;  %178 = vmatmul.f32.vlgmr.msra.gmra.mxu1 %v55_v58  ;;  %v412_v33 = vld [vmem:[%s4138_s7 + $0xe8] sm:$0xff]  ;;  %v433_v34 = vld [vmem:[%s4138_s7 + $0x190] sm:$0xff]  ;;  %v434_v35 = vld [vmem:[%s4138_s7 + $0x198] sm:$0xff] }
  0x2e   :  { %279 = vmatpush.msra.mxu2 %v72_v12  ;;  %299 = vmatpush.msra.mxu3 %v73_v13  ;;  %v409_v36 = vld [vmem:[%s4138_s7 + $0xd0] sm:$0xff]  ;;  %v410_v37 = vld [vmem:[%s4138_s7 + $0xd8] sm:$0xff]  ;;  %v431_v38 = vld [vmem:[%s4138_s7 + $0x180] sm:$0xff] }
  0x2f   :  { %447 = vmatpush.msrb.mxu0 %v445_v18  ;;  %467 = vmatpush.msrb.mxu1 %v446_v19  ;;  %v432_v39 = vld [vmem:[%s4138_s7 + $0x188] sm:$0xff]  ;;  %v407_v40 = vld [vmem:[%s4138_s7 + $0xc0] sm:$0xff]  ;;  %v429_v42 = vld [vmem:[%s4138_s7 + $0x170] sm:$0xff] }
  0x30   :  { %280 = vmatpush.msra.mxu2 %v68_v14  ;;  %300 = vmatpush.msra.mxu3 %v69_v15  ;;  %v408_v41 = vld [vmem:[%s4138_s7 + $0xc8] sm:$0xff]  ;;  %v430_v43 = vld [vmem:[%s4138_s7 + $0x178] sm:$0xff]  ;;  %v405_v44 = vld [vmem:[%s4138_s7 + $0xb0] sm:$0xff] }
  0x31   :  { %448 = vmatpush.msrb.mxu0 %v443_v20  ;;  %468 = vmatpush.msrb.mxu1 %v444_v21  ;;  %v406_v45 = vld [vmem:[%s4138_s7 + $0xb8] sm:$0xff]  ;;  %v427_v48 = vld [vmem:[%s4138_s7 + $0x160] sm:$0xff]  ;;  %v428_v49 = vld [vmem:[%s4138_s7 + $0x168] sm:$0xff] }
  0x32   :  { %281 = vmatpush.msra.mxu2 %v64_v16  ;;  %301 = vmatpush.msra.mxu3 %v65_v17  ;;  %v403_v50 = vld [vmem:[%s4138_s7 + $0xa0] sm:$0xff]  ;;  %v404_v51 = vld [vmem:[%s4138_s7 + $0xa8] sm:$0xff]  ;;  %v425_v52 = vld [vmem:[%s4138_s7 + $0x150] sm:$0xff] }
  0x33   :  { %2016 = vmatmul.msk.f32.vlgmr.msra.gmra.mxu2 %vm222_vm0, %v59_v9  ;;  %2017 = vmatmul.msk.f32.vlgmr.msra.gmra.mxu3 %vm222_vm0, %v59_v9  ;;  %v426_v53 = vld [vmem:[%s4138_s7 + $0x158] sm:$0xff]  ;;  %v401_v54 = vld [vmem:[%s4138_s7 + $0x90] sm:$0xff]  ;;  %v2656_v56 = vld [vmem:[%s4137_s6] sm:$0xf]  ;;  %vm543_vm0 = vcmask 1042434  }
  0x34   :  { %449 = vmatpush.msrb.mxu0 %v441_v22  ;;  %469 = vmatpush.msrb.mxu1 %v442_v23  ;;  %v402_v55 = vld [vmem:[%s4138_s7 + $0x98] sm:$0xff]  ;;  %v423_v57 = vld [vmem:[%s4138_s7 + $0x140] sm:$0xff]  ;;  %v424_v58 = vld [vmem:[%s4138_s7 + $0x148] sm:$0xff]  ;;  %v308_v1 = vperm.slane %v2656_v56, 0  ;;  %v309_v2 = vperm.slane %v2656_v56, 1 }
  0x35   :  { %487 = vmatpush.msrb.mxu2 %v413_v28  ;;  %507 = vmatpush.msrb.mxu3 %v414_v29  ;;  %v399_v59 = vld [vmem:[%s4138_s7 + $0x80] sm:$0xff]  ;;  %v400_v60 = vld [vmem:[%s4138_s7 + $0x88] sm:$0xff]  ;;  %v421_v63 = vld [vmem:[%s4138_s7 + $0x130] sm:$0xff] }
  0x36   :  { %450 = vmatpush.msrb.mxu0 %v439_v24  ;;  %470 = vmatpush.msrb.mxu1 %v440_v25  ;;  %v422_v0 = vld [vmem:[%s4138_s7 + $0x138] sm:$0xff]  ;;  %v397_v3 = vld [vmem:[%s4138_s7 + $0x70] sm:$0xff]  ;;  %v419_v7 = vld [vmem:[%s4138_s7 + $0x120] sm:$0xff] }
  0x37   :  { %488 = vmatpush.msrb.mxu2 %v411_v32  ;;  %508 = vmatpush.msrb.mxu3 %v412_v33  ;;  %v398_v4 = vld [vmem:[%s4138_s7 + $0x78] sm:$0xff]  ;;  %v420_v8 = vld [vmem:[%s4138_s7 + $0x128] sm:$0xff]  ;;  %v395_v11 = vld [vmem:[%s4138_s7 + $0x60] sm:$0xff] }
  0x38   :  { %451 = vmatpush.msrb.mxu0 %v437_v26  ;;  %471 = vmatpush.msrb.mxu1 %v438_v27  ;;  %v396_v12 = vld [vmem:[%s4138_s7 + $0x68] sm:$0xff]  ;;  %v417_v13 = vld [vmem:[%s4138_s7 + $0x110] sm:$0xff]  ;;  %v418_v14 = vld [vmem:[%s4138_s7 + $0x118] sm:$0xff]  ;;  %v311_v27 = vperm.slane %v2656_v56, 3 }
  0x39   :  { %489 = vmatpush.msrb.mxu2 %v409_v36  ;;  %509 = vmatpush.msrb.mxu3 %v410_v37  ;;  %v393_v15 = vld [vmem:[%s4138_s7 + $0x50] sm:$0xff]  ;;  %v394_v16 = vld [vmem:[%s4138_s7 + $0x58] sm:$0xff]  ;;  %v415_v19 = vld [vmem:[%s4138_s7 + $0x100] sm:$0xff] }
  0x3a   :  { %452 = vmatpush.msrb.mxu0 %v435_v30  ;;  %472 = vmatpush.msrb.mxu1 %v436_v31  ;;  %v416_v20 = vld [vmem:[%s4138_s7 + $0x108] sm:$0xff]  ;;  %v391_v23 = vld [vmem:[%s4138_s7 + $0x40] sm:$0xff]  ;;  %v389_v25 = vld [vmem:[%s4138_s7 + $0x30] sm:$0xff] }
  0x3b   :  { %490 = vmatpush.msrb.mxu2 %v407_v40  ;;  %510 = vmatpush.msrb.mxu3 %v408_v41  ;;  %v392_v24 = vld [vmem:[%s4138_s7 + $0x48] sm:$0xff]  ;;  %v390_v26 = vld [vmem:[%s4138_s7 + $0x38] sm:$0xff]  ;;  %v387_v28 = vld [vmem:[%s4138_s7 + $0x20] sm:$0xff] }
  0x3c   :  { %453 = vmatpush.msrb.mxu0 %v433_v34  ;;  %473 = vmatpush.msrb.mxu1 %v434_v35  ;;  %v388_v29 = vld [vmem:[%s4138_s7 + $0x28] sm:$0xff]  ;;  %v385_v32 = vld [vmem:[%s4138_s7 + $0x10] sm:$0xff]  ;;  %v386_v33 = vld [vmem:[%s4138_s7 + $0x18] sm:$0xff] }
  0x3d   :  { %491 = vmatpush.msrb.mxu2 %v405_v44  ;;  %511 = vmatpush.msrb.mxu3 %v406_v45  ;;  %v383_v35 = vld [vmem:[%s4138_s7] sm:$0xff]  ;;  %v384_v36 = vld [vmem:[%s4138_s7 + $0x8] sm:$0xff]  ;;  %v592_v44 = vld [vmem:[%s4135_s4 + $0xf8] sm:$0xff] }
  0x3e   :  { %454 = vmatpush.msrb.mxu0 %v431_v38  ;;  %474 = vmatpush.msrb.mxu1 %v432_v39  ;;  %v575_v45 = vld [vmem:[%s4135_s4 + $0x70] sm:$0xff] }
  0x3f   :  { %492 = vmatpush.msrb.mxu2 %v403_v50  ;;  %512 = vmatpush.msrb.mxu3 %v404_v51  ;;  %v574_v50 = vld [vmem:[%s4135_s4 + $0x68] sm:$0xff] }
  0x40   :  { %455 = vmatpush.msrb.mxu0 %v429_v42  ;;  %475 = vmatpush.msrb.mxu1 %v430_v43  ;;  %v576_v43 = vld [vmem:[%s4135_s4 + $0x78] sm:$0xff]  ;;  %v590_v51 = vld [vmem:[%s4135_s4 + $0xe8] sm:$0xff] }
  0x41   :  { %493 = vmatpush.msrb.mxu2 %v401_v54  ;;  %513 = vmatpush.msrb.mxu3 %v402_v55  ;;  %v310_v54 = vperm.slane %v2656_v56, 2  ;;  %v623_v55 = vld [vmem:[%s4135_s4 + $0x1f0] sm:$0xff]  ;;  %v622_v56 = vld [vmem:[%s4135_s4 + $0x1e8] sm:$0xff] }
  0x42   :  { %456 = vmatpush.msrb.mxu0 %v427_v48  ;;  %476 = vmatpush.msrb.mxu1 %v428_v49  ;;  %v608_v48 = vld [vmem:[%s4135_s4 + $0x178] sm:$0xff] }
  0x43   :  { %494 = vmatpush.msrb.mxu2 %v399_v59  ;;  %514 = vmatpush.msrb.mxu3 %v400_v60  ;;  %v624_v49 = vld [vmem:[%s4135_s4 + $0x1f8] sm:$0xff]  ;;  %v605_v59 = vld [vmem:[%s4135_s4 + $0x160] sm:$0xff] }
  0x44   :  { %457 = vmatpush.msrb.mxu0 %v425_v52  ;;  %477 = vmatpush.msrb.mxu1 %v426_v53  ;;  %v607_v52 = vld [vmem:[%s4135_s4 + $0x170] sm:$0xff]  ;;  %v621_v60 = vld [vmem:[%s4135_s4 + $0x1e0] sm:$0xff] }
  0x45   :  { %495 = vmatpush.msrb.mxu2 %v397_v3  ;;  %515 = vmatpush.msrb.mxu3 %v398_v4  ;;  %v604_v3 = vld [vmem:[%s4135_s4 + $0x158] sm:$0xff] }
  0x46   :  { %458 = vmatpush.msrb.mxu0 %v423_v57  ;;  %478 = vmatpush.msrb.mxu1 %v424_v58  ;;  %v573_v57 = vld [vmem:[%s4135_s4 + $0x60] sm:$0xff]  ;;  %v620_v4 = vld [vmem:[%s4135_s4 + $0x1d8] sm:$0xff] }
  0x47   :  { %496 = vmatpush.msrb.mxu2 %v395_v11  ;;  %516 = vmatpush.msrb.mxu3 %v396_v12  ;;  %v589_v58 = vld [vmem:[%s4135_s4 + $0xe0] sm:$0xff]  ;;  %v619_v11 = vld [vmem:[%s4135_s4 + $0x1d0] sm:$0xff] }
  0x48   :  { %459 = vmatpush.msrb.mxu0 %v421_v63  ;;  %479 = vmatpush.msrb.mxu1 %v422_v0  ;;  %v588_v63 = vld [vmem:[%s4135_s4 + $0xd8] sm:$0xff] }
  0x49   :  { %497 = vmatpush.msrb.mxu2 %v393_v15  ;;  %517 = vmatpush.msrb.mxu3 %v394_v16 }
  0x4a   :  { %460 = vmatpush.msrb.mxu0 %v419_v7  ;;  %480 = vmatpush.msrb.mxu1 %v420_v8  ;;  %v571_v7 = vld [vmem:[%s4135_s4 + $0x50] sm:$0xff] }
  0x4b   :  { %498 = vmatpush.msrb.mxu2 %v391_v23  ;;  %518 = vmatpush.msrb.mxu3 %v392_v24  ;;  %v587_v8 = vld [vmem:[%s4135_s4 + $0xd0] sm:$0xff]  ;;  %v585_v23 = vld [vmem:[%s4135_s4 + $0xc0] sm:$0xff] }
  0x4c   :  { %461 = vmatpush.msrb.mxu0 %v417_v13  ;;  %481 = vmatpush.msrb.mxu1 %v418_v14  ;;  %v570_v13 = vld [vmem:[%s4135_s4 + $0x48] sm:$0xff] }
  0x4d   :  { %499 = vmatpush.msrb.mxu2 %v389_v25  ;;  %519 = vmatpush.msrb.mxu3 %v390_v26  ;;  %v586_v14 = vld [vmem:[%s4135_s4 + $0xc8] sm:$0xff]  ;;  %v601_v26 = vld [vmem:[%s4135_s4 + $0x140] sm:$0xff] }
  0x4e   :  { %462 = vmatpush.msrb.mxu0 %v415_v19  ;;  %482 = vmatpush.msrb.mxu1 %v416_v20 }
  0x4f   :  { %500 = vmatpush.msrb.mxu2 %v387_v28  ;;  %520 = vmatpush.msrb.mxu3 %v388_v29  ;;  %v57_v29 = vld [vmem:[%s4133_s2] sm:$0xff]  ;;  %s2203_s2 = smov [#allocation8]  }
  0x50   :  { %821 = vmatpush.msra.mxu0 %v576_v43  ;;  %841 = vmatpush.msra.mxu1 %v592_v44  ;;  %v583_v43 = vld [vmem:[%s4135_s4 + $0xb0] sm:$0xff]  ;;  %s1978_s20 = sshll.u32 %s2203_s2, 4  ;;  %s1979_s20 = int_to_ptr.vmem [resolvable:$true] %s1978_s20 }
  0x51   :  { %501 = vmatpush.msrb.mxu2 %v385_v32  ;;  %521 = vmatpush.msrb.mxu3 %v386_v33  ;;  %v687_v33 = vld [vmem:[%s4135_s4 + $0x3f0] sm:$0xff] }
  0x52   :  { %822 = vmatpush.msra.mxu0 %v575_v45 }
  0x53   :  { %502 = vmatpush.msrb.mxu2 %v383_v35  ;;  %522 = vmatpush.msrb.mxu3 %v384_v36  ;;  %v600_v36 = vld [vmem:[%s4135_s4 + $0x138] sm:$0xff] }
  0x54   :  { %823 = vmatpush.msra.mxu0 %v574_v50 }
  0x55   :  { %865 = vmatpush.msra.mxu2 %v608_v48  ;;  %885 = vmatpush.msra.mxu3 %v624_v49  ;;  %v599_v48 = vld [vmem:[%s4135_s4 + $0x130] sm:$0xff] }
  0x56   :  { %824 = vmatpush.msra.mxu0 %v573_v57  ;;  %v615_v49 = vld [vmem:[%s4135_s4 + $0x1b0] sm:$0xff]  ;;  %v598_v57 = vld [vmem:[%s4135_s4 + $0x128] sm:$0xff] }
  0x57   :  { %866 = vmatpush.msra.mxu2 %v607_v52  ;;  %886 = vmatpush.msra.mxu3 %v623_v55 }
  0x59   :  { %887 = vmatpush.msra.mxu3 %v622_v56 }
  0x5b   :  { %888 = vmatpush.msra.mxu3 %v621_v60  ;;  %v581_v60 = vld [vmem:[%s4135_s4 + $0xa0] sm:$0xff] }
  0x5d   :  { %889 = vmatpush.msra.mxu3 %v620_v4 }
  0x5f   :  { %890 = vmatpush.msra.mxu3 %v619_v11  ;;  %v611_v11 = vld [vmem:[%s4135_s4 + $0x190] sm:$0xff] }
  0xa6   :  { %v2625_v46 = vpop.f32.mrf.mxu2  ;;  %v2627_v47 = vpop.f32.mrf.mxu3 }
  0xaa   :  { %v159_v61 = vpop.f32.mrf.mxu0  ;;  %v179_v62 = vpop.f32.mrf.mxu1 }
  0xae   :  { %v243_v5 = vpop.f32.mrf.mxu2  ;;  %v263_v6 = vpop.f32.mrf.mxu3 }
  0xaf   :  { %v244_v9 = vadd.f32 %v243_v5, %v159_v61  ;;  %v264_v10 = vadd.f32 %v263_v6, %v179_v62  ;;  %v572_v62 = vld [vmem:[%s4135_s4 + $0x58] sm:$0xff] }
  0xb0   :  { %825 = vmatpush.msra.mxu0 %v572_v62  ;;  %v597_v62 = vld [vmem:[%s4135_s4 + $0x120] sm:$0xff] }
  0xb1   :  { %v316_v17 = vadd.f32 %v308_v1, %v244_v9  ;;  %v317_v18 = vadd.f32 %v309_v2, %v264_v10  ;;  %v603_v10 = vld [vmem:[%s4135_s4 + $0x150] sm:$0xff] }
  0xb2   :  { %826 = vmatpush.msra.mxu0 %v571_v7  ;;  %v628_v7 = vld [vmem:[%s4135_s4 + $0x218] sm:$0xff] }
  0xb3   :  { %v2018_v21 = vmul.f32 -1.442695, %v316_v17  ;;  %v2019_v22 = vmul.f32 -1.442695, %v317_v18  ;;  %v602_v17 = vld [vmem:[%s4135_s4 + $0x148] sm:$0xff] }
  0xb4   :  { %v618_v18 = vld [vmem:[%s4135_s4 + $0x1c8] sm:$0xff]  ;;  %827 = vmatpush.msra.mxu0 %v570_v13 }
  0xb5   :  { %2042 = vpow2.f32 %v2018_v21  ;;  %891 = vmatpush.msra.mxu3 %v618_v18  ;;  %v562_v13 = vld [vmem:[%s4135_s4 + $0x8] sm:$0xff] }
  0xb6   :  { %2044 = vpow2.f32 %v2019_v22  ;;  %v303_v30 = vpop.f32.mrf.mxu3  ;;  %v283_v42 = vpop.f32.mrf.mxu2  ;;  %v569_v22 = vld [vmem:[%s4135_s4 + $0x40] sm:$0xff] }
  0xb7   :  { %v304_v31 = vadd.f32 %v303_v30, %v2627_v47  ;;  %v591_v47 = vld [vmem:[%s4135_s4 + $0xf0] sm:$0xff]  ;;  %v284_v53 = vadd.f32 %v283_v42, %v2625_v46  ;;  %v606_v46 = vld [vmem:[%s4135_s4 + $0x168] sm:$0xff]  ;;  %v568_v30 = vld [vmem:[%s4135_s4 + $0x38] sm:$0xff]  ;;  %828 = vmatpush.msra.mxu0 %v569_v22 }
  0xb8   :  { %842 = vmatpush.msra.mxu1 %v591_v47  ;;  %867 = vmatpush.msra.mxu2 %v606_v46  ;;  %v567_v42 = vld [vmem:[%s4135_s4 + $0x30] sm:$0xff]  ;;  %v640_v22 = vld [vmem:[%s4135_s4 + $0x278] sm:$0xff] }
  0xb9   :  { %v319_v34 = vadd.f32 %v311_v27, %v304_v31  ;;  %v318_v1 = vadd.f32 %v310_v54, %v284_v53  ;;  %v617_v27 = vld [vmem:[%s4135_s4 + $0x1c0] sm:$0xff]  ;;  %v584_v31 = vld [vmem:[%s4135_s4 + $0xb8] sm:$0xff]  ;;  %829 = vmatpush.msra.mxu0 %v568_v30  ;;  %v566_v53 = vld [vmem:[%s4135_s4 + $0x28] sm:$0xff] }
  0xba   :  { %843 = vmatpush.msra.mxu1 %v590_v51  ;;  %868 = vmatpush.msra.mxu2 %v605_v59  ;;  %v582_v54 = vld [vmem:[%s4135_s4 + $0xa8] sm:$0xff]  ;;  %v565_v59 = vld [vmem:[%s4135_s4 + $0x20] sm:$0xff] }
  0xbb   :  { %v2043_v37 = vpop.eup %2042  ;;  %v2020_v38 = vmul.f32 -1.442695, %v319_v34  ;;  %892 = vmatpush.msra.mxu3 %v617_v27  ;;  %830 = vmatpush.msra.mxu0 %v567_v42  ;;  %v655_v27 = vld [vmem:[%s4135_s4 + $0x2f0] sm:$0xff]  ;;  %v638_v30 = vld [vmem:[%s4135_s4 + $0x268] sm:$0xff] }
  0xbc   :  { %v2045_v39 = vpop.eup %2044  ;;  %v2746_v40 = vadd.f32 1.0, %v2043_v37  ;;  %844 = vmatpush.msra.mxu1 %v589_v58  ;;  %869 = vmatpush.msra.mxu2 %v604_v3  ;;  %v616_v37 = vld [vmem:[%s4135_s4 + $0x1b8] sm:$0xff]  ;;  %v614_v58 = vld [vmem:[%s4135_s4 + $0x1a8] sm:$0xff]  ;;  %v635_v42 = vld [vmem:[%s4135_s4 + $0x250] sm:$0xff] }
  0xbd   :  { %v2748_v41 = vadd.f32 1.0, %v2045_v39  ;;  %2046 = vpow2.f32 %v2020_v38  ;;  %893 = vmatpush.msra.mxu3 %v616_v37  ;;  %831 = vmatpush.msra.mxu0 %v566_v53  ;;  %v580_v3 = vld [vmem:[%s4135_s4 + $0x98] sm:$0xff]  ;;  %v686_v37 = vld [vmem:[%s4135_s4 + $0x3e8] sm:$0xff] }
  0xbe   :  { %2048 = vrcp.f32 %v2746_v40  ;;  %845 = vmatpush.msra.mxu1 %v588_v63  ;;  %v335_v16 = vand.u32 2147483648, %v2746_v40  ;;  %v333_v21 = vand.u32 2147483647, %v2746_v40  ;;  %870 = vmatpush.msra.mxu2 %v603_v10  ;;  %vm329_vm3 = vweird.f32 %v2746_v40  ;;  %v613_v63 = vld [vmem:[%s4135_s4 + $0x1a0] sm:$0xff]  ;;  %v595_v10 = vld [vmem:[%s4135_s4 + $0x110] sm:$0xff]  ;;  %v636_v38 = vld [vmem:[%s4135_s4 + $0x258] sm:$0xff] }
  0xbf   :  { %2050 = vrcp.f32 %v2748_v41  ;;  %v354_v19 = vand.u32 2147483648, %v2748_v41  ;;  %v352_v25 = vand.u32 2147483647, %v2748_v41  ;;  %vm348_vm4 = vweird.f32 %v2748_v41  ;;  %894 = vmatpush.msra.mxu3 %v615_v49  ;;  %832 = vmatpush.msra.mxu0 %v565_v59  ;;  %v667_v49 = vld [vmem:[%s4135_s4 + $0x350] sm:$0xff]  ;;  %v666_v53 = vld [vmem:[%s4135_s4 + $0x348] sm:$0xff] }
  0xc0   :  { %846 = vmatpush.msra.mxu1 %v587_v8  ;;  %871 = vmatpush.msra.mxu2 %v602_v17  ;;  %v336_v34 = vor.u32 1.1754944e-38, %v335_v16  ;;  %vm334_vm7 = vcmp.eq.f32.partialorder %v333_v21, 8.507059e+37  ;;  %v579_v8 = vld [vmem:[%s4135_s4 + $0x90] sm:$0xff]  ;;  %v610_v16 = vld [vmem:[%s4135_s4 + $0x188] sm:$0xff]  ;;  %v577_v21 = vld [vmem:[%s4135_s4 + $0x80] sm:$0xff] }
  0xc1   :  { %v355_v39 = vor.u32 1.1754944e-38, %v354_v19  ;;  %vm353_vm8 = vcmp.eq.f32.partialorder %v352_v25, 8.507059e+37  ;;  %895 = vmatpush.msra.mxu3 %v614_v58  ;;  %v609_v25 = vld [vmem:[%s4135_s4 + $0x180] sm:$0xff]  ;;  %v647_v59 = vld [vmem:[%s4135_s4 + $0x2b0] sm:$0xff] }
  0xc2   :  { %847 = vmatpush.msra.mxu1 %v586_v14  ;;  %872 = vmatpush.msra.mxu2 %v601_v26  ;;  %v578_v14 = vld [vmem:[%s4135_s4 + $0x88] sm:$0xff]  ;;  %v639_v26 = vld [vmem:[%s4135_s4 + $0x270] sm:$0xff]  ;;  %v665_v58 = vld [vmem:[%s4135_s4 + $0x340] sm:$0xff] }
  0xc3   :  { %v2047_v61 = vpop.eup %2046  ;;  %896 = vmatpush.msra.mxu3 %v613_v63  ;;  %v646_v63 = vld [vmem:[%s4135_s4 + $0x2a8] sm:$0xff] }
  0xc4   :  { %v2808_v0 = vpop.eup %2048  ;;  %v2810_v2 = vadd.f32 1.0, %v2047_v61  ;;  %848 = vmatpush.msra.mxu1 %v585_v23  ;;  %873 = vmatpush.msra.mxu2 %v600_v36  ;;  %v656_v23 = vld [vmem:[%s4135_s4 + $0x2f8] sm:$0xff]  ;;  %v670_v36 = vld [vmem:[%s4135_s4 + $0x368] sm:$0xff] }
  0xc5   :  { %v2818_v5 = vpop.eup %2050  ;;  %v325_v6 = vmul.f32 %v2808_v0, %v2746_v40  ;;  %vm330_vm1 = vweird.f32 %v2808_v0 }
  0xc6   :  { %v344_v9 = vmul.f32 %v2818_v5, %v2748_v41  ;;  %2052 = vrcp.f32 %v2810_v2  ;;  %vm349_vm2 = vweird.f32 %v2818_v5  ;;  %vm2885_vm5 = vmor %vm329_vm3, %vm330_vm1  ;;  %849 = vmatpush.msra.mxu1 %v584_v31  ;;  %874 = vmatpush.msra.mxu2 %v599_v48  ;;  %vm368_vm10 = vweird.f32 %v2810_v2  ;;  %v654_v31 = vld [vmem:[%s4135_s4 + $0x2e8] sm:$0xff] }
  0xc7   :  { %v326_v12 = vsub.f32 1.0, %v325_v6  ;;  %2054 = vtanh.f32 %v318_v1  ;;  %vm2898_vm6 = vmor %vm348_vm4, %vm349_vm2  ;;  %v564_v1 = vld [vmem:[%s4135_s4 + $0x18] sm:$0xff]  ;;  %v372_v4 = vand.u32 2147483647, %v2810_v2  ;;  %v650_v48 = vld [vmem:[%s4135_s4 + $0x2c8] sm:$0xff]  ;;  %vm558_vm1 = vcmask 1046528  }
  0xc8   :  { %v345_v15 = vsub.f32 1.0, %v344_v9  ;;  %850 = vmatpush.msra.mxu1 %v583_v43  ;;  %875 = vmatpush.msra.mxu2 %v598_v57  ;;  %v612_v6 = vld [vmem:[%s4135_s4 + $0x198] sm:$0xff]  ;;  %v651_v43 = vld [vmem:[%s4135_s4 + $0x2d0] sm:$0xff]  ;;  %vm546_vm2 = vcmask 1043459   ;;  %vm549_vm3 = vcmask 1044484   ;;  %vm552_vm4 = vcmask 1045509  }
  0xc9   :  { %v327_v20 = vmul.f32 %v2808_v0, %v326_v12  ;;  %833 = vmatpush.msra.mxu0 %v564_v1  ;;  %897 = vmatpush.msra.mxu3 %v612_v6  ;;  %vm373_vm12 = vcmp.eq.f32.partialorder %v372_v4, 8.507059e+37  ;;  %v648_v57 = vld [vmem:[%s4135_s4 + $0x2b8] sm:$0xff]  ;;  %v679_v1 = vld [vmem:[%s4135_s4 + $0x3b0] sm:$0xff]  ;;  %v645_v4 = vld [vmem:[%s4135_s4 + $0x2a0] sm:$0xff] }
  0xca   :  { %v346_v24 = vmul.f32 %v2818_v5, %v345_v15  ;;  %851 = vmatpush.msra.mxu1 %v582_v54  ;;  %876 = vmatpush.msra.mxu2 %v597_v62  ;;  %v594_v15 = vld [vmem:[%s4135_s4 + $0x108] sm:$0xff] }
  0xcb   :  { %v328_v28 = vadd.f32 %v2808_v0, %v327_v20  ;;  %898 = vmatpush.msra.mxu3 %v611_v11  ;;  %v561_v20 = vld [vmem:[%s4135_s4] sm:$0xff]  ;;  %v682_v54 = vld [vmem:[%s4135_s4 + $0x3c8] sm:$0xff]  ;;  %v643_v11 = vld [vmem:[%s4135_s4 + $0x290] sm:$0xff] }
  0xcc   :  { %v2880_v32 = vpop.eup %2052  ;;  %v347_v35 = vadd.f32 %v2818_v5, %v346_v24  ;;  %852 = vmatpush.msra.mxu1 %v581_v60  ;;  %v593_v24 = vld [vmem:[%s4135_s4 + $0x100] sm:$0xff]  ;;  %v664_v60 = vld [vmem:[%s4135_s4 + $0x338] sm:$0xff]  ;;  %v630_v62 = vld [vmem:[%s4135_s4 + $0x228] sm:$0xff] }
  0xcd   :  { %v332_v40 = vsel %vm2885_vm5, %v2808_v0, %v328_v28  ;;  %v364_v41 = vmul.f32 %v2880_v32, %v2810_v2  ;;  %v2055_v44 = vpop.eup %2054  ;;  %vm369_vm9 = vweird.f32 %v2880_v32  ;;  %v374_v0 = vand.u32 2147483648, %v2810_v2  ;;  %v563_v2 = vld [vmem:[%s4135_s4 + $0x10] sm:$0xff]  ;;  %899 = vmatpush.msra.mxu3 %v610_v16  ;;  %v672_v28 = vld [vmem:[%s4135_s4 + $0x378] sm:$0xff]  ;;  %v678_v6 = vld [vmem:[%s4135_s4 + $0x3a8] sm:$0xff] }
  0xce   :  { %v337_v45 = vsel %vm334_vm7, %v336_v34, %v332_v40  ;;  %v351_v47 = vsel %vm2898_vm6, %v2818_v5, %v347_v35  ;;  %v596_v5 = vld [vmem:[%s4135_s4 + $0x118] sm:$0xff]  ;;  %vm2966_vm11 = vmor %vm368_vm10, %vm369_vm9  ;;  %853 = vmatpush.msra.mxu1 %v580_v3  ;;  %834 = vmatpush.msra.mxu0 %v563_v2  ;;  %v637_v34 = vld [vmem:[%s4135_s4 + $0x260] sm:$0xff]  ;;  %vm1169_vm5 = vcmask 122880   ;;  %vm1290_vm6 = vcmask 130048  }
  0xcf   :  { %v379_v50 = vmul.f32 %v2055_v44, %v337_v45  ;;  %v365_v51 = vsub.f32 1.0, %v364_v41  ;;  %v356_v52 = vsel %vm353_vm8, %v355_v39, %v351_v47  ;;  %v375_v12 = vor.u32 1.1754944e-38, %v374_v0  ;;  %877 = vmatpush.msra.mxu2 %v596_v5  ;;  %900 = vmatpush.msra.mxu3 %v609_v25  ;;  %v653_v35 = vld [vmem:[%s4135_s4 + $0x2e0] sm:$0xff]  ;;  %v652_v39 = vld [vmem:[%s4135_s4 + $0x2d8] sm:$0xff]  ;;  %v634_v47 = vld [vmem:[%s4135_s4 + $0x248] sm:$0xff] }
  0xd0   :  { %v378_v55 = vmul.f32 %v356_v52, %v57_v29  ;;  %854 = vmatpush.msra.mxu1 %v579_v8  ;;  %835 = vmatpush.msra.mxu0 %v562_v13  ;;  %v688_v29 = vld [vmem:[%s4135_s4 + $0x3f8] sm:$0xff]  ;;  %v669_v40 = vld [vmem:[%s4135_s4 + $0x360] sm:$0xff]  ;;  %v663_v0 = vld [vmem:[%s4135_s4 + $0x330] sm:$0xff]  ;;  %vm1732_vm7 = vcmask 1047559  }
  0xd1   :  { %v366_v46 = vmul.f32 %v2880_v32, %v365_v51  ;;  %878 = vmatpush.msra.mxu2 %v595_v10  ;;  %v685_v41 = vld [vmem:[%s4135_s4 + $0x3e0] sm:$0xff]  ;;  %v668_v44 = vld [vmem:[%s4135_s4 + $0x358] sm:$0xff]  ;;  %v662_v5 = vld [vmem:[%s4135_s4 + $0x328] sm:$0xff] }
  0xd2   :  { %v380_v56 = vadd.f32 %v379_v50, %v378_v55  ;;  %855 = vmatpush.msra.mxu1 %v578_v14  ;;  %836 = vmatpush.msra.mxu0 %v561_v20  ;;  %v684_v45 = vld [vmem:[%s4135_s4 + $0x3d8] sm:$0xff]  ;;  %v683_v50 = vld [vmem:[%s4135_s4 + $0x3d0] sm:$0xff]  ;;  %v633_v51 = vld [vmem:[%s4135_s4 + $0x240] sm:$0xff] }
  0xd3   :  { %v367_v61 = vadd.f32 %v2880_v32, %v366_v46  ;;  %879 = vmatpush.msra.mxu2 %v594_v15  ;;  %v649_v52 = vld [vmem:[%s4135_s4 + $0x2c0] sm:$0xff]  ;;  %v632_v55 = vld [vmem:[%s4135_s4 + $0x238] sm:$0xff]  ;;  %v627_v10 = vld [vmem:[%s4135_s4 + $0x210] sm:$0xff] }
  0xd4   :  { %463 = vmatmul.f32.vlgmr.msrb.gmra.mxu0 %v380_v56  ;;  %1950 = vst [vmem:[#allocation9] sm:$0xff] %v380_v56  ;;  %483 = vmatmul.f32.vlgmr.msrb.gmra.mxu1 %v380_v56  ;;  %2056 = vtanh.f32 %v380_v56  ;;  %v681_v46 = vld [vmem:[%s4135_s4 + $0x3c0] sm:$0xff]  ;;  %v631_v56 = vld [vmem:[%s4135_s4 + $0x230] sm:$0xff]  ;;  %v644_v2 = vld [vmem:[%s4135_s4 + $0x298] sm:$0xff] }
  0xd5   :  { %v371_v9 = vsel %vm2966_vm11, %v2880_v32, %v367_v61  ;;  %856 = vmatpush.msra.mxu1 %v577_v21  ;;  %909 = vmatpush.msrb.mxu0 %v640_v22  ;;  %v671_v32 = vld [vmem:[%s4135_s4 + $0x370] sm:$0xff]  ;;  %v680_v61 = vld [vmem:[%s4135_s4 + $0x3b8] sm:$0xff]  ;;  %v629_v3 = vld [vmem:[%s4135_s4 + $0x220] sm:$0xff] }
  0xd6   :  { %v376_v18 = vsel %vm373_vm12, %v375_v12, %v371_v9  ;;  %880 = vmatpush.msra.mxu2 %v593_v24  ;;  %v661_v8 = vld [vmem:[%s4135_s4 + $0x320] sm:$0xff]  ;;  %v660_v12 = vld [vmem:[%s4135_s4 + $0x318] sm:$0xff]  ;;  %v626_v14 = vld [vmem:[%s4135_s4 + $0x208] sm:$0xff] }
  0xd7   :  { %929 = vmatpush.msrb.mxu1 %v656_v23  ;;  %910 = vmatpush.msrb.mxu0 %v639_v26  ;;  %v677_v9 = vld [vmem:[%s4135_s4 + $0x3a0] sm:$0xff]  ;;  %v676_v13 = vld [vmem:[%s4135_s4 + $0x398] sm:$0xff]  ;;  %v642_v15 = vld [vmem:[%s4135_s4 + $0x288] sm:$0xff] }
  0xd8   :  { %v659_v16 = vld [vmem:[%s4135_s4 + $0x310] sm:$0xff]  ;;  %v658_v20 = vld [vmem:[%s4135_s4 + $0x308] sm:$0xff]  ;;  %v657_v22 = vld [vmem:[%s4135_s4 + $0x300] sm:$0xff] }
  0xd9   :  { %930 = vmatpush.msrb.mxu1 %v655_v27  ;;  %911 = vmatpush.msrb.mxu0 %v638_v30  ;;  %v674_v21 = vld [vmem:[%s4135_s4 + $0x388] sm:$0xff]  ;;  %v673_v23 = vld [vmem:[%s4135_s4 + $0x380] sm:$0xff] }
  0xda   :  { %v2057_v17 = vpop.eup %2056  ;;  %v527_v24 = vld [vmem:[%s4139_s8] sm:$0x3] }
  0xdb   :  { %v382_v19 = vmul.f32 %v2057_v17, %v376_v18  ;;  %931 = vmatpush.msrb.mxu1 %v654_v31  ;;  %912 = vmatpush.msrb.mxu0 %v637_v34  ;;  %v675_v17 = vld [vmem:[%s4135_s4 + $0x390] sm:$0xff]  ;;  %v625_v18 = vld [vmem:[%s4135_s4 + $0x200] sm:$0xff]  ;;  %v530_v27 = vperm.slane %v527_v24, 1  ;;  %v529_v31 = vperm.slane %v527_v24, 0 }
  0xdc   :  { %v711_v24 = vld [vmem:[%s4135_s4 + $0x4b0] sm:$0xff] }
  0xdd   :  { %503 = vmatmul.f32.vlgmr.msrb.gmra.mxu2 %v382_v19  ;;  %1948 = vst [vmem:[#allocation8] sm:$0xff] %v382_v19  ;;  %523 = vmatmul.f32.vlgmr.msrb.gmra.mxu3 %v382_v19  ;;  %v641_v19 = vld [vmem:[%s4135_s4 + $0x280] sm:$0xff] }
  0xde   :  { %953 = vmatpush.msrb.mxu2 %v672_v28  ;;  %973 = vmatpush.msrb.mxu3 %v688_v29 }
  0xdf   :  { %932 = vmatpush.msrb.mxu1 %v653_v35  ;;  %913 = vmatpush.msrb.mxu0 %v636_v38 }
  0xe0   :  { %954 = vmatpush.msrb.mxu2 %v671_v32  ;;  %974 = vmatpush.msrb.mxu3 %v687_v33 }
  0xe1   :  { %933 = vmatpush.msrb.mxu1 %v652_v39  ;;  %914 = vmatpush.msrb.mxu0 %v635_v42 }
  0xe2   :  { %955 = vmatpush.msrb.mxu2 %v670_v36  ;;  %975 = vmatpush.msrb.mxu3 %v686_v37 }
  0xe3   :  { %934 = vmatpush.msrb.mxu1 %v651_v43  ;;  %915 = vmatpush.msrb.mxu0 %v634_v47  ;;  %v703_v47 = vld [vmem:[%s4135_s4 + $0x470] sm:$0xff] }
  0xe4   :  { %956 = vmatpush.msrb.mxu2 %v669_v40  ;;  %976 = vmatpush.msrb.mxu3 %v685_v41  ;;  %v704_v40 = vld [vmem:[%s4135_s4 + $0x478] sm:$0xff] }
  0xe5   :  { %935 = vmatpush.msrb.mxu1 %v650_v48  ;;  %916 = vmatpush.msrb.mxu0 %v633_v51  ;;  %v720_v41 = vld [vmem:[%s4135_s4 + $0x4f8] sm:$0xff]  ;;  %v719_v48 = vld [vmem:[%s4135_s4 + $0x4f0] sm:$0xff] }
  0xe6   :  { %957 = vmatpush.msrb.mxu2 %v668_v44  ;;  %977 = vmatpush.msrb.mxu3 %v684_v45  ;;  %v752_v51 = vld [vmem:[%s4135_s4 + $0x5f8] sm:$0xff] }
  0xe7   :  { %936 = vmatpush.msrb.mxu1 %v649_v52  ;;  %917 = vmatpush.msrb.mxu0 %v632_v55  ;;  %v735_v55 = vld [vmem:[%s4135_s4 + $0x570] sm:$0xff] }
  0xe8   :  { %958 = vmatpush.msrb.mxu2 %v667_v49  ;;  %978 = vmatpush.msrb.mxu3 %v683_v50  ;;  %v736_v50 = vld [vmem:[%s4135_s4 + $0x578] sm:$0xff] }
  0xe9   :  { %937 = vmatpush.msrb.mxu1 %v648_v57  ;;  %918 = vmatpush.msrb.mxu0 %v631_v56  ;;  %v751_v57 = vld [vmem:[%s4135_s4 + $0x5f0] sm:$0xff]  ;;  %v701_v56 = vld [vmem:[%s4135_s4 + $0x460] sm:$0xff] }
  0xea   :  { %959 = vmatpush.msrb.mxu2 %v666_v53  ;;  %979 = vmatpush.msrb.mxu3 %v682_v54  ;;  %v702_v53 = vld [vmem:[%s4135_s4 + $0x468] sm:$0xff] }
  0xeb   :  { %938 = vmatpush.msrb.mxu1 %v647_v59  ;;  %919 = vmatpush.msrb.mxu0 %v630_v62  ;;  %v718_v54 = vld [vmem:[%s4135_s4 + $0x4e8] sm:$0xff]  ;;  %v717_v59 = vld [vmem:[%s4135_s4 + $0x4e0] sm:$0xff] }
  0xec   :  { %960 = vmatpush.msrb.mxu2 %v665_v58  ;;  %980 = vmatpush.msrb.mxu3 %v681_v46 }
  0xed   :  { %939 = vmatpush.msrb.mxu1 %v646_v63  ;;  %920 = vmatpush.msrb.mxu0 %v629_v3  ;;  %v716_v3 = vld [vmem:[%s4135_s4 + $0x4d8] sm:$0xff] }
  0xee   :  { %961 = vmatpush.msrb.mxu2 %v664_v60  ;;  %981 = vmatpush.msrb.mxu3 %v680_v61  ;;  %v734_v60 = vld [vmem:[%s4135_s4 + $0x568] sm:$0xff] }
  0xef   :  { %940 = vmatpush.msrb.mxu1 %v645_v4  ;;  %921 = vmatpush.msrb.mxu0 %v628_v7  ;;  %v750_v61 = vld [vmem:[%s4135_s4 + $0x5e8] sm:$0xff]  ;;  %v733_v4 = vld [vmem:[%s4135_s4 + $0x560] sm:$0xff] }
  0xf0   :  { %962 = vmatpush.msrb.mxu2 %v663_v0  ;;  %982 = vmatpush.msrb.mxu3 %v679_v1  ;;  %v700_v1 = vld [vmem:[%s4135_s4 + $0x458] sm:$0xff] }
  0xf1   :  { %941 = vmatpush.msrb.mxu1 %v644_v2  ;;  %922 = vmatpush.msrb.mxu0 %v627_v10  ;;  %v699_v2 = vld [vmem:[%s4135_s4 + $0x450] sm:$0xff]  ;;  %v748_v10 = vld [vmem:[%s4135_s4 + $0x5d8] sm:$0xff] }
  0xf2   :  { %963 = vmatpush.msrb.mxu2 %v662_v5  ;;  %983 = vmatpush.msrb.mxu3 %v678_v6  ;;  %v749_v5 = vld [vmem:[%s4135_s4 + $0x5e0] sm:$0xff] }
  0xf3   :  { %942 = vmatpush.msrb.mxu1 %v643_v11  ;;  %923 = vmatpush.msrb.mxu0 %v626_v14  ;;  %v698_v11 = vld [vmem:[%s4135_s4 + $0x448] sm:$0xff]  ;;  %v747_v14 = vld [vmem:[%s4135_s4 + $0x5d0] sm:$0xff] }
  0xf4   :  { %964 = vmatpush.msrb.mxu2 %v661_v8  ;;  %984 = vmatpush.msrb.mxu3 %v677_v9  ;;  %v715_v8 = vld [vmem:[%s4135_s4 + $0x4d0] sm:$0xff]  ;;  %v732_v9 = vld [vmem:[%s4135_s4 + $0x558] sm:$0xff] }
  0xf5   :  { %943 = vmatpush.msrb.mxu1 %v642_v15  ;;  %924 = vmatpush.msrb.mxu0 %v625_v18  ;;  %v697_v15 = vld [vmem:[%s4135_s4 + $0x440] sm:$0xff]  ;;  %v746_v18 = vld [vmem:[%s4135_s4 + $0x5c8] sm:$0xff] }
  0xf6   :  { %965 = vmatpush.msrb.mxu2 %v660_v12  ;;  %985 = vmatpush.msrb.mxu3 %v676_v13  ;;  %v714_v12 = vld [vmem:[%s4135_s4 + $0x4c8] sm:$0xff]  ;;  %v731_v13 = vld [vmem:[%s4135_s4 + $0x550] sm:$0xff] }
  0xf7   :  { %944 = vmatpush.msrb.mxu1 %v641_v19  ;;  %v696_v19 = vld [vmem:[%s4135_s4 + $0x438] sm:$0xff] }
  0xf8   :  { %966 = vmatpush.msrb.mxu2 %v659_v16  ;;  %986 = vmatpush.msrb.mxu3 %v675_v17  ;;  %v713_v16 = vld [vmem:[%s4135_s4 + $0x4c0] sm:$0xff]  ;;  %v730_v17 = vld [vmem:[%s4135_s4 + $0x548] sm:$0xff] }
  0xfa   :  { %967 = vmatpush.msrb.mxu2 %v658_v20  ;;  %987 = vmatpush.msrb.mxu3 %v674_v21  ;;  %v712_v20 = vld [vmem:[%s4135_s4 + $0x4b8] sm:$0xff]  ;;  %v729_v21 = vld [vmem:[%s4135_s4 + $0x540] sm:$0xff] }
  0xfc   :  { %968 = vmatpush.msrb.mxu2 %v657_v22  ;;  %988 = vmatpush.msrb.mxu3 %v673_v23  ;;  %v745_v22 = vld [vmem:[%s4135_s4 + $0x5c0] sm:$0xff]  ;;  %v695_v23 = vld [vmem:[%s4135_s4 + $0x430] sm:$0xff] }
 0x151   :  { %v464_v25 = vpop.f32.mrf.mxu0  ;;  %v484_v26 = vpop.f32.mrf.mxu1 }
 0x160   :  { %v504_v28 = vpop.f32.mrf.mxu2  ;;  %v524_v29 = vpop.f32.mrf.mxu3 }
 0x161   :  { %v505_v30 = vadd.f32 %v504_v28, %v464_v25  ;;  %v525_v32 = vadd.f32 %v524_v29, %v484_v26  ;;  %v728_v25 = vld [vmem:[%s4135_s4 + $0x538] sm:$0xff]  ;;  %v710_v28 = vld [vmem:[%s4135_s4 + $0x4a8] sm:$0xff]  ;;  %v727_v29 = vld [vmem:[%s4135_s4 + $0x530] sm:$0xff] }
 0x162   :  { %v744_v26 = vld [vmem:[%s4135_s4 + $0x5b8] sm:$0xff] }
 0x163   :  { %v534_v33 = vadd.f32 %v530_v27, %v525_v32  ;;  %v3204_v34 = vadd.f32 %v529_v31, %v505_v30  ;;  %v694_v27 = vld [vmem:[%s4135_s4 + $0x428] sm:$0xff]  ;;  %v743_v30 = vld [vmem:[%s4135_s4 + $0x5b0] sm:$0xff]  ;;  %v693_v31 = vld [vmem:[%s4135_s4 + $0x420] sm:$0xff] }
 0x164   :  { %v709_v32 = vld [vmem:[%s4135_s4 + $0x4a0] sm:$0xff] }
 0x165   :  { %v3206_v35 = vrot.slane %v534_v33, 7  ;;  %v726_v33 = vld [vmem:[%s4135_s4 + $0x528] sm:$0xff] }
 0x167   :  { %v539_v36 = vsel %vm538_vm13, %v3204_v34, %v3206_v35  ;;  %v541_v37 = vsel %vm540_vm14, %v3204_v34, %v3206_v35  ;;  %v3222_v43 = vsel %vm555_vm15, %v3204_v34, %v3206_v35  ;;  %v544_v49 = vsel %vm543_vm0, %v3204_v34, %v3206_v35 }
 0x168   :  { %v817_v38 = vperm.slane %v539_v36, 0  ;;  %v818_v39 = vperm.slane %v539_v36, 1  ;;  %v542_v42 = vrot.slane %v541_v37, 1  ;;  %v3241_v52 = vsel %vm558_vm1, %v3206_v35, %v3204_v34  ;;  %v742_v36 = vld [vmem:[%s4135_s4 + $0x5a8] sm:$0xff]  ;;  %v692_v37 = vld [vmem:[%s4135_s4 + $0x418] sm:$0xff] }
 0x169   :  { %v545_v58 = vrot.slane %v544_v49, 2  ;;  %v547_v46 = vsel %vm546_vm2, %v3204_v34, %v3206_v35  ;;  %v706_v49 = vld [vmem:[%s4135_s4 + $0x488] sm:$0xff] }
 0x16a   :  { %837 = vmatmul.f32.vlgmr.msra.gmra.mxu0 %v817_v38  ;;  %857 = vmatmul.f32.vlgmr.msra.gmra.mxu1 %v818_v39  ;;  %v861_v44 = vperm.slane %v542_v42, 0  ;;  %v862_v45 = vperm.slane %v542_v42, 1  ;;  %v548_v62 = vrot.slane %v547_v46, 3  ;;  %v708_v38 = vld [vmem:[%s4135_s4 + $0x498] sm:$0xff]  ;;  %v725_v39 = vld [vmem:[%s4135_s4 + $0x520] sm:$0xff]  ;;  %v707_v42 = vld [vmem:[%s4135_s4 + $0x490] sm:$0xff] }
 0x16b   :  { %997 = vmatpush.msra.mxu0 %v704_v40  ;;  %1017 = vmatpush.msra.mxu1 %v720_v41  ;;  %v905_v63 = vperm.slane %v545_v58, 0  ;;  %v906_v0 = vperm.slane %v545_v58, 1  ;;  %v741_v40 = vld [vmem:[%s4135_s4 + $0x5a0] sm:$0xff]  ;;  %v691_v41 = vld [vmem:[%s4135_s4 + $0x410] sm:$0xff]  ;;  %v722_v58 = vld [vmem:[%s4135_s4 + $0x508] sm:$0xff] }
 0x16c   :  { %881 = vmatmul.f32.vlgmr.msra.gmra.mxu2 %v861_v44  ;;  %901 = vmatmul.f32.vlgmr.msra.gmra.mxu3 %v862_v45  ;;  %v949_v6 = vperm.slane %v548_v62, 0  ;;  %v950_v7 = vperm.slane %v548_v62, 1  ;;  %v550_v44 = vsel %vm549_vm3, %v3204_v34, %v3206_v35  ;;  %v724_v45 = vld [vmem:[%s4135_s4 + $0x518] sm:$0xff]  ;;  %v737_v62 = vld [vmem:[%s4135_s4 + $0x580] sm:$0xff] }
 0x16d   :  { %998 = vmatpush.msra.mxu0 %v703_v47  ;;  %1018 = vmatpush.msra.mxu1 %v719_v48  ;;  %v740_v47 = vld [vmem:[%s4135_s4 + $0x598] sm:$0xff]  ;;  %v690_v48 = vld [vmem:[%s4135_s4 + $0x408] sm:$0xff] }
 0x16e   :  { %1041 = vmatpush.msra.mxu2 %v736_v50  ;;  %1061 = vmatpush.msra.mxu3 %v752_v51  ;;  %v723_v50 = vld [vmem:[%s4135_s4 + $0x510] sm:$0xff] }
 0x16f   :  { %999 = vmatpush.msra.mxu0 %v702_v53  ;;  %1019 = vmatpush.msra.mxu1 %v718_v54  ;;  %v739_v51 = vld [vmem:[%s4135_s4 + $0x590] sm:$0xff]  ;;  %v551_v53 = vrot.slane %v550_v44, 4  ;;  %v553_v54 = vsel %vm552_vm4, %v3204_v34, %v3206_v35  ;;  %v738_v34 = vld [vmem:[%s4135_s4 + $0x588] sm:$0xff]  ;;  %v757_v44 = vld [vmem:[%s4135_s4 + $0x620] sm:$0xff] }
 0x170   :  { %1042 = vmatpush.msra.mxu2 %v735_v55  ;;  %1062 = vmatpush.msra.mxu3 %v751_v57  ;;  %v689_v55 = vld [vmem:[%s4135_s4 + $0x400] sm:$0xff]  ;;  %v554_v35 = vrot.slane %v553_v54, 5  ;;  %v755_v54 = vld [vmem:[%s4135_s4 + $0x610] sm:$0xff] }
 0x171   :  { %1000 = vmatpush.msra.mxu0 %v701_v56  ;;  %1020 = vmatpush.msra.mxu1 %v717_v59  ;;  %v705_v57 = vld [vmem:[%s4135_s4 + $0x480] sm:$0xff]  ;;  %v993_v46 = vperm.slane %v551_v53, 0  ;;  %v994_v56 = vperm.slane %v551_v53, 1  ;;  %v768_v59 = vld [vmem:[%s4135_s4 + $0x678] sm:$0xff] }
 0x172   :  { %1043 = vmatpush.msra.mxu2 %v734_v60  ;;  %1063 = vmatpush.msra.mxu3 %v750_v61  ;;  %v784_v60 = vld [vmem:[%s4135_s4 + $0x6f8] sm:$0xff]  ;;  %v721_v61 = vld [vmem:[%s4135_s4 + $0x500] sm:$0xff] }
 0x173   :  { %925 = vmatmul.f32.vlgmr.msrb.gmra.mxu0 %v905_v63  ;;  %945 = vmatmul.f32.vlgmr.msrb.gmra.mxu1 %v906_v0  ;;  %v1037_v63 = vperm.slane %v554_v35, 0  ;;  %v1038_v0 = vperm.slane %v554_v35, 1  ;;  %v805_v53 = vld [vmem:[%s4135_s4 + $0x7a0] sm:$0xff]  ;;  %v770_v35 = vld [vmem:[%s4135_s4 + $0x688] sm:$0xff] }
 0x174   :  { %1001 = vmatpush.msra.mxu0 %v700_v1  ;;  %1021 = vmatpush.msra.mxu1 %v716_v3  ;;  %v767_v1 = vld [vmem:[%s4135_s4 + $0x670] sm:$0xff] }
 0x175   :  { %1044 = vmatpush.msra.mxu2 %v733_v4  ;;  %1064 = vmatpush.msra.mxu3 %v749_v5  ;;  %v783_v3 = vld [vmem:[%s4135_s4 + $0x6f0] sm:$0xff]  ;;  %v800_v4 = vld [vmem:[%s4135_s4 + $0x778] sm:$0xff] }
 0x176   :  { %969 = vmatmul.f32.vlgmr.msrb.gmra.mxu2 %v949_v6  ;;  %989 = vmatmul.f32.vlgmr.msrb.gmra.mxu3 %v950_v7  ;;  %v816_v5 = vld [vmem:[%s4135_s4 + $0x7f8] sm:$0xff]  ;;  %v766_v6 = vld [vmem:[%s4135_s4 + $0x668] sm:$0xff] }
 0x177   :  { %1002 = vmatpush.msra.mxu0 %v699_v2  ;;  %1022 = vmatpush.msra.mxu1 %v715_v8  ;;  %v782_v7 = vld [vmem:[%s4135_s4 + $0x6e8] sm:$0xff]  ;;  %v799_v2 = vld [vmem:[%s4135_s4 + $0x770] sm:$0xff] }
 0x178   :  { %1045 = vmatpush.msra.mxu2 %v732_v9  ;;  %1065 = vmatpush.msra.mxu3 %v748_v10  ;;  %v815_v8 = vld [vmem:[%s4135_s4 + $0x7f0] sm:$0xff]  ;;  %v765_v9 = vld [vmem:[%s4135_s4 + $0x660] sm:$0xff] }
 0x179   :  { %1003 = vmatpush.msra.mxu0 %v698_v11  ;;  %1023 = vmatpush.msra.mxu1 %v714_v12  ;;  %v781_v10 = vld [vmem:[%s4135_s4 + $0x6e0] sm:$0xff]  ;;  %v798_v11 = vld [vmem:[%s4135_s4 + $0x768] sm:$0xff] }
 0x17a   :  { %1046 = vmatpush.msra.mxu2 %v731_v13  ;;  %1066 = vmatpush.msra.mxu3 %v747_v14  ;;  %v814_v12 = vld [vmem:[%s4135_s4 + $0x7e8] sm:$0xff]  ;;  %v764_v13 = vld [vmem:[%s4135_s4 + $0x658] sm:$0xff] }
 0x17b   :  { %1004 = vmatpush.msra.mxu0 %v697_v15  ;;  %1024 = vmatpush.msra.mxu1 %v713_v16  ;;  %v780_v14 = vld [vmem:[%s4135_s4 + $0x6d8] sm:$0xff]  ;;  %v797_v15 = vld [vmem:[%s4135_s4 + $0x760] sm:$0xff] }
 0x17c   :  { %1047 = vmatpush.msra.mxu2 %v730_v17  ;;  %1067 = vmatpush.msra.mxu3 %v746_v18  ;;  %v813_v16 = vld [vmem:[%s4135_s4 + $0x7e0] sm:$0xff]  ;;  %v763_v17 = vld [vmem:[%s4135_s4 + $0x650] sm:$0xff] }
 0x17d   :  { %1005 = vmatpush.msra.mxu0 %v696_v19  ;;  %1025 = vmatpush.msra.mxu1 %v712_v20  ;;  %v779_v18 = vld [vmem:[%s4135_s4 + $0x6d0] sm:$0xff]  ;;  %v796_v19 = vld [vmem:[%s4135_s4 + $0x758] sm:$0xff] }
 0x17e   :  { %1048 = vmatpush.msra.mxu2 %v729_v21  ;;  %1068 = vmatpush.msra.mxu3 %v745_v22  ;;  %v812_v20 = vld [vmem:[%s4135_s4 + $0x7d8] sm:$0xff]  ;;  %v762_v21 = vld [vmem:[%s4135_s4 + $0x648] sm:$0xff] }
 0x17f   :  { %1006 = vmatpush.msra.mxu0 %v695_v23  ;;  %1026 = vmatpush.msra.mxu1 %v711_v24  ;;  %v778_v22 = vld [vmem:[%s4135_s4 + $0x6c8] sm:$0xff]  ;;  %v795_v23 = vld [vmem:[%s4135_s4 + $0x750] sm:$0xff] }
 0x180   :  { %1049 = vmatpush.msra.mxu2 %v728_v25  ;;  %1069 = vmatpush.msra.mxu3 %v744_v26  ;;  %v811_v24 = vld [vmem:[%s4135_s4 + $0x7d0] sm:$0xff]  ;;  %v761_v25 = vld [vmem:[%s4135_s4 + $0x640] sm:$0xff] }
 0x181   :  { %1007 = vmatpush.msra.mxu0 %v694_v27  ;;  %1027 = vmatpush.msra.mxu1 %v710_v28  ;;  %v777_v26 = vld [vmem:[%s4135_s4 + $0x6c0] sm:$0xff]  ;;  %v794_v27 = vld [vmem:[%s4135_s4 + $0x748] sm:$0xff] }
 0x182   :  { %1050 = vmatpush.msra.mxu2 %v727_v29  ;;  %1070 = vmatpush.msra.mxu3 %v743_v30  ;;  %v810_v28 = vld [vmem:[%s4135_s4 + $0x7c8] sm:$0xff]  ;;  %v760_v29 = vld [vmem:[%s4135_s4 + $0x638] sm:$0xff] }
 0x183   :  { %1008 = vmatpush.msra.mxu0 %v693_v31  ;;  %1028 = vmatpush.msra.mxu1 %v709_v32  ;;  %v776_v30 = vld [vmem:[%s4135_s4 + $0x6b8] sm:$0xff]  ;;  %v793_v31 = vld [vmem:[%s4135_s4 + $0x740] sm:$0xff] }
 0x184   :  { %1051 = vmatpush.msra.mxu2 %v726_v33  ;;  %1071 = vmatpush.msra.mxu3 %v742_v36  ;;  %v809_v32 = vld [vmem:[%s4135_s4 + $0x7c0] sm:$0xff]  ;;  %v759_v33 = vld [vmem:[%s4135_s4 + $0x630] sm:$0xff] }
 0x185   :  { %1009 = vmatpush.msra.mxu0 %v692_v37  ;;  %1029 = vmatpush.msra.mxu1 %v708_v38  ;;  %v775_v36 = vld [vmem:[%s4135_s4 + $0x6b0] sm:$0xff]  ;;  %v792_v37 = vld [vmem:[%s4135_s4 + $0x738] sm:$0xff] }
 0x186   :  { %1052 = vmatpush.msra.mxu2 %v725_v39  ;;  %1072 = vmatpush.msra.mxu3 %v741_v40  ;;  %v808_v38 = vld [vmem:[%s4135_s4 + $0x7b8] sm:$0xff]  ;;  %v758_v39 = vld [vmem:[%s4135_s4 + $0x628] sm:$0xff] }
 0x187   :  { %1010 = vmatpush.msra.mxu0 %v691_v41  ;;  %1030 = vmatpush.msra.mxu1 %v707_v42  ;;  %v774_v40 = vld [vmem:[%s4135_s4 + $0x6a8] sm:$0xff]  ;;  %v791_v41 = vld [vmem:[%s4135_s4 + $0x730] sm:$0xff] }
 0x188   :  { %1053 = vmatpush.msra.mxu2 %v724_v45  ;;  %1073 = vmatpush.msra.mxu3 %v740_v47  ;;  %v807_v42 = vld [vmem:[%s4135_s4 + $0x7b0] sm:$0xff]  ;;  %v773_v45 = vld [vmem:[%s4135_s4 + $0x6a0] sm:$0xff]  ;;  %v790_v47 = vld [vmem:[%s4135_s4 + $0x728] sm:$0xff] }
 0x189   :  { %1011 = vmatpush.msra.mxu0 %v690_v48  ;;  %1031 = vmatpush.msra.mxu1 %v706_v49  ;;  %v806_v48 = vld [vmem:[%s4135_s4 + $0x7a8] sm:$0xff]  ;;  %v756_v49 = vld [vmem:[%s4135_s4 + $0x618] sm:$0xff] }
 0x18a   :  { %1054 = vmatpush.msra.mxu2 %v723_v50  ;;  %1074 = vmatpush.msra.mxu3 %v739_v51  ;;  %v772_v50 = vld [vmem:[%s4135_s4 + $0x698] sm:$0xff]  ;;  %v789_v51 = vld [vmem:[%s4135_s4 + $0x720] sm:$0xff] }
 0x18b   :  { %1012 = vmatpush.msra.mxu0 %v689_v55  ;;  %1032 = vmatpush.msra.mxu1 %v705_v57  ;;  %v771_v55 = vld [vmem:[%s4135_s4 + $0x690] sm:$0xff]  ;;  %v788_v57 = vld [vmem:[%s4135_s4 + $0x718] sm:$0xff] }
 0x18c   :  { %1055 = vmatpush.msra.mxu2 %v722_v58  ;;  %1075 = vmatpush.msra.mxu3 %v738_v34  ;;  %v804_v58 = vld [vmem:[%s4135_s4 + $0x798] sm:$0xff]  ;;  %v754_v34 = vld [vmem:[%s4135_s4 + $0x608] sm:$0xff] }
 0x18d   :  { %1013 = vmatmul.f32.vlgmr.msra.gmra.mxu0 %v993_v46  ;;  %1033 = vmatmul.f32.vlgmr.msra.gmra.mxu1 %v994_v56  ;;  %v787_v46 = vld [vmem:[%s4135_s4 + $0x710] sm:$0xff] }
 0x18e   :  { %1085 = vmatpush.msrb.mxu0 %v768_v59  ;;  %1105 = vmatpush.msrb.mxu1 %v784_v60  ;;  %v803_v56 = vld [vmem:[%s4135_s4 + $0x790] sm:$0xff]  ;;  %v557_v59 = vrot.slane %v3222_v43, 6  ;;  %v753_v60 = vld [vmem:[%s4135_s4 + $0x600] sm:$0xff]  ;;  %v802_v43 = vld [vmem:[%s4135_s4 + $0x788] sm:$0xff] }
 0x18f   :  { %1056 = vmatpush.msra.mxu2 %v721_v61  ;;  %1076 = vmatpush.msra.mxu3 %v737_v62  ;;  %v769_v61 = vld [vmem:[%s4135_s4 + $0x680] sm:$0xff]  ;;  %v786_v62 = vld [vmem:[%s4135_s4 + $0x708] sm:$0xff] }
 0x190   :  { %1057 = vmatmul.f32.vlgmr.msra.gmra.mxu2 %v1037_v63  ;;  %1077 = vmatmul.f32.vlgmr.msra.gmra.mxu3 %v1038_v0  ;;  %v560_v63 = vrot.slane %v3241_v52, 7  ;;  %v1081_v0 = vperm.slane %v557_v59, 0 }
 0x191   :  { %1086 = vmatpush.msrb.mxu0 %v767_v1  ;;  %1106 = vmatpush.msrb.mxu1 %v783_v3  ;;  %v1082_v1 = vperm.slane %v557_v59, 1  ;;  %v785_v3 = vld [vmem:[%s4135_s4 + $0x700] sm:$0xff] }
 0x192   :  { %1129 = vmatpush.msrb.mxu2 %v800_v4  ;;  %1149 = vmatpush.msrb.mxu3 %v816_v5  ;;  %v801_v4 = vld [vmem:[%s4135_s4 + $0x780] sm:$0xff]  ;;  %v1125_v5 = vperm.slane %v560_v63, 0  ;;  %v1126_v52 = vperm.slane %v560_v63, 1 }
 0x193   :  { %1087 = vmatpush.msrb.mxu0 %v766_v6  ;;  %1107 = vmatpush.msrb.mxu1 %v782_v7 }
 0x194   :  { %1130 = vmatpush.msrb.mxu2 %v799_v2  ;;  %1150 = vmatpush.msrb.mxu3 %v815_v8 }
 0x195   :  { %1088 = vmatpush.msrb.mxu0 %v765_v9  ;;  %1108 = vmatpush.msrb.mxu1 %v781_v10 }
 0x196   :  { %1131 = vmatpush.msrb.mxu2 %v798_v11  ;;  %1151 = vmatpush.msrb.mxu3 %v814_v12 }
 0x197   :  { %1089 = vmatpush.msrb.mxu0 %v764_v13  ;;  %1109 = vmatpush.msrb.mxu1 %v780_v14 }
 0x198   :  { %1132 = vmatpush.msrb.mxu2 %v797_v15  ;;  %1152 = vmatpush.msrb.mxu3 %v813_v16 }
 0x199   :  { %1090 = vmatpush.msrb.mxu0 %v763_v17  ;;  %1110 = vmatpush.msrb.mxu1 %v779_v18 }
 0x19a   :  { %1133 = vmatpush.msrb.mxu2 %v796_v19  ;;  %1153 = vmatpush.msrb.mxu3 %v812_v20 }
 0x19b   :  { %1091 = vmatpush.msrb.mxu0 %v762_v21  ;;  %1111 = vmatpush.msrb.mxu1 %v778_v22 }
 0x19c   :  { %1134 = vmatpush.msrb.mxu2 %v795_v23  ;;  %1154 = vmatpush.msrb.mxu3 %v811_v24 }
 0x19d   :  { %1092 = vmatpush.msrb.mxu0 %v761_v25  ;;  %1112 = vmatpush.msrb.mxu1 %v777_v26 }
 0x19e   :  { %1135 = vmatpush.msrb.mxu2 %v794_v27  ;;  %1155 = vmatpush.msrb.mxu3 %v810_v28 }
 0x19f   :  { %1093 = vmatpush.msrb.mxu0 %v760_v29  ;;  %1113 = vmatpush.msrb.mxu1 %v776_v30 }
 0x1a0   :  { %1136 = vmatpush.msrb.mxu2 %v793_v31  ;;  %1156 = vmatpush.msrb.mxu3 %v809_v32 }
 0x1a1   :  { %1094 = vmatpush.msrb.mxu0 %v759_v33  ;;  %1114 = vmatpush.msrb.mxu1 %v775_v36 }
 0x1a2   :  { %1137 = vmatpush.msrb.mxu2 %v792_v37  ;;  %1157 = vmatpush.msrb.mxu3 %v808_v38 }
 0x1a3   :  { %1095 = vmatpush.msrb.mxu0 %v758_v39  ;;  %1115 = vmatpush.msrb.mxu1 %v774_v40 }
 0x1a4   :  { %1138 = vmatpush.msrb.mxu2 %v791_v41  ;;  %1158 = vmatpush.msrb.mxu3 %v807_v42 }
 0x1a5   :  { %1096 = vmatpush.msrb.mxu0 %v757_v44  ;;  %1116 = vmatpush.msrb.mxu1 %v773_v45 }
 0x1a6   :  { %1139 = vmatpush.msrb.mxu2 %v790_v47  ;;  %1159 = vmatpush.msrb.mxu3 %v806_v48 }
 0x1a7   :  { %1097 = vmatpush.msrb.mxu0 %v756_v49  ;;  %1117 = vmatpush.msrb.mxu1 %v772_v50 }
 0x1a8   :  { %1140 = vmatpush.msrb.mxu2 %v789_v51  ;;  %1160 = vmatpush.msrb.mxu3 %v805_v53 }
 0x1a9   :  { %1098 = vmatpush.msrb.mxu0 %v755_v54  ;;  %1118 = vmatpush.msrb.mxu1 %v771_v55 }
 0x1aa   :  { %1141 = vmatpush.msrb.mxu2 %v788_v57  ;;  %1161 = vmatpush.msrb.mxu3 %v804_v58 }
 0x1ab   :  { %1099 = vmatpush.msrb.mxu0 %v754_v34  ;;  %1119 = vmatpush.msrb.mxu1 %v770_v35 }
 0x1ac   :  { %1142 = vmatpush.msrb.mxu2 %v787_v46  ;;  %1162 = vmatpush.msrb.mxu3 %v803_v56 }
 0x1ad   :  { %1100 = vmatpush.msrb.mxu0 %v753_v60  ;;  %1120 = vmatpush.msrb.mxu1 %v769_v61 }
 0x1ae   :  { %1143 = vmatpush.msrb.mxu2 %v786_v62  ;;  %1163 = vmatpush.msrb.mxu3 %v802_v43 }
 0x1af   :  { %1101 = vmatmul.f32.vlgmr.msrb.gmra.mxu0 %v1081_v0  ;;  %1121 = vmatmul.f32.vlgmr.msrb.gmra.mxu1 %v1082_v1 }
 0x1b0   :  { %1144 = vmatpush.msrb.mxu2 %v785_v3  ;;  %1164 = vmatpush.msrb.mxu3 %v801_v4 }
 0x1b1   :  { %1145 = vmatmul.f32.vlgmr.msrb.gmra.mxu2 %v1125_v5  ;;  %1165 = vmatmul.f32.vlgmr.msrb.gmra.mxu3 %v1126_v52 }
 0x1e7   :  { %v838_v6 = vpop.f32.mrf.mxu0  ;;  %v858_v7 = vpop.f32.mrf.mxu1 }
 0x1e8   :  { %v859_v2 = vadd.f32 %v858_v7, %v838_v6 }
 0x1ea   :  { %v1170_v8 = vsel %vm1169_vm5, %v859_v2, -inf }
 0x1eb   :  { %1171 = vmax.xlane.f32.xlu0 %v1170_v8 }
 0x1ef   :  { %v882_v9 = vpop.f32.mrf.mxu2  ;;  %v902_v10 = vpop.f32.mrf.mxu3 }
 0x1f0   :  { %v903_v11 = vadd.f32 %v902_v10, %v882_v9  ;;  %v926_v17 = vpop.f32.mrf.mxu0  ;;  %v946_v18 = vpop.f32.mrf.mxu1 }
 0x1f1   :  { %v947_v19 = vadd.f32 %v946_v18, %v926_v17  ;;  %v1264_v17 = vld [vmem:[%s4134_s3 + $0x30] sm:$0xff]  ;;  %v1265_v18 = vld [vmem:[%s4134_s3 + $0x38] sm:$0xff] }
 0x1f2   :  { %v1173_v12 = vsel %vm1169_vm5, %v903_v11, -inf }
 0x1f3   :  { %1174 = vmax.xlane.f32.xlu0 %v1173_v12  ;;  %v1176_v20 = vsel %vm1169_vm5, %v947_v19, -inf }
 0x1f9   :  { %v970_v13 = vpop.f32.mrf.mxu2  ;;  %v990_v14 = vpop.f32.mrf.mxu3 }
 0x1fa   :  { %v991_v15 = vadd.f32 %v990_v14, %v970_v13  ;;  %v1260_v13 = vld [vmem:[%s4134_s3 + $0x10] sm:$0xff]  ;;  %v1261_v14 = vld [vmem:[%s4134_s3 + $0x18] sm:$0xff] }
 0x1fb   :  { %1308 = vmatpush.msra.mxu2 %v1260_v13  ;;  %1328 = vmatpush.msra.mxu3 %v1261_v14  ;;  %v1679_v13 = vld [vmem:[%s4140_s9 + $0x160] sm:$0xff] }
 0x1fc   :  { %v1179_v16 = vsel %vm1169_vm5, %v991_v15, -inf  ;;  %v1798_v14 = vld [vmem:[%s4140_s9 + $0x1c0] sm:$0xff] }
 0x1fd   :  { %1180 = vmax.xlane.f32.xlu1 %v1179_v16  ;;  %v1259_v16 = vld [vmem:[%s4134_s3 + $0x8] sm:$0xff] }
 0x1fe   :  { %1329 = vmatpush.msra.mxu3 %v1259_v16  ;;  %v1797_v16 = vld [vmem:[%s4140_s9 + $0x1b8] sm:$0xff] }
 0x200   :  { %1371 = vmatpush.msrb.mxu3 %v1265_v18  ;;  %v1677_v18 = vld [vmem:[%s4140_s9 + $0x150] sm:$0xff] }
 0x205   :  { %1177 = vmax.xlane.f32.xlu1 %v1176_v20  ;;  %v1263_v20 = vld [vmem:[%s4134_s3 + $0x28] sm:$0xff] }
 0x206   :  { %1372 = vmatpush.msrb.mxu3 %v1263_v20  ;;  %v1676_v20 = vld [vmem:[%s4140_s9 + $0x148] sm:$0xff] }
 0x20a   :  { %v1014_v25 = vpop.f32.mrf.mxu0  ;;  %v1034_v26 = vpop.f32.mrf.mxu1 }
 0x20b   :  { %v1035_v27 = vadd.f32 %v1034_v26, %v1014_v25  ;;  %v1267_v25 = vld [vmem:[%s4134_s3 + $0x48] sm:$0xff] }
 0x20d   :  { %v1182_v28 = vsel %vm1169_vm5, %v1035_v27, -inf }
 0x213   :  { %v1058_v21 = vpop.f32.mrf.mxu2  ;;  %v1078_v22 = vpop.f32.mrf.mxu3 }
 0x214   :  { %v1079_v23 = vadd.f32 %v1078_v22, %v1058_v21  ;;  %v1268_v22 = vld [vmem:[%s4134_s3 + $0x50] sm:$0xff] }
 0x215   :  { %1394 = vmatpush.msra.mxu0 %v1268_v22  ;;  %v1675_v22 = vld [vmem:[%s4140_s9 + $0x140] sm:$0xff] }
 0x216   :  { %v1185_v24 = vsel %vm1169_vm5, %v1079_v23, -inf }
 0x217   :  { %1186 = vmax.xlane.f32.xlu2 %v1185_v24  ;;  %v1266_v24 = vld [vmem:[%s4134_s3 + $0x40] sm:$0xff] }
 0x218   :  { %1395 = vmatpush.msra.mxu0 %v1266_v24 }
 0x21f   :  { %1183 = vmax.xlane.f32.xlu2 %v1182_v28 }
 0x22c   :  { %v1102_v29 = vpop.f32.mrf.mxu0  ;;  %v1122_v30 = vpop.f32.mrf.mxu1 }
 0x22d   :  { %v1123_v31 = vadd.f32 %v1122_v30, %v1102_v29  ;;  %v1272_v29 = vld [vmem:[%s4134_s3 + $0x70] sm:$0xff]  ;;  %v1273_v30 = vld [vmem:[%s4134_s3 + $0x78] sm:$0xff] }
 0x22f   :  { %v1188_v32 = vsel %vm1169_vm5, %v1123_v31, -inf }
 0x230   :  { %1189 = vmax.xlane.f32.xlu1 %v1188_v32  ;;  %v1271_v32 = vld [vmem:[%s4134_s3 + $0x68] sm:$0xff] }
 0x234   :  { %v1146_v33 = vpop.f32.mrf.mxu2  ;;  %v1166_v36 = vpop.f32.mrf.mxu3 }
 0x235   :  { %v1167_v37 = vadd.f32 %v1166_v36, %v1146_v33 }
 0x237   :  { %v1191_v38 = vsel %vm1169_vm5, %v1167_v37, -inf }
 0x238   :  { %1192 = vmax.xlane.f32.xlu0 %v1191_v38 }
 0x25e   :  { %v1172_v39 = vpop.xlane.xlu0 %1171 }
 0x25f   :  { %v1194_v40 = vsub.f32 %v859_v2, %v1172_v39  ;;  %v1280_v39 = vld [vmem:[%s4134_s3 + $0xb0] sm:$0xff] }
 0x261   :  { %v1202_v41 = vmul.f32 1.442695, %v1194_v40  ;;  %v1281_v40 = vld [vmem:[%s4134_s3 + $0xb8] sm:$0xff] }
 0x263   :  { %2058 = vpow2.f32 %v1202_v41 }
 0x266   :  { %v1175_v42 = vpop.xlane.xlu0 %1174 }
 0x267   :  { %v1195_v44 = vsub.f32 %v903_v11, %v1175_v42  ;;  %v1278_v42 = vld [vmem:[%s4134_s3 + $0xa0] sm:$0xff] }
 0x269   :  { %v3628_v45 = vpop.eup %2058  ;;  %v1204_v47 = vmul.f32 1.442695, %v1195_v44  ;;  %v1279_v44 = vld [vmem:[%s4134_s3 + $0xa8] sm:$0xff] }
 0x26a   :  { %v1218_v48 = vsel %vm1169_vm5, %v3628_v45, 0.0 }
 0x26b   :  { %2060 = vpow2.f32 %v1204_v47  ;;  %1219 = vadd.xlane.f32.xlu2 %v1218_v48  ;;  %v1276_v47 = vld [vmem:[%s4134_s3 + $0x90] sm:$0xff] }
 0x26c   :  { %1480 = vmatpush.msrb.mxu0 %v1276_v47  ;;  %v1670_v47 = vld [vmem:[%s4140_s9 + $0x118] sm:$0xff] }
 0x270   :  { %v1181_v49 = vpop.xlane.xlu1 %1180 }
 0x271   :  { %v3632_v50 = vpop.eup %2060  ;;  %v1197_v51 = vsub.f32 %v991_v15, %v1181_v49  ;;  %v1258_v15 = vld [vmem:[%s4134_s3] sm:$0xff] }
 0x272   :  { %v1221_v53 = vsel %vm1169_vm5, %v3632_v50, 0.0  ;;  %1309 = vmatpush.msra.mxu2 %v1258_v15  ;;  %v1678_v15 = vld [vmem:[%s4140_s9 + $0x158] sm:$0xff] }
 0x273   :  { %v1208_v54 = vmul.f32 1.442695, %v1197_v51  ;;  %1222 = vadd.xlane.f32.xlu0 %v1221_v53  ;;  %v1277_v51 = vld [vmem:[%s4134_s3 + $0x98] sm:$0xff] }
 0x274   :  { %1351 = vmatpush.msrb.mxu2 %v1264_v17  ;;  %v1289_v53 = vld [vmem:[%s4134_s3 + $0xf8] sm:$0xff] }
 0x275   :  { %2062 = vpow2.f32 %v1208_v54  ;;  %v1275_v54 = vld [vmem:[%s4134_s3 + $0x88] sm:$0xff] }
 0x278   :  { %v1178_v55 = vpop.xlane.xlu1 %1177 }
 0x279   :  { %v1196_v57 = vsub.f32 %v947_v19, %v1178_v55  ;;  %v1262_v19 = vld [vmem:[%s4134_s3 + $0x20] sm:$0xff]  ;;  %v1287_v55 = vld [vmem:[%s4134_s3 + $0xe8] sm:$0xff] }
 0x27a   :  { %1352 = vmatpush.msrb.mxu2 %v1262_v19  ;;  %v1796_v19 = vld [vmem:[%s4140_s9 + $0x1b0] sm:$0xff] }
 0x27b   :  { %v3636_v58 = vpop.eup %2062  ;;  %v1206_v34 = vmul.f32 1.442695, %v1196_v57 }
 0x27c   :  { %v1227_v35 = vsel %vm1169_vm5, %v3636_v58, 0.0 }
 0x27d   :  { %2064 = vpow2.f32 %v1206_v34  ;;  %1228 = vadd.xlane.f32.xlu1 %v1227_v35  ;;  %v1284_v34 = vld [vmem:[%s4134_s3 + $0xd0] sm:$0xff]  ;;  %v1282_v35 = vld [vmem:[%s4134_s3 + $0xc0] sm:$0xff] }
 0x283   :  { %v3640_v46 = vpop.eup %2064 }
 0x284   :  { %v1224_v56 = vsel %vm1169_vm5, %v3640_v46, 0.0 }
 0x285   :  { %1225 = vadd.xlane.f32.xlu2 %v1224_v56 }
 0x28a   :  { %v1187_v59 = vpop.xlane.xlu2 %1186 }
 0x28b   :  { %v1199_v60 = vsub.f32 %v1079_v23, %v1187_v59  ;;  %v1269_v23 = vld [vmem:[%s4134_s3 + $0x58] sm:$0xff]  ;;  %v1283_v59 = vld [vmem:[%s4134_s3 + $0xc8] sm:$0xff] }
 0x28c   :  { %1414 = vmatpush.msra.mxu1 %v1269_v23  ;;  %v1794_v23 = vld [vmem:[%s4140_s9 + $0x1a0] sm:$0xff] }
 0x28d   :  { %v1212_v61 = vmul.f32 1.442695, %v1199_v60 }
 0x28e   :  { %1415 = vmatpush.msra.mxu1 %v1267_v25 }
 0x28f   :  { %2066 = vpow2.f32 %v1212_v61  ;;  %v1288_v61 = vld [vmem:[%s4134_s3 + $0xf0] sm:$0xff] }
 0x290   :  { %1500 = vmatpush.msrb.mxu1 %v1277_v51 }
 0x292   :  { %v1184_v62 = vpop.xlane.xlu2 %1183  ;;  %1501 = vmatpush.msrb.mxu1 %v1275_v54 }
 0x293   :  { %v1198_v43 = vsub.f32 %v1035_v27, %v1184_v62 }
 0x295   :  { %v3644_v63 = vpop.eup %2066  ;;  %v1210_v0 = vmul.f32 1.442695, %v1198_v43 }
 0x296   :  { %v1233_v1 = vsel %vm1169_vm5, %v3644_v63, 0.0 }
 0x297   :  { %2068 = vpow2.f32 %v1210_v0  ;;  %1234 = vadd.xlane.f32.xlu0 %v1233_v1  ;;  %v1805_v0 = vld [vmem:[%s4140_s9 + $0x1f8] sm:$0xff]  ;;  %v1286_v1 = vld [vmem:[%s4134_s3 + $0xe0] sm:$0xff] }
 0x29d   :  { %v3648_v3 = vpop.eup %2068 }
 0x29e   :  { %v1230_v4 = vsel %vm1169_vm5, %v3648_v3, 0.0 }
 0x29f   :  { %1231 = vadd.xlane.f32.xlu1 %v1230_v4  ;;  %v1803_v4 = vld [vmem:[%s4140_s9 + $0x1e8] sm:$0xff] }
 0x2a3   :  { %v1190_v5 = vpop.xlane.xlu1 %1189 }
 0x2a4   :  { %v1200_v52 = vsub.f32 %v1123_v31, %v1190_v5  ;;  %v1270_v31 = vld [vmem:[%s4134_s3 + $0x60] sm:$0xff] }
 0x2a5   :  { %v1802_v5 = vld [vmem:[%s4140_s9 + $0x1e0] sm:$0xff] }
 0x2a6   :  { %v1214_v6 = vmul.f32 1.442695, %v1200_v52 }
 0x2a8   :  { %2070 = vpow2.f32 %v1214_v6 }
 0x2ab   :  { %v1193_v7 = vpop.xlane.xlu0 %1192 }
 0x2ac   :  { %v1201_v2 = vsub.f32 %v1167_v37, %v1193_v7  ;;  %v1682_v7 = vld [vmem:[%s4140_s9 + $0x178] sm:$0xff] }
 0x2ae   :  { %v3652_v8 = vpop.eup %2070  ;;  %v1216_v9 = vmul.f32 1.442695, %v1201_v2  ;;  %v1801_v2 = vld [vmem:[%s4140_s9 + $0x1d8] sm:$0xff] }
 0x2af   :  { %v1236_v10 = vsel %vm1169_vm5, %v3652_v8, 0.0 }
 0x2b0   :  { %2072 = vpow2.f32 %v1216_v9  ;;  %1237 = vadd.xlane.f32.xlu0 %v1236_v10  ;;  %v1800_v9 = vld [vmem:[%s4140_s9 + $0x1d0] sm:$0xff]  ;;  %v1680_v10 = vld [vmem:[%s4140_s9 + $0x168] sm:$0xff] }
 0x2b6   :  { %v3656_v11 = vpop.eup %2072 }
 0x2b7   :  { %v1239_v12 = vsel %vm1169_vm5, %v3656_v11, 0.0 }
 0x2b8   :  { %1240 = vadd.xlane.f32.xlu2 %v1239_v12  ;;  %v1799_v12 = vld [vmem:[%s4140_s9 + $0x1c8] sm:$0xff] }
 0x2de   :  { %v1220_v21 = vpop.xlane.xlu2 %1219 }
 0x2df   :  { %2074 = vrcp.f32 %v1220_v21  ;;  %v1795_v21 = vld [vmem:[%s4140_s9 + $0x1a8] sm:$0xff] }
 0x2e5   :  { %v2075_v26 = vpop.eup %2074 }
 0x2e6   :  { %v1250_v27 = vmul.f32 %v2075_v26, %v3628_v45  ;;  %v1223_v28 = vpop.xlane.xlu0 %1222 }
 0x2e7   :  { %2076 = vrcp.f32 %v1223_v28  ;;  %v1674_v28 = vld [vmem:[%s4140_s9 + $0x138] sm:$0xff] }
 0x2e8   :  { %2021 = vmatmul.msk.f32.vlgmr.msra.gmra.mxu2 %vm1290_vm6, %v1250_v27  ;;  %2022 = vmatmul.msk.f32.vlgmr.msra.gmra.mxu3 %vm1290_vm6, %v1250_v27 }
 0x2e9   :  { %1437 = vmatpush.msra.mxu2 %v1272_v29  ;;  %1457 = vmatpush.msra.mxu3 %v1273_v30  ;;  %v1793_v29 = vld [vmem:[%s4140_s9 + $0x198] sm:$0xff]  ;;  %v1792_v30 = vld [vmem:[%s4140_s9 + $0x190] sm:$0xff] }
 0x2eb   :  { %1438 = vmatpush.msra.mxu2 %v1270_v31  ;;  %1458 = vmatpush.msra.mxu3 %v1271_v32 }
 0x2ed   :  { %v2077_v33 = vpop.eup %2076 }
 0x2ee   :  { %v1251_v36 = vmul.f32 %v2077_v33, %v3632_v50  ;;  %v1274_v50 = vld [vmem:[%s4134_s3 + $0x80] sm:$0xff] }
 0x2ef   :  { %1481 = vmatpush.msrb.mxu0 %v1274_v50 }
 0x2f0   :  { %v1929_v37 = vrot.slane %v1251_v36, 7  ;;  %v1229_v38 = vpop.xlane.xlu1 %1228  ;;  %2023 = vmatmul.msk.f32.vlgmr.msrb.gmra.mxu2 %vm1290_vm6, %v1251_v36  ;;  %2024 = vmatmul.msk.f32.vlgmr.msrb.gmra.mxu3 %vm1290_vm6, %v1251_v36  ;;  %v1672_v36 = vld [vmem:[%s4140_s9 + $0x128] sm:$0xff] }
 0x2f1   :  { %2078 = vrcp.f32 %v1229_v38  ;;  %1523 = vmatpush.msrb.mxu2 %v1280_v39  ;;  %1543 = vmatpush.msrb.mxu3 %v1281_v40  ;;  %v1671_v38 = vld [vmem:[%s4140_s9 + $0x120] sm:$0xff] }
 0x2f2   :  { %v3721_v41 = vsel %vm540_vm14, %v1929_v37, %v1250_v27  ;;  %v1791_v37 = vld [vmem:[%s4140_s9 + $0x188] sm:$0xff]  ;;  %v1790_v39 = vld [vmem:[%s4140_s9 + $0x180] sm:$0xff] }
 0x2f3   :  { %1524 = vmatpush.msrb.mxu2 %v1278_v42  ;;  %1544 = vmatpush.msrb.mxu3 %v1279_v44 }
 0x2f7   :  { %v2079_v45 = vpop.eup %2078 }
 0x2f8   :  { %v3733_v48 = vmul.f32 %v2079_v45, %v3636_v58  ;;  %v1226_v49 = vpop.xlane.xlu2 %1225 }
 0x2f9   :  { %2080 = vrcp.f32 %v1226_v49  ;;  %v1669_v49 = vld [vmem:[%s4140_s9 + $0x110] sm:$0xff] }
 0x2fa   :  { %2027 = vmatmul.msk.f32.vlgmr.msra.gmra.mxu2 %vm1290_vm6, %v3733_v48  ;;  %2028 = vmatmul.msk.f32.vlgmr.msra.gmra.mxu3 %vm1290_vm6, %v3733_v48  ;;  %v1933_v33 = vrot.slane %v3733_v48, 5 }
 0x2fb   :  { %1629 = vmatpush.msra.mxu3 %v1289_v53  ;;  %1609 = vmatpush.msra.mxu2 %v1288_v61  ;;  %v1668_v53 = vld [vmem:[%s4140_s9 + $0x108] sm:$0xff]  ;;  %v1647_v61 = vld [vmem:[%s4140_s9 + $0x60] sm:$0xff] }
 0x2fd   :  { %1630 = vmatpush.msra.mxu3 %v1287_v55  ;;  %1610 = vmatpush.msra.mxu2 %v1286_v1  ;;  %v1667_v55 = vld [vmem:[%s4140_s9 + $0x100] sm:$0xff]  ;;  %v1645_v1 = vld [vmem:[%s4140_s9 + $0x50] sm:$0xff] }
 0x2ff   :  { %v2081_v57 = vpop.eup %2080 }
 0x300   :  { %v3755_v58 = vmul.f32 %v2081_v57, %v3640_v46  ;;  %v1285_v46 = vld [vmem:[%s4134_s3 + $0xd8] sm:$0xff] }
 0x301   :  { %v2098_v57 = vld [vmem:[#allocation8] sm:$0xff] }
 0x302   :  { %2025 = vmatmul.msk.f32.vlgmr.msra.gmra.mxu0 %vm1290_vm6, %v3755_v58  ;;  %2026 = vmatmul.msk.f32.vlgmr.msra.gmra.mxu1 %vm1290_vm6, %v3755_v58  ;;  %v1931_v25 = vrot.slane %v3755_v58, 6  ;;  %v2099_v58 = vld [vmem:[#allocation9] sm:$0xff] }
 0x303   :  { %1566 = vmatpush.msra.mxu0 %v1284_v34  ;;  %1586 = vmatpush.msra.mxu1 %v1285_v46  ;;  %v1650_v34 = vld [vmem:[%s4140_s9 + $0x78] sm:$0xff]  ;;  %v1649_v46 = vld [vmem:[%s4140_s9 + $0x70] sm:$0xff] }
 0x304   :  { %v1932_v32 = vsel %vm543_vm0, %v1931_v25, %v3721_v41 }
 0x305   :  { %1567 = vmatpush.msra.mxu0 %v1282_v35  ;;  %1587 = vmatpush.msra.mxu1 %v1283_v59  ;;  %v1934_v40 = vsel %vm546_vm2, %v1933_v33, %v1932_v32  ;;  %v1666_v35 = vld [vmem:[%s4140_s9 + $0xf8] sm:$0xff]  ;;  %v1648_v59 = vld [vmem:[%s4140_s9 + $0x68] sm:$0xff] }
 0x30a   :  { %v1235_v56 = vpop.xlane.xlu0 %1234 }
 0x30b   :  { %2082 = vrcp.f32 %v1235_v56  ;;  %v1665_v56 = vld [vmem:[%s4140_s9 + $0xf0] sm:$0xff] }
 0x311   :  { %v2083_v60 = vpop.eup %2082 }
 0x312   :  { %v3777_v62 = vmul.f32 %v2083_v60, %v3644_v63  ;;  %v1232_v43 = vpop.xlane.xlu1 %1231  ;;  %v1804_v63 = vld [vmem:[%s4140_s9 + $0x1f0] sm:$0xff]  ;;  %v1664_v60 = vld [vmem:[%s4140_s9 + $0xe8] sm:$0xff] }
 0x313   :  { %2084 = vrcp.f32 %v1232_v43  ;;  %v1646_v43 = vld [vmem:[%s4140_s9 + $0x58] sm:$0xff] }
 0x314   :  { %2031 = vmatmul.msk.f32.vlgmr.msrb.gmra.mxu2 %vm1290_vm6, %v3777_v62  ;;  %2032 = vmatmul.msk.f32.vlgmr.msrb.gmra.mxu3 %vm1290_vm6, %v3777_v62  ;;  %v1937_v48 = vrot.slane %v3777_v62, 3  ;;  %v1663_v62 = vld [vmem:[%s4140_s9 + $0xe0] sm:$0xff] }
 0x315   :  { %1806 = vmatpush.msrb.mxu3 %v1805_v0  ;;  %1770 = vmatpush.msrb.mxu2 %v1666_v35  ;;  %v1662_v0 = vld [vmem:[%s4140_s9 + $0xd8] sm:$0xff] }
 0x317   :  { %1807 = vmatpush.msrb.mxu3 %v1804_v63  ;;  %1771 = vmatpush.msrb.mxu2 %v1665_v56  ;;  %v1661_v63 = vld [vmem:[%s4140_s9 + $0xd0] sm:$0xff] }
 0x319   :  { %v2085_v52 = vpop.eup %2084  ;;  %1808 = vmatpush.msrb.mxu3 %v1803_v4  ;;  %1772 = vmatpush.msrb.mxu2 %v1664_v60  ;;  %v1644_v4 = vld [vmem:[%s4140_s9 + $0x48] sm:$0xff] }
 0x31a   :  { %v3799_v6 = vmul.f32 %v2085_v52, %v3648_v3  ;;  %v1681_v3 = vld [vmem:[%s4140_s9 + $0x170] sm:$0xff]  ;;  %v1643_v52 = vld [vmem:[%s4140_s9 + $0x40] sm:$0xff] }
 0x31b   :  { %1809 = vmatpush.msrb.mxu3 %v1802_v5  ;;  %1773 = vmatpush.msrb.mxu2 %v1663_v62  ;;  %v1660_v5 = vld [vmem:[%s4140_s9 + $0xc8] sm:$0xff] }
 0x31c   :  { %2029 = vmatmul.msk.f32.vlgmr.msrb.gmra.mxu0 %vm1290_vm6, %v3799_v6  ;;  %2030 = vmatmul.msk.f32.vlgmr.msrb.gmra.mxu1 %vm1290_vm6, %v3799_v6  ;;  %v1935_v31 = vrot.slane %v3799_v6, 4  ;;  %v1659_v6 = vld [vmem:[%s4140_s9 + $0xc0] sm:$0xff] }
 0x31d   :  { %1683 = vmatpush.msrb.mxu0 %v1682_v7  ;;  %1810 = vmatpush.msrb.mxu3 %v1801_v2  ;;  %v1642_v7 = vld [vmem:[%s4140_s9 + $0x38] sm:$0xff] }
 0x31e   :  { %v1936_v42 = vsel %vm549_vm3, %v1935_v31, %v1934_v40  ;;  %1750 = vmatpush.msrb.mxu1 %v1650_v34  ;;  %1774 = vmatpush.msrb.mxu2 %v1662_v0  ;;  %v1658_v2 = vld [vmem:[%s4140_s9 + $0xb8] sm:$0xff] }
 0x31f   :  { %1684 = vmatpush.msrb.mxu0 %v1681_v3  ;;  %1811 = vmatpush.msrb.mxu3 %v1800_v9  ;;  %v1938_v50 = vsel %vm552_vm4, %v1937_v48, %v1936_v42  ;;  %v1641_v3 = vld [vmem:[%s4140_s9 + $0x30] sm:$0xff]  ;;  %v1860_v31 = vld [vmem:[%s4142_s11 + $0xd8] sm:$0xff]  ;;  %v1853_v42 = vld [vmem:[%s4142_s11 + $0xa0] sm:$0xff] }
 0x320   :  { %1751 = vmatpush.msrb.mxu1 %v1649_v46  ;;  %1775 = vmatpush.msrb.mxu2 %v1661_v63  ;;  %v1657_v9 = vld [vmem:[%s4140_s9 + $0xb0] sm:$0xff] }
 0x321   :  { %1685 = vmatpush.msrb.mxu0 %v1680_v10  ;;  %1812 = vmatpush.msrb.mxu3 %v1799_v12  ;;  %v1640_v10 = vld [vmem:[%s4140_s9 + $0x28] sm:$0xff] }
 0x322   :  { %1752 = vmatpush.msrb.mxu1 %v1648_v59  ;;  %1776 = vmatpush.msrb.mxu2 %v1660_v5  ;;  %v1656_v12 = vld [vmem:[%s4140_s9 + $0xa8] sm:$0xff] }
 0x323   :  { %v1238_v17 = vpop.xlane.xlu0 %1237  ;;  %1686 = vmatpush.msrb.mxu0 %v1679_v13  ;;  %1813 = vmatpush.msrb.mxu3 %v1798_v14  ;;  %v1639_v13 = vld [vmem:[%s4140_s9 + $0x20] sm:$0xff] }
 0x324   :  { %2086 = vrcp.f32 %v1238_v17  ;;  %1753 = vmatpush.msrb.mxu1 %v1647_v61  ;;  %1777 = vmatpush.msrb.mxu2 %v1659_v6  ;;  %v1655_v14 = vld [vmem:[%s4140_s9 + $0xa0] sm:$0xff] }
 0x325   :  { %1687 = vmatpush.msrb.mxu0 %v1678_v15  ;;  %1814 = vmatpush.msrb.mxu3 %v1797_v16  ;;  %v1638_v15 = vld [vmem:[%s4140_s9 + $0x18] sm:$0xff] }
 0x326   :  { %1754 = vmatpush.msrb.mxu1 %v1646_v43  ;;  %1778 = vmatpush.msrb.mxu2 %v1658_v2  ;;  %v1654_v16 = vld [vmem:[%s4140_s9 + $0x98] sm:$0xff] }
 0x327   :  { %1688 = vmatpush.msrb.mxu0 %v1677_v18  ;;  %1815 = vmatpush.msrb.mxu3 %v1796_v19  ;;  %v1637_v19 = vld [vmem:[%s4140_s9 + $0x10] sm:$0xff] }
 0x328   :  { %1755 = vmatpush.msrb.mxu1 %v1645_v1  ;;  %1779 = vmatpush.msrb.mxu2 %v1657_v9 }
 0x329   :  { %1689 = vmatpush.msrb.mxu0 %v1676_v20  ;;  %1816 = vmatpush.msrb.mxu3 %v1795_v21  ;;  %v1653_v20 = vld [vmem:[%s4140_s9 + $0x90] sm:$0xff]  ;;  %v1636_v21 = vld [vmem:[%s4140_s9 + $0x8] sm:$0xff] }
 0x32a   :  { %v2087_v24 = vpop.eup %2086  ;;  %1756 = vmatpush.msrb.mxu1 %v1644_v4  ;;  %1780 = vmatpush.msrb.mxu2 %v1656_v12 }
 0x32b   :  { %v1256_v26 = vmul.f32 %v2087_v24, %v3652_v8  ;;  %v1241_v27 = vpop.xlane.xlu2 %1240  ;;  %1690 = vmatpush.msrb.mxu0 %v1675_v22  ;;  %1817 = vmatpush.msrb.mxu3 %v1794_v23  ;;  %v1673_v8 = vld [vmem:[%s4140_s9 + $0x130] sm:$0xff]  ;;  %v1652_v22 = vld [vmem:[%s4140_s9 + $0x88] sm:$0xff]  ;;  %v1635_v23 = vld [vmem:[%s4140_s9] sm:$0xff] }
 0x32c   :  { %2088 = vrcp.f32 %v1241_v27  ;;  %1757 = vmatpush.msrb.mxu1 %v1643_v52  ;;  %1781 = vmatpush.msrb.mxu2 %v1655_v14  ;;  %v1651_v24 = vld [vmem:[%s4140_s9 + $0x80] sm:$0xff]  ;;  %v1863_v27 = vld [vmem:[%s4142_s11 + $0xf0] sm:$0xff]  ;;  %s1989_s9 = sshll.u32 %s2204_s26, 4  ;;  %s1990_s9 = int_to_ptr.vmem [resolvable:$true] %s1989_s9 }
 0x32d   :  { %2033 = vmatmul.msk.f32.vlgmr.msra.gmra.mxu0 %vm1290_vm6, %v1256_v26  ;;  %2034 = vmatmul.msk.f32.vlgmr.msra.gmra.mxu1 %vm1290_vm6, %v1256_v26  ;;  %v1939_v44 = vrot.slane %v1256_v26, 2  ;;  %1994 = dma.vmem_to_hbm [thread:$0]  %s1990_s9, 128, %s1992_s25, [#allocation10]  }
 0x32e   :  { %1691 = vmatpush.msrb.mxu0 %v1674_v28  ;;  %1818 = vmatpush.msrb.mxu3 %v1793_v29  ;;  %v1864_v28 = vld [vmem:[%s4142_s11 + $0xf8] sm:$0xff]  ;;  %v1861_v29 = vld [vmem:[%s4142_s11 + $0xe0] sm:$0xff] }
 0x32f   :  { %v1940_v51 = vsel %vm555_vm15, %v1939_v44, %v1938_v50  ;;  %1758 = vmatpush.msrb.mxu1 %v1642_v7  ;;  %1782 = vmatpush.msrb.mxu2 %v1654_v16  ;;  %v1854_v44 = vld [vmem:[%s4142_s11 + $0xa8] sm:$0xff]  ;;  %v1852_v16 = vld [vmem:[%s4142_s11 + $0x98] sm:$0xff] }
 0x330   :  { %1692 = vmatpush.msrb.mxu0 %v1673_v8  ;;  %1819 = vmatpush.msrb.mxu3 %v1792_v30  ;;  %v1862_v8 = vld [vmem:[%s4142_s11 + $0xe8] sm:$0xff]  ;;  %v1859_v30 = vld [vmem:[%s4142_s11 + $0xd0] sm:$0xff] }
 0x331   :  { %1759 = vmatpush.msrb.mxu1 %v1641_v3  ;;  %1783 = vmatpush.msrb.mxu2 %v1653_v20  ;;  %v1848_v20 = vld [vmem:[%s4142_s11 + $0x78] sm:$0xff] }
 0x332   :  { %v2089_v41 = vpop.eup %2088  ;;  %1693 = vmatpush.msrb.mxu0 %v1672_v36  ;;  %1820 = vmatpush.msrb.mxu3 %v1791_v37  ;;  %v1857_v36 = vld [vmem:[%s4142_s11 + $0xc0] sm:$0xff]  ;;  %v1858_v37 = vld [vmem:[%s4142_s11 + $0xc8] sm:$0xff] }
 0x333   :  { %v1257_v45 = vmul.f32 %v2089_v41, %v3656_v11  ;;  %1760 = vmatpush.msrb.mxu1 %v1640_v10  ;;  %1784 = vmatpush.msrb.mxu2 %v1652_v22  ;;  %v1846_v22 = vld [vmem:[%s4142_s11 + $0x68] sm:$0xff] }
 0x334   :  { %1694 = vmatpush.msrb.mxu0 %v1671_v38  ;;  %1821 = vmatpush.msrb.mxu3 %v1790_v39  ;;  %v1855_v38 = vld [vmem:[%s4142_s11 + $0xb0] sm:$0xff]  ;;  %v1856_v39 = vld [vmem:[%s4142_s11 + $0xb8] sm:$0xff] }
 0x335   :  { %2035 = vmatmul.msk.f32.vlgmr.msra.gmra.mxu2 %vm1290_vm6, %v1257_v45  ;;  %2036 = vmatmul.msk.f32.vlgmr.msra.gmra.mxu3 %vm1290_vm6, %v1257_v45  ;;  %v1941_v11 = vrot.slane %v1257_v45, 1 }
 0x336   :  { %1695 = vmatpush.msrb.mxu0 %v1670_v47  ;;  %1761 = vmatpush.msrb.mxu1 %v1639_v13 }
 0x337   :  { %v1942_v54 = vsel %vm1732_vm7, %v1941_v11, %v1940_v51  ;;  %1785 = vmatpush.msrb.mxu2 %v1651_v24  ;;  %v1844_v24 = vld [vmem:[%s4142_s11 + $0x58] sm:$0xff] }
 0x338   :  { %1696 = vmatpush.msrb.mxu0 %v1669_v49  ;;  %1944 = vst.msk [vmem:[#allocation6] sm:$0xff] %vm1290_vm6, %v1942_v54  ;;  %1762 = vmatpush.msrb.mxu1 %v1638_v15  ;;  %v1851_v15 = vld [vmem:[%s4142_s11 + $0x90] sm:$0xff] }
 0x33a   :  { %1697 = vmatpush.msrb.mxu0 %v1668_v53  ;;  %1763 = vmatpush.msrb.mxu1 %v1637_v19  ;;  %v1847_v19 = vld [vmem:[%s4142_s11 + $0x70] sm:$0xff] }
 0x33c   :  { %1698 = vmatpush.msrb.mxu0 %v1667_v55  ;;  %1764 = vmatpush.msrb.mxu1 %v1636_v21  ;;  %v1845_v21 = vld [vmem:[%s4142_s11 + $0x60] sm:$0xff] }
 0x33d   :  { %1699 = vmatmul.f32.vlgmr.msrb.gmra.mxu0 %v2098_v57  ;;  %1822 = vmatmul.f32.vlgmr.msrb.gmra.mxu3 %v2099_v58 }
 0x33e   :  { %1765 = vmatpush.msrb.mxu1 %v1635_v23  ;;  %1871 = vmatpush.msra.mxu0 %v1863_v27  ;;  %v1843_v23 = vld [vmem:[%s4142_s11 + $0x50] sm:$0xff] }
 0x33f   :  { %v1839_v27 = vld [vmem:[%s4142_s11 + $0x30] sm:$0xff] }
 0x340   :  { %1891 = vmatpush.msra.mxu1 %v1864_v28  ;;  %1872 = vmatpush.msra.mxu0 %v1861_v29  ;;  %v1840_v28 = vld [vmem:[%s4142_s11 + $0x38] sm:$0xff]  ;;  %v1837_v29 = vld [vmem:[%s4142_s11 + $0x20] sm:$0xff] }
 0x342   :  { %1892 = vmatpush.msra.mxu1 %v1862_v8  ;;  %1873 = vmatpush.msra.mxu0 %v1859_v30  ;;  %v1838_v8 = vld [vmem:[%s4142_s11 + $0x28] sm:$0xff]  ;;  %v1835_v30 = vld [vmem:[%s4142_s11 + $0x10] sm:$0xff] }
 0x344   :  { %1893 = vmatpush.msra.mxu1 %v1860_v31  ;;  %1874 = vmatpush.msra.mxu0 %v1857_v36  ;;  %v1836_v31 = vld [vmem:[%s4142_s11 + $0x18] sm:$0xff] }
 0x346   :  { %1894 = vmatpush.msra.mxu1 %v1858_v37  ;;  %1875 = vmatpush.msra.mxu0 %v1855_v38 }
 0x348   :  { %1895 = vmatpush.msra.mxu1 %v1856_v39  ;;  %1876 = vmatpush.msra.mxu0 %v1853_v42 }
 0x34a   :  { %1896 = vmatpush.msra.mxu1 %v1854_v44  ;;  %1877 = vmatpush.msra.mxu0 %v1851_v15 }
 0x34c   :  { %1897 = vmatpush.msra.mxu1 %v1852_v16 }
 0x36b   :  { %v1311_v17 = vpop.f32.mrf.mxu2  ;;  %v1331_v18 = vpop.f32.mrf.mxu3 }
 0x373   :  { %v1354_v25 = vpop.f32.mrf.mxu2  ;;  %v1374_v26 = vpop.f32.mrf.mxu3 }
 0x374   :  { %v1719_v48 = vrot.slane %v1354_v25, 7  ;;  %v1734_v49 = vrot.slane %v1374_v26, 7  ;;  %v1841_v25 = vld [vmem:[%s4142_s11 + $0x40] sm:$0xff]  ;;  %v1842_v26 = vld [vmem:[%s4142_s11 + $0x48] sm:$0xff] }
 0x376   :  { %v1720_v54 = vsel %vm540_vm14, %v1719_v48, %v1311_v17  ;;  %v1735_v55 = vsel %vm540_vm14, %v1734_v49, %v1331_v18  ;;  %v1849_v17 = vld [vmem:[%s4142_s11 + $0x80] sm:$0xff]  ;;  %v1850_v18 = vld [vmem:[%s4142_s11 + $0x88] sm:$0xff] }
 0x377   :  { %1878 = vmatpush.msra.mxu0 %v1849_v17  ;;  %1898 = vmatpush.msra.mxu1 %v1850_v18  ;;  %v1865_v48 = vld [vmem:[%s4143_s12] sm:$0x3] }
 0x378   :  { %v1867_v49 = vperm.slane %v1865_v48, 0 }
 0x379   :  { %1879 = vmatpush.msra.mxu0 %v1847_v19  ;;  %1899 = vmatpush.msra.mxu1 %v1848_v20 }
 0x37b   :  { %1880 = vmatpush.msra.mxu0 %v1845_v21  ;;  %1900 = vmatpush.msra.mxu1 %v1846_v22 }
 0x37d   :  { %v1440_v40 = vpop.f32.mrf.mxu2  ;;  %v1460_v41 = vpop.f32.mrf.mxu3  ;;  %1881 = vmatpush.msra.mxu0 %v1843_v23  ;;  %1901 = vmatpush.msra.mxu1 %v1844_v24 }
 0x37e   :  { %v1723_v46 = vrot.slane %v1440_v40, 5  ;;  %v1738_v56 = vrot.slane %v1460_v41, 5  ;;  %v2041_v41 = vld [vmem:[%s4141_s10] ss:$0 sm:$0xff]  ;;  %s2202_s10 = smov [#allocation6]  }
 0x37f   :  { %v1397_v32 = vpop.f32.mrf.mxu0  ;;  %v1417_v33 = vpop.f32.mrf.mxu1  ;;  %1882 = vmatpush.msra.mxu0 %v1841_v25  ;;  %1902 = vmatpush.msra.mxu1 %v1842_v26  ;;  %s1967_s12 = sshll.u32 %s2202_s10, 4  ;;  %s1968_s12 = int_to_ptr.vmem [resolvable:$true] %s1967_s12 }
 0x380   :  { %v1721_v50 = vrot.slane %v1397_v32, 6  ;;  %v1736_v11 = vrot.slane %v1417_v33, 6  ;;  %v1833_v32 = vld [vmem:[%s4142_s11] sm:$0xff]  ;;  %v1834_v33 = vld [vmem:[%s4142_s11 + $0x8] sm:$0xff]  ;;  %1972 = dma.vmem_to_hbm [thread:$0]  %s1968_s12, 128, %s1970_s19, [#allocation7]  }
 0x381   :  { %1883 = vmatpush.msra.mxu0 %v1839_v27  ;;  %1903 = vmatpush.msra.mxu1 %v1840_v28  ;;  %1983 = dma.vmem_to_hbm [thread:$0]  %s1979_s20, 128, %s1981_s5, [#allocation7]  }
 0x382   :  { %v1722_v57 = vsel %vm543_vm0, %v1721_v50, %v1720_v54  ;;  %v1737_v58 = vsel %vm543_vm0, %v1736_v11, %v1735_v55  ;;  %v1868_v50 = vperm.slane %v1865_v48, 1 }
 0x383   :  { %v1724_v61 = vsel %vm546_vm2, %v1723_v46, %v1722_v57  ;;  %v1739_v62 = vsel %vm546_vm2, %v1738_v56, %v1737_v58  ;;  %1884 = vmatpush.msra.mxu0 %v1837_v29  ;;  %1904 = vmatpush.msra.mxu1 %v1838_v8 }
 0x385   :  { %1885 = vmatpush.msra.mxu0 %v1835_v30  ;;  %1905 = vmatpush.msra.mxu1 %v1836_v31 }
 0x387   :  { %1886 = vmatpush.msra.mxu0 %v1833_v32  ;;  %1906 = vmatpush.msra.mxu1 %v1834_v33 }
 0x397   :  { %v1526_v51 = vpop.f32.mrf.mxu2  ;;  %v1546_v53 = vpop.f32.mrf.mxu3 }
 0x398   :  { %v1727_v4 = vrot.slane %v1526_v51, 3  ;;  %v1742_v5 = vrot.slane %v1546_v53, 3 }
 0x399   :  { %v1483_v45 = vpop.f32.mrf.mxu0  ;;  %v1503_v47 = vpop.f32.mrf.mxu1 }
 0x39a   :  { %v1725_v34 = vrot.slane %v1483_v45, 4  ;;  %v1740_v35 = vrot.slane %v1503_v47, 4 }
 0x39c   :  { %v1726_v43 = vsel %vm549_vm3, %v1725_v34, %v1724_v61  ;;  %v1741_v0 = vsel %vm549_vm3, %v1740_v35, %v1739_v62 }
 0x39d   :  { %v1728_v7 = vsel %vm552_vm4, %v1727_v4, %v1726_v43  ;;  %v1743_v2 = vsel %vm552_vm4, %v1742_v5, %v1741_v0 }
 0x3aa   :  { %v1569_v59 = vpop.f32.mrf.mxu0  ;;  %v1589_v60 = vpop.f32.mrf.mxu1 }
 0x3ab   :  { %v1729_v1 = vrot.slane %v1569_v59, 2  ;;  %v1744_v63 = vrot.slane %v1589_v60, 2 }
 0x3ad   :  { %v1730_v10 = vsel %vm555_vm15, %v1729_v1, %v1728_v7  ;;  %v1745_v12 = vsel %vm555_vm15, %v1744_v63, %v1743_v2 }
 0x3b8   :  { %v1612_v52 = vpop.f32.mrf.mxu2  ;;  %v1632_v6 = vpop.f32.mrf.mxu3 }
 0x3b9   :  { %v1731_v3 = vrot.slane %v1612_v52, 1  ;;  %v1746_v9 = vrot.slane %v1632_v6, 1 }
 0x3ba   :  { %v1700_v37 = vpop.f32.mrf.mxu0 }
 0x3bb   :  { %v1733_v13 = vsel %vm1732_vm7, %v1731_v3, %v1730_v10  ;;  %v1747_v14 = vsel %vm1732_vm7, %v1746_v9, %v1745_v12 }
 0x3bc   :  { %1766 = vmatmul.f32.vlgmr.msrb.gmra.mxu1 %v1733_v13  ;;  %1786 = vmatmul.f32.vlgmr.msrb.gmra.mxu2 %v1747_v14 }
 0x3c0   :  { %v1823_v42 = vpop.f32.mrf.mxu3 }
 0x439   :  { %v1767_v36 = vpop.f32.mrf.mxu1 }
 0x43a   :  { %v1768_v38 = vadd.f32 %v1767_v36, %v1700_v37 }
 0x43f   :  { %v1787_v39 = vpop.f32.mrf.mxu2 }
 0x440   :  { %v1788_v40 = vadd.f32 %v1787_v39, %v1768_v38 }
 0x442   :  { %v1826_v44 = vadd.f32 %v1823_v42, %v1788_v40 }
 0x444   :  { %v1831_v45 = vadd.f32 %v2041_v41, %v1826_v44 }
 0x446   :  { %2090 = vtanh.f32 %v1831_v45 }
 0x44c   :  { %v2091_v47 = vpop.eup %2090 }
 0x44d   :  { %1887 = vmatmul.f32.vlgmr.msra.gmra.mxu0 %v2091_v47  ;;  %1907 = vmatmul.f32.vlgmr.msra.gmra.mxu1 %v2091_v47 }
 0x4ca   :  { %v1888_v11 = vpop.f32.mrf.mxu0  ;;  %v1908_v51 = vpop.f32.mrf.mxu1 }
 0x4cb   :  { %v1889_v53 = vadd.f32 %v1888_v11, %v1867_v49  ;;  %v1909_v54 = vadd.f32 %v1908_v51, %v1868_v50 }
 0x4cd   :  { %v1911_v55 = vmax.f32 %v1889_v53, %v1909_v54 }
 0x4cf   :  { %1912 = vmax.xlane.f32.xlu1 %v1911_v55 }
 0x542   :  { %v1913_v57 = vpop.xlane.xlu1 %1912 }
 0x543   :  { %v1914_v58 = vsub.f32 %v1889_v53, %v1913_v57  ;;  %v1915_v34 = vsub.f32 %v1909_v54, %v1913_v57 }
 0x545   :  { %v1916_v35 = vmul.f32 1.442695, %v1914_v58  ;;  %v1918_v46 = vmul.f32 1.442695, %v1915_v34 }
 0x547   :  { %2092 = vpow2.f32 %v1916_v35 }
 0x548   :  { %2094 = vpow2.f32 %v1918_v46 }
 0x54d   :  { %v2093_v56 = vpop.eup %2092 }
 0x54e   :  { %v2095_v59 = vpop.eup %2094 }
 0x54f   :  { %v1920_v60 = vadd.f32 %v2095_v59, %v2093_v56 }
 0x551   :  { %1921 = vadd.xlane.f32.xlu2 %v1920_v60 }
 0x5c4   :  { %v1922_v61 = vpop.xlane.xlu2 %1921 }
 0x5c5   :  { %2096 = vlog2.f32 %v1922_v61 }
 0x5cb   :  { %v2097_v62 = vpop.eup %2096 }
 0x5cc   :  { %v1924_v43 = vmul.f32 0.6931472, %v2097_v62 }
 0x5ce   :  { %v1925_v0 = vsub.f32 %v1914_v58, %v1924_v43  ;;  %v1926_v1 = vsub.f32 %v1915_v34, %v1924_v43 }
 0x5d0   :  { %1927 = vst [vmem:[#allocation4] sm:$0xff] %v1925_v0 }
 0x5d1   :  { %1928 = vst [vmem:[#allocation4 + $0x8] sm:$0xff] %v1926_v1 }
 0x5d2   :  { %1961 = dma.vmem_to_hbm [thread:$0]  %s1957_s1, 256, %s1959_s27, [#allocation5]  }
 0x5d3   :  { %2196 = dma.done.wait [#allocation5], 256  }
 0x5d4   :  { %2197 = vsyncadd [#allocation5], 4294967040 }
 0x5d5   :  { %2198 = dma.done.wait [#allocation7], 256  }
 0x5d6   :  { %2199 = vsyncadd [#allocation7], 4294967040 }
 0x5d7   :  { %2200 = dma.done.wait [#allocation10], 128  }
 0x5d8   :  { %2201 = vsyncadd [#allocation10], 4294967168 }
 0x5d9   :  { %2011 = vsyncpa [#allocation5], 1 }
 0x5da   :  { %2012 = vsyncpa [#allocation7], 1 }
 0x5db   :  { %2013 = vsyncpa [#allocation10], 1 }

// kernel: tpu_custom_call.1
= control target key start
LH: loop header
LB: loop body
LE: loop exit
PB: predicated region body
PF: predicated region fallthrough
CT: control target
= control target key end

     0   :  { %s4131_s0 = inlined_call_operand.vmem [shape: f32[1,8,32], index: 0, kind: input, shape index: {}]   ;;  %s4132_s1 = inlined_call_operand.vmem [shape: f32[8,128], index: 1, kind: input, shape index: {}]   ;;  %s4133_s2 = inlined_call_operand.vmem [shape: f32[8,128], index: 2, kind: input, shape index: {}]   ;;  %s4134_s3 = inlined_call_operand.vmem [shape: f32[8,16,256], index: 3, kind: input, shape index: {}]   ;;  %s4135_s4 = inlined_call_operand.vmem [shape: f32[8,256,16], index: 4, kind: input, shape index: {}]   ;;  %s4136_s5 = inlined_call_operand.vmem [shape: f32[160,512], index: 5, kind: input, shape index: {}]   ;;  %s4137_s6 = inlined_call_operand.vmem [shape: f32[1,512], index: 6, kind: input, shape index: {}]   ;;  %s4138_s7 = inlined_call_operand.vmem [shape: f32[256,256], index: 7, kind: input, shape index: {}]   ;;  %s4139_s8 = inlined_call_operand.vmem [shape: f32[1,256], index: 8, kind: input, shape index: {}]   ;;  %s4140_s9 = inlined_call_operand.vmem [shape: f32[512,128], index: 9, kind: input, shape index: {}]   ;;  %s4141_s10 = inlined_call_operand.vmem [shape: f32[1,128], index: 10, kind: input, shape index: {}]   ;;  %s4142_s11 = inlined_call_operand.vmem [shape: f32[128,256], index: 11, kind: input, shape index: {}]   ;;  %s4143_s12 = inlined_call_operand.vmem [shape: f32[1,256], index: 12, kind: input, shape index: {}]   ;;  %s4144_s13 = inlined_call_operand.hbm [shape: f32[1,8,256], index: 13, kind: output, shape index: {0}]   ;;  %s4145_s14 = inlined_call_operand.hbm [shape: f32[1,8,16], index: 14, kind: output, shape index: {1}]   ;;  %s4146_s15 = inlined_call_operand.hbm [shape: f32[8,128], index: 15, kind: output, shape index: {2}]   ;;  %s4147_s16 = inlined_call_operand.hbm [shape: f32[8,128], index: 16, kind: output, shape index: {3}]  }
   0x1   :  { %4148 = sst [smem:[#allocation14_spill]] %s4131_s0 }
   0x2   :  { %22 = vsyncpa [#allocation5], 0 }
   0x3   :  { %23 = vsyncpa [#allocation7], 0  ;;  %v140_v0 = vld [vmem:[%s4136_s5 + $0x270] sm:$0xff]  ;;  %v141_v1 = vld [vmem:[%s4136_s5 + $0x278] sm:$0xff] }
   0x4   :  { %v136_v2 = vld [vmem:[%s4136_s5 + $0x250] sm:$0xff]  ;;  %182 = vmatpush.msra.mxu2 %v140_v0  ;;  %202 = vmatpush.msra.mxu3 %v141_v1  ;;  %v137_v3 = vld [vmem:[%s4136_s5 + $0x258] sm:$0xff]  ;;  %v138_v8 = vld [vmem:[%s4136_s5 + $0x260] sm:$0xff] }
   0x5   :  { %v132_v4 = vld [vmem:[%s4136_s5 + $0x230] sm:$0xff]  ;;  %v133_v5 = vld [vmem:[%s4136_s5 + $0x238] sm:$0xff]  ;;  %v139_v10 = vld [vmem:[%s4136_s5 + $0x268] sm:$0xff]  ;;  %142 = vmatpush.msra.mxu0 %v138_v8 }
   0x6   :  { %183 = vmatpush.msra.mxu2 %v136_v2  ;;  %203 = vmatpush.msra.mxu3 %v137_v3  ;;  %v128_v6 = vld [vmem:[%s4136_s5 + $0x210] sm:$0xff]  ;;  %v129_v7 = vld [vmem:[%s4136_s5 + $0x218] sm:$0xff]  ;;  %v134_v12 = vld [vmem:[%s4136_s5 + $0x240] sm:$0xff] }
   0x7   :  { %v124_v9 = vld [vmem:[%s4136_s5 + $0x1f0] sm:$0xff]  ;;  %v125_v11 = vld [vmem:[%s4136_s5 + $0x1f8] sm:$0xff]  ;;  %162 = vmatpush.msra.mxu1 %v139_v10  ;;  %v135_v13 = vld [vmem:[%s4136_s5 + $0x248] sm:$0xff]  ;;  %143 = vmatpush.msra.mxu0 %v134_v12 }
   0x8   :  { %184 = vmatpush.msra.mxu2 %v132_v4  ;;  %204 = vmatpush.msra.mxu3 %v133_v5  ;;  %v130_v14 = vld [vmem:[%s4136_s5 + $0x220] sm:$0xff]  ;;  %v131_v15 = vld [vmem:[%s4136_s5 + $0x228] sm:$0xff]  ;;  %v120_v16 = vld [vmem:[%s4136_s5 + $0x1d0] sm:$0xff] }
   0x9   :  { %v121_v17 = vld [vmem:[%s4136_s5 + $0x1d8] sm:$0xff]  ;;  %163 = vmatpush.msra.mxu1 %v135_v13  ;;  %v126_v18 = vld [vmem:[%s4136_s5 + $0x200] sm:$0xff]  ;;  %v127_v19 = vld [vmem:[%s4136_s5 + $0x208] sm:$0xff]  ;;  %144 = vmatpush.msra.mxu0 %v130_v14 }
   0xa   :  { %185 = vmatpush.msra.mxu2 %v128_v6  ;;  %205 = vmatpush.msra.mxu3 %v129_v7  ;;  %v116_v20 = vld [vmem:[%s4136_s5 + $0x1b0] sm:$0xff]  ;;  %v117_v21 = vld [vmem:[%s4136_s5 + $0x1b8] sm:$0xff]  ;;  %v122_v22 = vld [vmem:[%s4136_s5 + $0x1e0] sm:$0xff] }
   0xb   :  { %164 = vmatpush.msra.mxu1 %v131_v15  ;;  %v123_v23 = vld [vmem:[%s4136_s5 + $0x1e8] sm:$0xff]  ;;  %v112_v24 = vld [vmem:[%s4136_s5 + $0x190] sm:$0xff]  ;;  %v113_v25 = vld [vmem:[%s4136_s5 + $0x198] sm:$0xff]  ;;  %145 = vmatpush.msra.mxu0 %v126_v18 }
   0xc   :  { %186 = vmatpush.msra.mxu2 %v124_v9  ;;  %206 = vmatpush.msra.mxu3 %v125_v11  ;;  %v118_v26 = vld [vmem:[%s4136_s5 + $0x1c0] sm:$0xff]  ;;  %v119_v27 = vld [vmem:[%s4136_s5 + $0x1c8] sm:$0xff]  ;;  %v108_v28 = vld [vmem:[%s4136_s5 + $0x170] sm:$0xff] }
   0xd   :  { %165 = vmatpush.msra.mxu1 %v127_v19  ;;  %v109_v29 = vld [vmem:[%s4136_s5 + $0x178] sm:$0xff]  ;;  %146 = vmatpush.msra.mxu0 %v122_v22  ;;  %v114_v30 = vld [vmem:[%s4136_s5 + $0x1a0] sm:$0xff]  ;;  %v115_v31 = vld [vmem:[%s4136_s5 + $0x1a8] sm:$0xff] }
   0xe   :  { %187 = vmatpush.msra.mxu2 %v120_v16  ;;  %207 = vmatpush.msra.mxu3 %v121_v17  ;;  %v104_v32 = vld [vmem:[%s4136_s5 + $0x150] sm:$0xff]  ;;  %v105_v33 = vld [vmem:[%s4136_s5 + $0x158] sm:$0xff]  ;;  %v110_v34 = vld [vmem:[%s4136_s5 + $0x180] sm:$0xff] }
   0xf   :  { %166 = vmatpush.msra.mxu1 %v123_v23  ;;  %147 = vmatpush.msra.mxu0 %v118_v26  ;;  %v111_v35 = vld [vmem:[%s4136_s5 + $0x188] sm:$0xff]  ;;  %v100_v36 = vld [vmem:[%s4136_s5 + $0x130] sm:$0xff]  ;;  %v101_v37 = vld [vmem:[%s4136_s5 + $0x138] sm:$0xff] }
  0x10   :  { %188 = vmatpush.msra.mxu2 %v116_v20  ;;  %208 = vmatpush.msra.mxu3 %v117_v21  ;;  %v106_v38 = vld [vmem:[%s4136_s5 + $0x160] sm:$0xff]  ;;  %v107_v39 = vld [vmem:[%s4136_s5 + $0x168] sm:$0xff]  ;;  %v96_v40 = vld [vmem:[%s4136_s5 + $0x110] sm:$0xff] }
  0x11   :  { %167 = vmatpush.msra.mxu1 %v119_v27  ;;  %148 = vmatpush.msra.mxu0 %v114_v30  ;;  %v97_v41 = vld [vmem:[%s4136_s5 + $0x118] sm:$0xff]  ;;  %v102_v42 = vld [vmem:[%s4136_s5 + $0x140] sm:$0xff]  ;;  %v103_v43 = vld [vmem:[%s4136_s5 + $0x148] sm:$0xff] }
  0x12   :  { %189 = vmatpush.msra.mxu2 %v112_v24  ;;  %209 = vmatpush.msra.mxu3 %v113_v25  ;;  %v92_v44 = vld [vmem:[%s4136_s5 + $0xf0] sm:$0xff]  ;;  %v93_v45 = vld [vmem:[%s4136_s5 + $0xf8] sm:$0xff]  ;;  %v98_v46 = vld [vmem:[%s4136_s5 + $0x120] sm:$0xff] }
  0x13   :  { %168 = vmatpush.msra.mxu1 %v115_v31  ;;  %149 = vmatpush.msra.mxu0 %v110_v34  ;;  %v99_v47 = vld [vmem:[%s4136_s5 + $0x128] sm:$0xff]  ;;  %v88_v48 = vld [vmem:[%s4136_s5 + $0xd0] sm:$0xff]  ;;  %v89_v49 = vld [vmem:[%s4136_s5 + $0xd8] sm:$0xff] }
  0x14   :  { %190 = vmatpush.msra.mxu2 %v108_v28  ;;  %210 = vmatpush.msra.mxu3 %v109_v29  ;;  %v94_v50 = vld [vmem:[%s4136_s5 + $0x100] sm:$0xff]  ;;  %v95_v51 = vld [vmem:[%s4136_s5 + $0x108] sm:$0xff]  ;;  %v84_v52 = vld [vmem:[%s4136_s5 + $0xb0] sm:$0xff] }
  0x15   :  { %169 = vmatpush.msra.mxu1 %v111_v35  ;;  %150 = vmatpush.msra.mxu0 %v106_v38  ;;  %v85_v53 = vld [vmem:[%s4136_s5 + $0xb8] sm:$0xff]  ;;  %v90_v54 = vld [vmem:[%s4136_s5 + $0xe0] sm:$0xff]  ;;  %v91_v55 = vld [vmem:[%s4136_s5 + $0xe8] sm:$0xff] }
  0x16   :  { %191 = vmatpush.msra.mxu2 %v104_v32  ;;  %211 = vmatpush.msra.mxu3 %v105_v33 }
  0x17   :  { %170 = vmatpush.msra.mxu1 %v107_v39  ;;  %151 = vmatpush.msra.mxu0 %v102_v42 }
  0x18   :  { %192 = vmatpush.msra.mxu2 %v100_v36  ;;  %212 = vmatpush.msra.mxu3 %v101_v37 }
  0x19   :  { %171 = vmatpush.msra.mxu1 %v103_v43  ;;  %152 = vmatpush.msra.mxu0 %v98_v46 }
  0x1a   :  { %193 = vmatpush.msra.mxu2 %v96_v40  ;;  %213 = vmatpush.msra.mxu3 %v97_v41 }
  0x1b   :  { %172 = vmatpush.msra.mxu1 %v99_v47 }
  0x1c   :  { %194 = vmatpush.msra.mxu2 %v92_v44  ;;  %214 = vmatpush.msra.mxu3 %v93_v45 }
  0x1e   :  { %195 = vmatpush.msra.mxu2 %v88_v48  ;;  %215 = vmatpush.msra.mxu3 %v89_v49 }
  0x1f   :  { %24 = vsyncpa [#allocation10], 0  ;;  %v80_v56 = vld [vmem:[%s4136_s5 + $0x90] sm:$0xff]  ;;  %v81_v57 = vld [vmem:[%s4136_s5 + $0x98] sm:$0xff]  ;;  %153 = vmatpush.msra.mxu0 %v94_v50  ;;  %173 = vmatpush.msra.mxu1 %v95_v51  ;;  %s4149_s17 = sld [smem:[#allocation14_spill]]  ;;  %vm222_vm0 = vcmask 261120  }
  0x20   :  { %196 = vmatpush.msra.mxu2 %v84_v52  ;;  %216 = vmatpush.msra.mxu3 %v85_v53  ;;  %v55_v58 = vld [vmem:[%s4132_s1] sm:$0xff]  ;;  %v75_v60 = vld [vmem:[%s4136_s5 + $0x68] sm:$0xff]  ;;  %v76_v10 = vld [vmem:[%s4136_s5 + $0x70] sm:$0xff]  ;;  %vm538_vm13 = vcmask 1040384   ;;  %vm540_vm14 = vcmask 1041409   ;;  %vm555_vm15 = vcmask 1046534  }
  0x21   :  { %v74_v59 = vld [vmem:[%s4136_s5 + $0x60] sm:$0xff]  ;;  %154 = vmatpush.msra.mxu0 %v90_v54  ;;  %174 = vmatpush.msra.mxu1 %v91_v55  ;;  %v87_v62 = vld [vmem:[%s4136_s5 + $0xc8] sm:$0xff]  ;;  %v77_v11 = vld [vmem:[%s4136_s5 + $0x78] sm:$0xff]  ;;  %s1969_s19 = sshll.u32 %s4145_s14, 4  ;;  %s1991_s25 = sshll.u32 %s4147_s16, 4  ;;  %s1970_s19 = int_to_ptr.hbm [resolvable:$true] %s1969_s19  ;;  %s1992_s25 = int_to_ptr.hbm [resolvable:$true] %s1991_s25 }
  0x22   :  { %197 = vmatpush.msra.mxu2 %v80_v56  ;;  %217 = vmatpush.msra.mxu3 %v81_v57  ;;  %v86_v61 = vld [vmem:[%s4136_s5 + $0xc0] sm:$0xff]  ;;  %v71_v0 = vld [vmem:[%s4136_s5 + $0x48] sm:$0xff]  ;;  %v72_v12 = vld [vmem:[%s4136_s5 + $0x50] sm:$0xff]  ;;  %s2204_s26 = smov [#allocation9]   ;;  %s2205_s14 = smov [#allocation4]  }
  0x23   :  { %198 = vmatmul.f32.vlgmr.msra.gmra.mxu2 %v55_v58  ;;  %218 = vmatmul.f32.vlgmr.msra.gmra.mxu3 %v55_v58  ;;  %v70_v63 = vld [vmem:[%s4136_s5 + $0x40] sm:$0xff]  ;;  %v83_v2 = vld [vmem:[%s4136_s5 + $0xa8] sm:$0xff]  ;;  %v73_v13 = vld [vmem:[%s4136_s5 + $0x58] sm:$0xff]  ;;  %s1956_s1 = sshll.u32 %s2205_s14, 4  ;;  %s1958_s27 = sshll.u32 %s4144_s13, 4  ;;  %s1957_s1 = int_to_ptr.vmem [resolvable:$true] %s1956_s1  ;;  %s1959_s27 = int_to_ptr.hbm [resolvable:$true] %s1958_s27 }
  0x24   :  { %238 = vmatpush.msrb.mxu2 %v74_v59  ;;  %258 = vmatpush.msrb.mxu3 %v75_v60  ;;  %v82_v1 = vld [vmem:[%s4136_s5 + $0xa0] sm:$0xff]  ;;  %v67_v4 = vld [vmem:[%s4136_s5 + $0x28] sm:$0xff]  ;;  %v68_v14 = vld [vmem:[%s4136_s5 + $0x30] sm:$0xff] }
  0x25   :  { %v66_v3 = vld [vmem:[%s4136_s5 + $0x20] sm:$0xff]  ;;  %155 = vmatpush.msra.mxu0 %v86_v61  ;;  %175 = vmatpush.msra.mxu1 %v87_v62  ;;  %v79_v6 = vld [vmem:[%s4136_s5 + $0x88] sm:$0xff]  ;;  %v69_v15 = vld [vmem:[%s4136_s5 + $0x38] sm:$0xff] }
  0x26   :  { %239 = vmatpush.msrb.mxu2 %v70_v63  ;;  %259 = vmatpush.msrb.mxu3 %v71_v0  ;;  %v78_v5 = vld [vmem:[%s4136_s5 + $0x80] sm:$0xff]  ;;  %v63_v8 = vld [vmem:[%s4136_s5 + $0x8] sm:$0xff]  ;;  %v64_v16 = vld [vmem:[%s4136_s5 + $0x10] sm:$0xff] }
  0x27   :  { %v62_v7 = vld [vmem:[%s4136_s5] sm:$0xff]  ;;  %156 = vmatpush.msra.mxu0 %v82_v1  ;;  %176 = vmatpush.msra.mxu1 %v83_v2  ;;  %v65_v17 = vld [vmem:[%s4136_s5 + $0x18] sm:$0xff]  ;;  %v445_v18 = vld [vmem:[%s4138_s7 + $0x1f0] sm:$0xff]  ;;  %s1980_s5 = sshll.u32 %s4146_s15, 4  ;;  %s1981_s5 = int_to_ptr.hbm [resolvable:$true] %s1980_s5 }
  0x28   :  { %240 = vmatpush.msrb.mxu2 %v66_v3  ;;  %260 = vmatpush.msrb.mxu3 %v67_v4  ;;  %v59_v9 = vld [vmem:[%s4149_s17] sm:$0xff]  ;;  %v446_v19 = vld [vmem:[%s4138_s7 + $0x1f8] sm:$0xff]  ;;  %v444_v21 = vld [vmem:[%s4138_s7 + $0x1e8] sm:$0xff] }
  0x29   :  { %157 = vmatpush.msra.mxu0 %v78_v5  ;;  %177 = vmatpush.msra.mxu1 %v79_v6  ;;  %v443_v20 = vld [vmem:[%s4138_s7 + $0x1e0] sm:$0xff]  ;;  %v441_v22 = vld [vmem:[%s4138_s7 + $0x1d0] sm:$0xff]  ;;  %v442_v23 = vld [vmem:[%s4138_s7 + $0x1d8] sm:$0xff] }
  0x2a   :  { %241 = vmatpush.msrb.mxu2 %v62_v7  ;;  %261 = vmatpush.msrb.mxu3 %v63_v8  ;;  %v439_v24 = vld [vmem:[%s4138_s7 + $0x1c0] sm:$0xff]  ;;  %v440_v25 = vld [vmem:[%s4138_s7 + $0x1c8] sm:$0xff]  ;;  %v437_v26 = vld [vmem:[%s4138_s7 + $0x1b0] sm:$0xff] }
  0x2b   :  { %2014 = vmatmul.msk.f32.vlgmr.msrb.gmra.mxu2 %vm222_vm0, %v59_v9  ;;  %2015 = vmatmul.msk.f32.vlgmr.msrb.gmra.mxu3 %vm222_vm0, %v59_v9  ;;  %v438_v27 = vld [vmem:[%s4138_s7 + $0x1b8] sm:$0xff]  ;;  %v413_v28 = vld [vmem:[%s4138_s7 + $0xf0] sm:$0xff]  ;;  %v435_v30 = vld [vmem:[%s4138_s7 + $0x1a0] sm:$0xff] }
  0x2c   :  { %278 = vmatpush.msra.mxu2 %v76_v10  ;;  %298 = vmatpush.msra.mxu3 %v77_v11  ;;  %v414_v29 = vld [vmem:[%s4138_s7 + $0xf8] sm:$0xff]  ;;  %v436_v31 = vld [vmem:[%s4138_s7 + $0x1a8] sm:$0xff]  ;;  %v411_v32 = vld [vmem:[%s4138_s7 + $0xe0] sm:$0xff] }
  0x2d   :  { %158 = vmatmul.f32.vlgmr.msra.gmra.mxu0 %v55_v58  ;;  %178 = vmatmul.f32.vlgmr.msra.gmra.mxu1 %v55_v58  ;;  %v412_v33 = vld [vmem:[%s4138_s7 + $0xe8] sm:$0xff]  ;;  %v433_v34 = vld [vmem:[%s4138_s7 + $0x190] sm:$0xff]  ;;  %v434_v35 = vld [vmem:[%s4138_s7 + $0x198] sm:$0xff] }
  0x2e   :  { %279 = vmatpush.msra.mxu2 %v72_v12  ;;  %299 = vmatpush.msra.mxu3 %v73_v13  ;;  %v409_v36 = vld [vmem:[%s4138_s7 + $0xd0] sm:$0xff]  ;;  %v410_v37 = vld [vmem:[%s4138_s7 + $0xd8] sm:$0xff]  ;;  %v431_v38 = vld [vmem:[%s4138_s7 + $0x180] sm:$0xff] }
  0x2f   :  { %447 = vmatpush.msrb.mxu0 %v445_v18  ;;  %467 = vmatpush.msrb.mxu1 %v446_v19  ;;  %v432_v39 = vld [vmem:[%s4138_s7 + $0x188] sm:$0xff]  ;;  %v407_v40 = vld [vmem:[%s4138_s7 + $0xc0] sm:$0xff]  ;;  %v429_v42 = vld [vmem:[%s4138_s7 + $0x170] sm:$0xff] }
  0x30   :  { %280 = vmatpush.msra.mxu2 %v68_v14  ;;  %300 = vmatpush.msra.mxu3 %v69_v15  ;;  %v408_v41 = vld [vmem:[%s4138_s7 + $0xc8] sm:$0xff]  ;;  %v430_v43 = vld [vmem:[%s4138_s7 + $0x178] sm:$0xff]  ;;  %v405_v44 = vld [vmem:[%s4138_s7 + $0xb0] sm:$0xff] }
  0x31   :  { %448 = vmatpush.msrb.mxu0 %v443_v20  ;;  %468 = vmatpush.msrb.mxu1 %v444_v21  ;;  %v406_v45 = vld [vmem:[%s4138_s7 + $0xb8] sm:$0xff]  ;;  %v427_v48 = vld [vmem:[%s4138_s7 + $0x160] sm:$0xff]  ;;  %v428_v49 = vld [vmem:[%s4138_s7 + $0x168] sm:$0xff] }
  0x32   :  { %281 = vmatpush.msra.mxu2 %v64_v16  ;;  %301 = vmatpush.msra.mxu3 %v65_v17  ;;  %v403_v50 = vld [vmem:[%s4138_s7 + $0xa0] sm:$0xff]  ;;  %v404_v51 = vld [vmem:[%s4138_s7 + $0xa8] sm:$0xff]  ;;  %v425_v52 = vld [vmem:[%s4138_s7 + $0x150] sm:$0xff] }
  0x33   :  { %2016 = vmatmul.msk.f32.vlgmr.msra.gmra.mxu2 %vm222_vm0, %v59_v9  ;;  %2017 = vmatmul.msk.f32.vlgmr.msra.gmra.mxu3 %vm222_vm0, %v59_v9  ;;  %v426_v53 = vld [vmem:[%s4138_s7 + $0x158] sm:$0xff]  ;;  %v401_v54 = vld [vmem:[%s4138_s7 + $0x90] sm:$0xff]  ;;  %v2656_v56 = vld [vmem:[%s4137_s6] sm:$0xf]  ;;  %vm543_vm0 = vcmask 1042434  }
  0x34   :  { %449 = vmatpush.msrb.mxu0 %v441_v22  ;;  %469 = vmatpush.msrb.mxu1 %v442_v23  ;;  %v402_v55 = vld [vmem:[%s4138_s7 + $0x98] sm:$0xff]  ;;  %v423_v57 = vld [vmem:[%s4138_s7 + $0x140] sm:$0xff]  ;;  %v424_v58 = vld [vmem:[%s4138_s7 + $0x148] sm:$0xff]  ;;  %v308_v1 = vperm.slane %v2656_v56, 0  ;;  %v309_v2 = vperm.slane %v2656_v56, 1 }
  0x35   :  { %487 = vmatpush.msrb.mxu2 %v413_v28  ;;  %507 = vmatpush.msrb.mxu3 %v414_v29  ;;  %v399_v59 = vld [vmem:[%s4138_s7 + $0x80] sm:$0xff]  ;;  %v400_v60 = vld [vmem:[%s4138_s7 + $0x88] sm:$0xff]  ;;  %v421_v63 = vld [vmem:[%s4138_s7 + $0x130] sm:$0xff] }
  0x36   :  { %450 = vmatpush.msrb.mxu0 %v439_v24  ;;  %470 = vmatpush.msrb.mxu1 %v440_v25  ;;  %v422_v0 = vld [vmem:[%s4138_s7 + $0x138] sm:$0xff]  ;;  %v397_v3 = vld [vmem:[%s4138_s7 + $0x70] sm:$0xff]  ;;  %v419_v7 = vld [vmem:[%s4138_s7 + $0x120] sm:$0xff] }
  0x37   :  { %488 = vmatpush.msrb.mxu2 %v411_v32  ;;  %508 = vmatpush.msrb.mxu3 %v412_v33  ;;  %v398_v4 = vld [vmem:[%s4138_s7 + $0x78] sm:$0xff]  ;;  %v420_v8 = vld [vmem:[%s4138_s7 + $0x128] sm:$0xff]  ;;  %v395_v11 = vld [vmem:[%s4138_s7 + $0x60] sm:$0xff] }
  0x38   :  { %451 = vmatpush.msrb.mxu0 %v437_v26  ;;  %471 = vmatpush.msrb.mxu1 %v438_v27  ;;  %v396_v12 = vld [vmem:[%s4138_s7 + $0x68] sm:$0xff]  ;;  %v417_v13 = vld [vmem:[%s4138_s7 + $0x110] sm:$0xff]  ;;  %v418_v14 = vld [vmem:[%s4138_s7 + $0x118] sm:$0xff]  ;;  %v311_v27 = vperm.slane %v2656_v56, 3 }
  0x39   :  { %489 = vmatpush.msrb.mxu2 %v409_v36  ;;  %509 = vmatpush.msrb.mxu3 %v410_v37  ;;  %v393_v15 = vld [vmem:[%s4138_s7 + $0x50] sm:$0xff]  ;;  %v394_v16 = vld [vmem:[%s4138_s7 + $0x58] sm:$0xff]  ;;  %v415_v19 = vld [vmem:[%s4138_s7 + $0x100] sm:$0xff] }
  0x3a   :  { %452 = vmatpush.msrb.mxu0 %v435_v30  ;;  %472 = vmatpush.msrb.mxu1 %v436_v31  ;;  %v416_v20 = vld [vmem:[%s4138_s7 + $0x108] sm:$0xff]  ;;  %v391_v23 = vld [vmem:[%s4138_s7 + $0x40] sm:$0xff]  ;;  %v389_v25 = vld [vmem:[%s4138_s7 + $0x30] sm:$0xff] }
  0x3b   :  { %490 = vmatpush.msrb.mxu2 %v407_v40  ;;  %510 = vmatpush.msrb.mxu3 %v408_v41  ;;  %v392_v24 = vld [vmem:[%s4138_s7 + $0x48] sm:$0xff]  ;;  %v390_v26 = vld [vmem:[%s4138_s7 + $0x38] sm:$0xff]  ;;  %v387_v28 = vld [vmem:[%s4138_s7 + $0x20] sm:$0xff] }
  0x3c   :  { %453 = vmatpush.msrb.mxu0 %v433_v34  ;;  %473 = vmatpush.msrb.mxu1 %v434_v35  ;;  %v388_v29 = vld [vmem:[%s4138_s7 + $0x28] sm:$0xff]  ;;  %v385_v32 = vld [vmem:[%s4138_s7 + $0x10] sm:$0xff]  ;;  %v386_v33 = vld [vmem:[%s4138_s7 + $0x18] sm:$0xff] }
  0x3d   :  { %491 = vmatpush.msrb.mxu2 %v405_v44  ;;  %511 = vmatpush.msrb.mxu3 %v406_v45  ;;  %v383_v35 = vld [vmem:[%s4138_s7] sm:$0xff]  ;;  %v384_v36 = vld [vmem:[%s4138_s7 + $0x8] sm:$0xff]  ;;  %v592_v44 = vld [vmem:[%s4135_s4 + $0xf8] sm:$0xff] }
  0x3e   :  { %454 = vmatpush.msrb.mxu0 %v431_v38  ;;  %474 = vmatpush.msrb.mxu1 %v432_v39  ;;  %v575_v45 = vld [vmem:[%s4135_s4 + $0x70] sm:$0xff] }
  0x3f   :  { %492 = vmatpush.msrb.mxu2 %v403_v50  ;;  %512 = vmatpush.msrb.mxu3 %v404_v51  ;;  %v574_v50 = vld [vmem:[%s4135_s4 + $0x68] sm:$0xff] }
  0x40   :  { %455 = vmatpush.msrb.mxu0 %v429_v42  ;;  %475 = vmatpush.msrb.mxu1 %v430_v43  ;;  %v576_v43 = vld [vmem:[%s4135_s4 + $0x78] sm:$0xff]  ;;  %v590_v51 = vld [vmem:[%s4135_s4 + $0xe8] sm:$0xff] }
  0x41   :  { %493 = vmatpush.msrb.mxu2 %v401_v54  ;;  %513 = vmatpush.msrb.mxu3 %v402_v55  ;;  %v310_v54 = vperm.slane %v2656_v56, 2  ;;  %v623_v55 = vld [vmem:[%s4135_s4 + $0x1f0] sm:$0xff]  ;;  %v622_v56 = vld [vmem:[%s4135_s4 + $0x1e8] sm:$0xff] }
  0x42   :  { %456 = vmatpush.msrb.mxu0 %v427_v48  ;;  %476 = vmatpush.msrb.mxu1 %v428_v49  ;;  %v608_v48 = vld [vmem:[%s4135_s4 + $0x178] sm:$0xff] }
  0x43   :  { %494 = vmatpush.msrb.mxu2 %v399_v59  ;;  %514 = vmatpush.msrb.mxu3 %v400_v60  ;;  %v624_v49 = vld [vmem:[%s4135_s4 + $0x1f8] sm:$0xff]  ;;  %v605_v59 = vld [vmem:[%s4135_s4 + $0x160] sm:$0xff] }
  0x44   :  { %457 = vmatpush.msrb.mxu0 %v425_v52  ;;  %477 = vmatpush.msrb.mxu1 %v426_v53  ;;  %v607_v52 = vld [vmem:[%s4135_s4 + $0x170] sm:$0xff]  ;;  %v621_v60 = vld [vmem:[%s4135_s4 + $0x1e0] sm:$0xff] }
  0x45   :  { %495 = vmatpush.msrb.mxu2 %v397_v3  ;;  %515 = vmatpush.msrb.mxu3 %v398_v4  ;;  %v604_v3 = vld [vmem:[%s4135_s4 + $0x158] sm:$0xff] }
  0x46   :  { %458 = vmatpush.msrb.mxu0 %v423_v57  ;;  %478 = vmatpush.msrb.mxu1 %v424_v58  ;;  %v573_v57 = vld [vmem:[%s4135_s4 + $0x60] sm:$0xff]  ;;  %v620_v4 = vld [vmem:[%s4135_s4 + $0x1d8] sm:$0xff] }
  0x47   :  { %496 = vmatpush.msrb.mxu2 %v395_v11  ;;  %516 = vmatpush.msrb.mxu3 %v396_v12  ;;  %v589_v58 = vld [vmem:[%s4135_s4 + $0xe0] sm:$0xff]  ;;  %v619_v11 = vld [vmem:[%s4135_s4 + $0x1d0] sm:$0xff] }
  0x48   :  { %459 = vmatpush.msrb.mxu0 %v421_v63  ;;  %479 = vmatpush.msrb.mxu1 %v422_v0  ;;  %v588_v63 = vld [vmem:[%s4135_s4 + $0xd8] sm:$0xff] }
  0x49   :  { %497 = vmatpush.msrb.mxu2 %v393_v15  ;;  %517 = vmatpush.msrb.mxu3 %v394_v16 }
  0x4a   :  { %460 = vmatpush.msrb.mxu0 %v419_v7  ;;  %480 = vmatpush.msrb.mxu1 %v420_v8  ;;  %v571_v7 = vld [vmem:[%s4135_s4 + $0x50] sm:$0xff] }
  0x4b   :  { %498 = vmatpush.msrb.mxu2 %v391_v23  ;;  %518 = vmatpush.msrb.mxu3 %v392_v24  ;;  %v587_v8 = vld [vmem:[%s4135_s4 + $0xd0] sm:$0xff]  ;;  %v585_v23 = vld [vmem:[%s4135_s4 + $0xc0] sm:$0xff] }
  0x4c   :  { %461 = vmatpush.msrb.mxu0 %v417_v13  ;;  %481 = vmatpush.msrb.mxu1 %v418_v14  ;;  %v570_v13 = vld [vmem:[%s4135_s4 + $0x48] sm:$0xff] }
  0x4d   :  { %499 = vmatpush.msrb.mxu2 %v389_v25  ;;  %519 = vmatpush.msrb.mxu3 %v390_v26  ;;  %v586_v14 = vld [vmem:[%s4135_s4 + $0xc8] sm:$0xff]  ;;  %v601_v26 = vld [vmem:[%s4135_s4 + $0x140] sm:$0xff] }
  0x4e   :  { %462 = vmatpush.msrb.mxu0 %v415_v19  ;;  %482 = vmatpush.msrb.mxu1 %v416_v20 }
  0x4f   :  { %500 = vmatpush.msrb.mxu2 %v387_v28  ;;  %520 = vmatpush.msrb.mxu3 %v388_v29  ;;  %v57_v29 = vld [vmem:[%s4133_s2] sm:$0xff]  ;;  %s2203_s2 = smov [#allocation8]  }
  0x50   :  { %821 = vmatpush.msra.mxu0 %v576_v43  ;;  %841 = vmatpush.msra.mxu1 %v592_v44  ;;  %v583_v43 = vld [vmem:[%s4135_s4 + $0xb0] sm:$0xff]  ;;  %s1978_s20 = sshll.u32 %s2203_s2, 4  ;;  %s1979_s20 = int_to_ptr.vmem [resolvable:$true] %s1978_s20 }
  0x51   :  { %501 = vmatpush.msrb.mxu2 %v385_v32  ;;  %521 = vmatpush.msrb.mxu3 %v386_v33  ;;  %v687_v33 = vld [vmem:[%s4135_s4 + $0x3f0] sm:$0xff] }
  0x52   :  { %822 = vmatpush.msra.mxu0 %v575_v45 }
  0x53   :  { %502 = vmatpush.msrb.mxu2 %v383_v35  ;;  %522 = vmatpush.msrb.mxu3 %v384_v36  ;;  %v600_v36 = vld [vmem:[%s4135_s4 + $0x138] sm:$0xff] }
  0x54   :  { %823 = vmatpush.msra.mxu0 %v574_v50 }
  0x55   :  { %865 = vmatpush.msra.mxu2 %v608_v48  ;;  %885 = vmatpush.msra.mxu3 %v624_v49  ;;  %v599_v48 = vld [vmem:[%s4135_s4 + $0x130] sm:$0xff] }
  0x56   :  { %824 = vmatpush.msra.mxu0 %v573_v57  ;;  %v615_v49 = vld [vmem:[%s4135_s4 + $0x1b0] sm:$0xff]  ;;  %v598_v57 = vld [vmem:[%s4135_s4 + $0x128] sm:$0xff] }
  0x57   :  { %866 = vmatpush.msra.mxu2 %v607_v52  ;;  %886 = vmatpush.msra.mxu3 %v623_v55 }
  0x59   :  { %887 = vmatpush.msra.mxu3 %v622_v56 }
  0x5b   :  { %888 = vmatpush.msra.mxu3 %v621_v60  ;;  %v581_v60 = vld [vmem:[%s4135_s4 + $0xa0] sm:$0xff] }
  0x5d   :  { %889 = vmatpush.msra.mxu3 %v620_v4 }
  0x5f   :  { %890 = vmatpush.msra.mxu3 %v619_v11  ;;  %v611_v11 = vld [vmem:[%s4135_s4 + $0x190] sm:$0xff] }
  0xa6   :  { %v2625_v46 = vpop.f32.mrf.mxu2  ;;  %v2627_v47 = vpop.f32.mrf.mxu3 }
  0xaa   :  { %v159_v61 = vpop.f32.mrf.mxu0  ;;  %v179_v62 = vpop.f32.mrf.mxu1 }
  0xae   :  { %v243_v5 = vpop.f32.mrf.mxu2  ;;  %v263_v6 = vpop.f32.mrf.mxu3 }
  0xaf   :  { %v244_v9 = vadd.f32 %v243_v5, %v159_v61  ;;  %v264_v10 = vadd.f32 %v263_v6, %v179_v62  ;;  %v572_v62 = vld [vmem:[%s4135_s4 + $0x58] sm:$0xff] }
  0xb0   :  { %825 = vmatpush.msra.mxu0 %v572_v62  ;;  %v597_v62 = vld [vmem:[%s4135_s4 + $0x120] sm:$0xff] }
  0xb1   :  { %v316_v17 = vadd.f32 %v308_v1, %v244_v9  ;;  %v317_v18 = vadd.f32 %v309_v2, %v264_v10  ;;  %v603_v10 = vld [vmem:[%s4135_s4 + $0x150] sm:$0xff] }
  0xb2   :  { %826 = vmatpush.msra.mxu0 %v571_v7  ;;  %v628_v7 = vld [vmem:[%s4135_s4 + $0x218] sm:$0xff] }
  0xb3   :  { %v2018_v21 = vmul.f32 -1.442695, %v316_v17  ;;  %v2019_v22 = vmul.f32 -1.442695, %v317_v18  ;;  %v602_v17 = vld [vmem:[%s4135_s4 + $0x148] sm:$0xff] }
  0xb4   :  { %v618_v18 = vld [vmem:[%s4135_s4 + $0x1c8] sm:$0xff]  ;;  %827 = vmatpush.msra.mxu0 %v570_v13 }
  0xb5   :  { %2042 = vpow2.f32 %v2018_v21  ;;  %891 = vmatpush.msra.mxu3 %v618_v18  ;;  %v562_v13 = vld [vmem:[%s4135_s4 + $0x8] sm:$0xff] }
  0xb6   :  { %2044 = vpow2.f32 %v2019_v22  ;;  %v303_v30 = vpop.f32.mrf.mxu3  ;;  %v283_v42 = vpop.f32.mrf.mxu2  ;;  %v569_v22 = vld [vmem:[%s4135_s4 + $0x40] sm:$0xff] }
  0xb7   :  { %v304_v31 = vadd.f32 %v303_v30, %v2627_v47  ;;  %v591_v47 = vld [vmem:[%s4135_s4 + $0xf0] sm:$0xff]  ;;  %v284_v53 = vadd.f32 %v283_v42, %v2625_v46  ;;  %v606_v46 = vld [vmem:[%s4135_s4 + $0x168] sm:$0xff]  ;;  %v568_v30 = vld [vmem:[%s4135_s4 + $0x38] sm:$0xff]  ;;  %828 = vmatpush.msra.mxu0 %v569_v22 }
  0xb8   :  { %842 = vmatpush.msra.mxu1 %v591_v47  ;;  %867 = vmatpush.msra.mxu2 %v606_v46  ;;  %v567_v42 = vld [vmem:[%s4135_s4 + $0x30] sm:$0xff]  ;;  %v640_v22 = vld [vmem:[%s4135_s4 + $0x278] sm:$0xff] }
  0xb9   :  { %v319_v34 = vadd.f32 %v311_v27, %v304_v31  ;;  %v318_v1 = vadd.f32 %v310_v54, %v284_v53  ;;  %v617_v27 = vld [vmem:[%s4135_s4 + $0x1c0] sm:$0xff]  ;;  %v584_v31 = vld [vmem:[%s4135_s4 + $0xb8] sm:$0xff]  ;;  %829 = vmatpush.msra.mxu0 %v568_v30  ;;  %v566_v53 = vld [vmem:[%s4135_s4 + $0x28] sm:$0xff] }
  0xba   :  { %843 = vmatpush.msra.mxu1 %v590_v51  ;;  %868 = vmatpush.msra.mxu2 %v605_v59  ;;  %v582_v54 = vld [vmem:[%s4135_s4 + $0xa8] sm:$0xff]  ;;  %v565_v59 = vld [vmem:[%s4135_s4 + $0x20] sm:$0xff] }
  0xbb   :  { %v2043_v37 = vpop.eup %2042  ;;  %v2020_v38 = vmul.f32 -1.442695, %v319_v34  ;;  %892 = vmatpush.msra.mxu3 %v617_v27  ;;  %830 = vmatpush.msra.mxu0 %v567_v42  ;;  %v655_v27 = vld [vmem:[%s4135_s4 + $0x2f0] sm:$0xff]  ;;  %v638_v30 = vld [vmem:[%s4135_s4 + $0x268] sm:$0xff] }
  0xbc   :  { %v2045_v39 = vpop.eup %2044  ;;  %v2746_v40 = vadd.f32 1.0, %v2043_v37  ;;  %844 = vmatpush.msra.mxu1 %v589_v58  ;;  %869 = vmatpush.msra.mxu2 %v604_v3  ;;  %v616_v37 = vld [vmem:[%s4135_s4 + $0x1b8] sm:$0xff]  ;;  %v614_v58 = vld [vmem:[%s4135_s4 + $0x1a8] sm:$0xff]  ;;  %v635_v42 = vld [vmem:[%s4135_s4 + $0x250] sm:$0xff] }
  0xbd   :  { %v2748_v41 = vadd.f32 1.0, %v2045_v39  ;;  %2046 = vpow2.f32 %v2020_v38  ;;  %893 = vmatpush.msra.mxu3 %v616_v37  ;;  %831 = vmatpush.msra.mxu0 %v566_v53  ;;  %v580_v3 = vld [vmem:[%s4135_s4 + $0x98] sm:$0xff]  ;;  %v686_v37 = vld [vmem:[%s4135_s4 + $0x3e8] sm:$0xff] }
  0xbe   :  { %2048 = vrcp.f32 %v2746_v40  ;;  %845 = vmatpush.msra.mxu1 %v588_v63  ;;  %v335_v16 = vand.u32 2147483648, %v2746_v40  ;;  %v333_v21 = vand.u32 2147483647, %v2746_v40  ;;  %870 = vmatpush.msra.mxu2 %v603_v10  ;;  %vm329_vm3 = vweird.f32 %v2746_v40  ;;  %v613_v63 = vld [vmem:[%s4135_s4 + $0x1a0] sm:$0xff]  ;;  %v595_v10 = vld [vmem:[%s4135_s4 + $0x110] sm:$0xff]  ;;  %v636_v38 = vld [vmem:[%s4135_s4 + $0x258] sm:$0xff] }
  0xbf   :  { %2050 = vrcp.f32 %v2748_v41  ;;  %v354_v19 = vand.u32 2147483648, %v2748_v41  ;;  %v352_v25 = vand.u32 2147483647, %v2748_v41  ;;  %vm348_vm4 = vweird.f32 %v2748_v41  ;;  %894 = vmatpush.msra.mxu3 %v615_v49  ;;  %832 = vmatpush.msra.mxu0 %v565_v59  ;;  %v667_v49 = vld [vmem:[%s4135_s4 + $0x350] sm:$0xff]  ;;  %v666_v53 = vld [vmem:[%s4135_s4 + $0x348] sm:$0xff] }
  0xc0   :  { %846 = vmatpush.msra.mxu1 %v587_v8  ;;  %871 = vmatpush.msra.mxu2 %v602_v17  ;;  %v336_v34 = vor.u32 1.1754944e-38, %v335_v16  ;;  %vm334_vm7 = vcmp.eq.f32.partialorder %v333_v21, 8.507059e+37  ;;  %v579_v8 = vld [vmem:[%s4135_s4 + $0x90] sm:$0xff]  ;;  %v610_v16 = vld [vmem:[%s4135_s4 + $0x188] sm:$0xff]  ;;  %v577_v21 = vld [vmem:[%s4135_s4 + $0x80] sm:$0xff] }
  0xc1   :  { %v355_v39 = vor.u32 1.1754944e-38, %v354_v19  ;;  %vm353_vm8 = vcmp.eq.f32.partialorder %v352_v25, 8.507059e+37  ;;  %895 = vmatpush.msra.mxu3 %v614_v58  ;;  %v609_v25 = vld [vmem:[%s4135_s4 + $0x180] sm:$0xff]  ;;  %v647_v59 = vld [vmem:[%s4135_s4 + $0x2b0] sm:$0xff] }
  0xc2   :  { %847 = vmatpush.msra.mxu1 %v586_v14  ;;  %872 = vmatpush.msra.mxu2 %v601_v26  ;;  %v578_v14 = vld [vmem:[%s4135_s4 + $0x88] sm:$0xff]  ;;  %v639_v26 = vld [vmem:[%s4135_s4 + $0x270] sm:$0xff]  ;;  %v665_v58 = vld [vmem:[%s4135_s4 + $0x340] sm:$0xff] }
  0xc3   :  { %v2047_v61 = vpop.eup %2046  ;;  %896 = vmatpush.msra.mxu3 %v613_v63  ;;  %v646_v63 = vld [vmem:[%s4135_s4 + $0x2a8] sm:$0xff] }
  0xc4   :  { %v2808_v0 = vpop.eup %2048  ;;  %v2810_v2 = vadd.f32 1.0, %v2047_v61  ;;  %848 = vmatpush.msra.mxu1 %v585_v23  ;;  %873 = vmatpush.msra.mxu2 %v600_v36  ;;  %v656_v23 = vld [vmem:[%s4135_s4 + $0x2f8] sm:$0xff]  ;;  %v670_v36 = vld [vmem:[%s4135_s4 + $0x368] sm:$0xff] }
  0xc5   :  { %v2818_v5 = vpop.eup %2050  ;;  %v325_v6 = vmul.f32 %v2808_v0, %v2746_v40  ;;  %vm330_vm1 = vweird.f32 %v2808_v0 }
  0xc6   :  { %v344_v9 = vmul.f32 %v2818_v5, %v2748_v41  ;;  %2052 = vrcp.f32 %v2810_v2  ;;  %vm349_vm2 = vweird.f32 %v2818_v5  ;;  %vm2885_vm5 = vmor %vm329_vm3, %vm330_vm1  ;;  %849 = vmatpush.msra.mxu1 %v584_v31  ;;  %874 = vmatpush.msra.mxu2 %v599_v48  ;;  %vm368_vm10 = vweird.f32 %v2810_v2  ;;  %v654_v31 = vld [vmem:[%s4135_s4 + $0x2e8] sm:$0xff] }
  0xc7   :  { %v326_v12 = vsub.f32 1.0, %v325_v6  ;;  %2054 = vtanh.f32 %v318_v1  ;;  %vm2898_vm6 = vmor %vm348_vm4, %vm349_vm2  ;;  %v564_v1 = vld [vmem:[%s4135_s4 + $0x18] sm:$0xff]  ;;  %v372_v4 = vand.u32 2147483647, %v2810_v2  ;;  %v650_v48 = vld [vmem:[%s4135_s4 + $0x2c8] sm:$0xff]  ;;  %vm558_vm1 = vcmask 1046528  }
  0xc8   :  { %v345_v15 = vsub.f32 1.0, %v344_v9  ;;  %850 = vmatpush.msra.mxu1 %v583_v43  ;;  %875 = vmatpush.msra.mxu2 %v598_v57  ;;  %v612_v6 = vld [vmem:[%s4135_s4 + $0x198] sm:$0xff]  ;;  %v651_v43 = vld [vmem:[%s4135_s4 + $0x2d0] sm:$0xff]  ;;  %vm546_vm2 = vcmask 1043459   ;;  %vm549_vm3 = vcmask 1044484   ;;  %vm552_vm4 = vcmask 1045509  }
  0xc9   :  { %v327_v20 = vmul.f32 %v2808_v0, %v326_v12  ;;  %833 = vmatpush.msra.mxu0 %v564_v1  ;;  %897 = vmatpush.msra.mxu3 %v612_v6  ;;  %vm373_vm12 = vcmp.eq.f32.partialorder %v372_v4, 8.507059e+37  ;;  %v648_v57 = vld [vmem:[%s4135_s4 + $0x2b8] sm:$0xff]  ;;  %v679_v1 = vld [vmem:[%s4135_s4 + $0x3b0] sm:$0xff]  ;;  %v645_v4 = vld [vmem:[%s4135_s4 + $0x2a0] sm:$0xff] }
  0xca   :  { %v346_v24 = vmul.f32 %v2818_v5, %v345_v15  ;;  %851 = vmatpush.msra.mxu1 %v582_v54  ;;  %876 = vmatpush.msra.mxu2 %v597_v62  ;;  %v594_v15 = vld [vmem:[%s4135_s4 + $0x108] sm:$0xff] }
  0xcb   :  { %v328_v28 = vadd.f32 %v2808_v0, %v327_v20  ;;  %898 = vmatpush.msra.mxu3 %v611_v11  ;;  %v561_v20 = vld [vmem:[%s4135_s4] sm:$0xff]  ;;  %v682_v54 = vld [vmem:[%s4135_s4 + $0x3c8] sm:$0xff]  ;;  %v643_v11 = vld [vmem:[%s4135_s4 + $0x290] sm:$0xff] }
  0xcc   :  { %v2880_v32 = vpop.eup %2052  ;;  %v347_v35 = vadd.f32 %v2818_v5, %v346_v24  ;;  %852 = vmatpush.msra.mxu1 %v581_v60  ;;  %v593_v24 = vld [vmem:[%s4135_s4 + $0x100] sm:$0xff]  ;;  %v664_v60 = vld [vmem:[%s4135_s4 + $0x338] sm:$0xff]  ;;  %v630_v62 = vld [vmem:[%s4135_s4 + $0x228] sm:$0xff] }
  0xcd   :  { %v332_v40 = vsel %vm2885_vm5, %v2808_v0, %v328_v28  ;;  %v364_v41 = vmul.f32 %v2880_v32, %v2810_v2  ;;  %v2055_v44 = vpop.eup %2054  ;;  %vm369_vm9 = vweird.f32 %v2880_v32  ;;  %v374_v0 = vand.u32 2147483648, %v2810_v2  ;;  %v563_v2 = vld [vmem:[%s4135_s4 + $0x10] sm:$0xff]  ;;  %899 = vmatpush.msra.mxu3 %v610_v16  ;;  %v672_v28 = vld [vmem:[%s4135_s4 + $0x378] sm:$0xff]  ;;  %v678_v6 = vld [vmem:[%s4135_s4 + $0x3a8] sm:$0xff] }
  0xce   :  { %v337_v45 = vsel %vm334_vm7, %v336_v34, %v332_v40  ;;  %v351_v47 = vsel %vm2898_vm6, %v2818_v5, %v347_v35  ;;  %v596_v5 = vld [vmem:[%s4135_s4 + $0x118] sm:$0xff]  ;;  %vm2966_vm11 = vmor %vm368_vm10, %vm369_vm9  ;;  %853 = vmatpush.msra.mxu1 %v580_v3  ;;  %834 = vmatpush.msra.mxu0 %v563_v2  ;;  %v637_v34 = vld [vmem:[%s4135_s4 + $0x260] sm:$0xff]  ;;  %vm1169_vm5 = vcmask 122880   ;;  %vm1290_vm6 = vcmask 130048  }
  0xcf   :  { %v379_v50 = vmul.f32 %v2055_v44, %v337_v45  ;;  %v365_v51 = vsub.f32 1.0, %v364_v41  ;;  %v356_v52 = vsel %vm353_vm8, %v355_v39, %v351_v47  ;;  %v375_v12 = vor.u32 1.1754944e-38, %v374_v0  ;;  %877 = vmatpush.msra.mxu2 %v596_v5  ;;  %900 = vmatpush.msra.mxu3 %v609_v25  ;;  %v653_v35 = vld [vmem:[%s4135_s4 + $0x2e0] sm:$0xff]  ;;  %v652_v39 = vld [vmem:[%s4135_s4 + $0x2d8] sm:$0xff]  ;;  %v634_v47 = vld [vmem:[%s4135_s4 + $0x248] sm:$0xff] }
  0xd0   :  { %v378_v55 = vmul.f32 %v356_v52, %v57_v29  ;;  %854 = vmatpush.msra.mxu1 %v579_v8  ;;  %835 = vmatpush.msra.mxu0 %v562_v13  ;;  %v688_v29 = vld [vmem:[%s4135_s4 + $0x3f8] sm:$0xff]  ;;  %v669_v40 = vld [vmem:[%s4135_s4 + $0x360] sm:$0xff]  ;;  %v663_v0 = vld [vmem:[%s4135_s4 + $0x330] sm:$0xff]  ;;  %vm1732_vm7 = vcmask 1047559  }
  0xd1   :  { %v366_v46 = vmul.f32 %v2880_v32, %v365_v51  ;;  %878 = vmatpush.msra.mxu2 %v595_v10  ;;  %v685_v41 = vld [vmem:[%s4135_s4 + $0x3e0] sm:$0xff]  ;;  %v668_v44 = vld [vmem:[%s4135_s4 + $0x358] sm:$0xff]  ;;  %v662_v5 = vld [vmem:[%s4135_s4 + $0x328] sm:$0xff] }
  0xd2   :  { %v380_v56 = vadd.f32 %v379_v50, %v378_v55  ;;  %855 = vmatpush.msra.mxu1 %v578_v14  ;;  %836 = vmatpush.msra.mxu0 %v561_v20  ;;  %v684_v45 = vld [vmem:[%s4135_s4 + $0x3d8] sm:$0xff]  ;;  %v683_v50 = vld [vmem:[%s4135_s4 + $0x3d0] sm:$0xff]  ;;  %v633_v51 = vld [vmem:[%s4135_s4 + $0x240] sm:$0xff] }
  0xd3   :  { %v367_v61 = vadd.f32 %v2880_v32, %v366_v46  ;;  %879 = vmatpush.msra.mxu2 %v594_v15  ;;  %v649_v52 = vld [vmem:[%s4135_s4 + $0x2c0] sm:$0xff]  ;;  %v632_v55 = vld [vmem:[%s4135_s4 + $0x238] sm:$0xff]  ;;  %v627_v10 = vld [vmem:[%s4135_s4 + $0x210] sm:$0xff] }
  0xd4   :  { %463 = vmatmul.f32.vlgmr.msrb.gmra.mxu0 %v380_v56  ;;  %1950 = vst [vmem:[#allocation9] sm:$0xff] %v380_v56  ;;  %483 = vmatmul.f32.vlgmr.msrb.gmra.mxu1 %v380_v56  ;;  %2056 = vtanh.f32 %v380_v56  ;;  %v681_v46 = vld [vmem:[%s4135_s4 + $0x3c0] sm:$0xff]  ;;  %v631_v56 = vld [vmem:[%s4135_s4 + $0x230] sm:$0xff]  ;;  %v644_v2 = vld [vmem:[%s4135_s4 + $0x298] sm:$0xff] }
  0xd5   :  { %v371_v9 = vsel %vm2966_vm11, %v2880_v32, %v367_v61  ;;  %856 = vmatpush.msra.mxu1 %v577_v21  ;;  %909 = vmatpush.msrb.mxu0 %v640_v22  ;;  %v671_v32 = vld [vmem:[%s4135_s4 + $0x370] sm:$0xff]  ;;  %v680_v61 = vld [vmem:[%s4135_s4 + $0x3b8] sm:$0xff]  ;;  %v629_v3 = vld [vmem:[%s4135_s4 + $0x220] sm:$0xff] }
  0xd6   :  { %v376_v18 = vsel %vm373_vm12, %v375_v12, %v371_v9  ;;  %880 = vmatpush.msra.mxu2 %v593_v24  ;;  %v661_v8 = vld [vmem:[%s4135_s4 + $0x320] sm:$0xff]  ;;  %v660_v12 = vld [vmem:[%s4135_s4 + $0x318] sm:$0xff]  ;;  %v626_v14 = vld [vmem:[%s4135_s4 + $0x208] sm:$0xff] }
  0xd7   :  { %929 = vmatpush.msrb.mxu1 %v656_v23  ;;  %910 = vmatpush.msrb.mxu0 %v639_v26  ;;  %v677_v9 = vld [vmem:[%s4135_s4 + $0x3a0] sm:$0xff]  ;;  %v676_v13 = vld [vmem:[%s4135_s4 + $0x398] sm:$0xff]  ;;  %v642_v15 = vld [vmem:[%s4135_s4 + $0x288] sm:$0xff] }
  0xd8   :  { %v659_v16 = vld [vmem:[%s4135_s4 + $0x310] sm:$0xff]  ;;  %v658_v20 = vld [vmem:[%s4135_s4 + $0x308] sm:$0xff]  ;;  %v657_v22 = vld [vmem:[%s4135_s4 + $0x300] sm:$0xff] }
  0xd9   :  { %930 = vmatpush.msrb.mxu1 %v655_v27  ;;  %911 = vmatpush.msrb.mxu0 %v638_v30  ;;  %v674_v21 = vld [vmem:[%s4135_s4 + $0x388] sm:$0xff]  ;;  %v673_v23 = vld [vmem:[%s4135_s4 + $0x380] sm:$0xff] }
  0xda   :  { %v2057_v17 = vpop.eup %2056  ;;  %v527_v24 = vld [vmem:[%s4139_s8] sm:$0x3] }
  0xdb   :  { %v382_v19 = vmul.f32 %v2057_v17, %v376_v18  ;;  %931 = vmatpush.msrb.mxu1 %v654_v31  ;;  %912 = vmatpush.msrb.mxu0 %v637_v34  ;;  %v675_v17 = vld [vmem:[%s4135_s4 + $0x390] sm:$0xff]  ;;  %v625_v18 = vld [vmem:[%s4135_s4 + $0x200] sm:$0xff]  ;;  %v530_v27 = vperm.slane %v527_v24, 1  ;;  %v529_v31 = vperm.slane %v527_v24, 0 }
  0xdc   :  { %v711_v24 = vld [vmem:[%s4135_s4 + $0x4b0] sm:$0xff] }
  0xdd   :  { %503 = vmatmul.f32.vlgmr.msrb.gmra.mxu2 %v382_v19  ;;  %1948 = vst [vmem:[#allocation8] sm:$0xff] %v382_v19  ;;  %523 = vmatmul.f32.vlgmr.msrb.gmra.mxu3 %v382_v19  ;;  %v641_v19 = vld [vmem:[%s4135_s4 + $0x280] sm:$0xff] }
  0xde   :  { %953 = vmatpush.msrb.mxu2 %v672_v28  ;;  %973 = vmatpush.msrb.mxu3 %v688_v29 }
  0xdf   :  { %932 = vmatpush.msrb.mxu1 %v653_v35  ;;  %913 = vmatpush.msrb.mxu0 %v636_v38 }
  0xe0   :  { %954 = vmatpush.msrb.mxu2 %v671_v32  ;;  %974 = vmatpush.msrb.mxu3 %v687_v33 }
  0xe1   :  { %933 = vmatpush.msrb.mxu1 %v652_v39  ;;  %914 = vmatpush.msrb.mxu0 %v635_v42 }
  0xe2   :  { %955 = vmatpush.msrb.mxu2 %v670_v36  ;;  %975 = vmatpush.msrb.mxu3 %v686_v37 }
  0xe3   :  { %934 = vmatpush.msrb.mxu1 %v651_v43  ;;  %915 = vmatpush.msrb.mxu0 %v634_v47  ;;  %v703_v47 = vld [vmem:[%s4135_s4 + $0x470] sm:$0xff] }
  0xe4   :  { %956 = vmatpush.msrb.mxu2 %v669_v40  ;;  %976 = vmatpush.msrb.mxu3 %v685_v41  ;;  %v704_v40 = vld [vmem:[%s4135_s4 + $0x478] sm:$0xff] }
  0xe5   :  { %935 = vmatpush.msrb.mxu1 %v650_v48  ;;  %916 = vmatpush.msrb.mxu0 %v633_v51  ;;  %v720_v41 = vld [vmem:[%s4135_s4 + $0x4f8] sm:$0xff]  ;;  %v719_v48 = vld [vmem:[%s4135_s4 + $0x4f0] sm:$0xff] }
  0xe6   :  { %957 = vmatpush.msrb.mxu2 %v668_v44  ;;  %977 = vmatpush.msrb.mxu3 %v684_v45  ;;  %v752_v51 = vld [vmem:[%s4135_s4 + $0x5f8] sm:$0xff] }
  0xe7   :  { %936 = vmatpush.msrb.mxu1 %v649_v52  ;;  %917 = vmatpush.msrb.mxu0 %v632_v55  ;;  %v735_v55 = vld [vmem:[%s4135_s4 + $0x570] sm:$0xff] }
  0xe8   :  { %958 = vmatpush.msrb.mxu2 %v667_v49  ;;  %978 = vmatpush.msrb.mxu3 %v683_v50  ;;  %v736_v50 = vld [vmem:[%s4135_s4 + $0x578] sm:$0xff] }
  0xe9   :  { %937 = vmatpush.msrb.mxu1 %v648_v57  ;;  %918 = vmatpush.msrb.mxu0 %v631_v56  ;;  %v751_v57 = vld [vmem:[%s4135_s4 + $0x5f0] sm:$0xff]  ;;  %v701_v56 = vld [vmem:[%s4135_s4 + $0x460] sm:$0xff] }
  0xea   :  { %959 = vmatpush.msrb.mxu2 %v666_v53  ;;  %979 = vmatpush.msrb.mxu3 %v682_v54  ;;  %v702_v53 = vld [vmem:[%s4135_s4 + $0x468] sm:$0xff] }
  0xeb   :  { %938 = vmatpush.msrb.mxu1 %v647_v59  ;;  %919 = vmatpush.msrb.mxu0 %v630_v62  ;;  %v718_v54 = vld [vmem:[%s4135_s4 + $0x4e8] sm:$0xff]  ;;  %v717_v59 = vld [vmem:[%s4135_s4 + $0x4e0] sm:$0xff] }
  0xec   :  { %960 = vmatpush.msrb.mxu2 %v665_v58  ;;  %980 = vmatpush.msrb.mxu3 %v681_v46 }
  0xed   :  { %939 = vmatpush.msrb.mxu1 %v646_v63  ;;  %920 = vmatpush.msrb.mxu0 %v629_v3  ;;  %v716_v3 = vld [vmem:[%s4135_s4 + $0x4d8] sm:$0xff] }
  0xee   :  { %961 = vmatpush.msrb.mxu2 %v664_v60  ;;  %981 = vmatpush.msrb.mxu3 %v680_v61  ;;  %v734_v60 = vld [vmem:[%s4135_s4 + $0x568] sm:$0xff] }
  0xef   :  { %940 = vmatpush.msrb.mxu1 %v645_v4  ;;  %921 = vmatpush.msrb.mxu0 %v628_v7  ;;  %v750_v61 = vld [vmem:[%s4135_s4 + $0x5e8] sm:$0xff]  ;;  %v733_v4 = vld [vmem:[%s4135_s4 + $0x560] sm:$0xff] }
  0xf0   :  { %962 = vmatpush.msrb.mxu2 %v663_v0  ;;  %982 = vmatpush.msrb.mxu3 %v679_v1  ;;  %v700_v1 = vld [vmem:[%s4135_s4 + $0x458] sm:$0xff] }
  0xf1   :  { %941 = vmatpush.msrb.mxu1 %v644_v2  ;;  %922 = vmatpush.msrb.mxu0 %v627_v10  ;;  %v699_v2 = vld [vmem:[%s4135_s4 + $0x450] sm:$0xff]  ;;  %v748_v10 = vld [vmem:[%s4135_s4 + $0x5d8] sm:$0xff] }
  0xf2   :  { %963 = vmatpush.msrb.mxu2 %v662_v5  ;;  %983 = vmatpush.msrb.mxu3 %v678_v6  ;;  %v749_v5 = vld [vmem:[%s4135_s4 + $0x5e0] sm:$0xff] }
  0xf3   :  { %942 = vmatpush.msrb.mxu1 %v643_v11  ;;  %923 = vmatpush.msrb.mxu0 %v626_v14  ;;  %v698_v11 = vld [vmem:[%s4135_s4 + $0x448] sm:$0xff]  ;;  %v747_v14 = vld [vmem:[%s4135_s4 + $0x5d0] sm:$0xff] }
  0xf4   :  { %964 = vmatpush.msrb.mxu2 %v661_v8  ;;  %984 = vmatpush.msrb.mxu3 %v677_v9  ;;  %v715_v8 = vld [vmem:[%s4135_s4 + $0x4d0] sm:$0xff]  ;;  %v732_v9 = vld [vmem:[%s4135_s4 + $0x558] sm:$0xff] }
  0xf5   :  { %943 = vmatpush.msrb.mxu1 %v642_v15  ;;  %924 = vmatpush.msrb.mxu0 %v625_v18  ;;  %v697_v15 = vld [vmem:[%s4135_s4 + $0x440] sm:$0xff]  ;;  %v746_v18 = vld [vmem:[%s4135_s4 + $0x5c8] sm:$0xff] }
  0xf6   :  { %965 = vmatpush.msrb.mxu2 %v660_v12  ;;  %985 = vmatpush.msrb.mxu3 %v676_v13  ;;  %v714_v12 = vld [vmem:[%s4135_s4 + $0x4c8] sm:$0xff]  ;;  %v731_v13 = vld [vmem:[%s4135_s4 + $0x550] sm:$0xff] }
  0xf7   :  { %944 = vmatpush.msrb.mxu1 %v641_v19  ;;  %v696_v19 = vld [vmem:[%s4135_s4 + $0x438] sm:$0xff] }
  0xf8   :  { %966 = vmatpush.msrb.mxu2 %v659_v16  ;;  %986 = vmatpush.msrb.mxu3 %v675_v17  ;;  %v713_v16 = vld [vmem:[%s4135_s4 + $0x4c0] sm:$0xff]  ;;  %v730_v17 = vld [vmem:[%s4135_s4 + $0x548] sm:$0xff] }
  0xfa   :  { %967 = vmatpush.msrb.mxu2 %v658_v20  ;;  %987 = vmatpush.msrb.mxu3 %v674_v21  ;;  %v712_v20 = vld [vmem:[%s4135_s4 + $0x4b8] sm:$0xff]  ;;  %v729_v21 = vld [vmem:[%s4135_s4 + $0x540] sm:$0xff] }
  0xfc   :  { %968 = vmatpush.msrb.mxu2 %v657_v22  ;;  %988 = vmatpush.msrb.mxu3 %v673_v23  ;;  %v745_v22 = vld [vmem:[%s4135_s4 + $0x5c0] sm:$0xff]  ;;  %v695_v23 = vld [vmem:[%s4135_s4 + $0x430] sm:$0xff] }
 0x151   :  { %v464_v25 = vpop.f32.mrf.mxu0  ;;  %v484_v26 = vpop.f32.mrf.mxu1 }
 0x160   :  { %v504_v28 = vpop.f32.mrf.mxu2  ;;  %v524_v29 = vpop.f32.mrf.mxu3 }
 0x161   :  { %v505_v30 = vadd.f32 %v504_v28, %v464_v25  ;;  %v525_v32 = vadd.f32 %v524_v29, %v484_v26  ;;  %v728_v25 = vld [vmem:[%s4135_s4 + $0x538] sm:$0xff]  ;;  %v710_v28 = vld [vmem:[%s4135_s4 + $0x4a8] sm:$0xff]  ;;  %v727_v29 = vld [vmem:[%s4135_s4 + $0x530] sm:$0xff] }
 0x162   :  { %v744_v26 = vld [vmem:[%s4135_s4 + $0x5b8] sm:$0xff] }
 0x163   :  { %v534_v33 = vadd.f32 %v530_v27, %v525_v32  ;;  %v3204_v34 = vadd.f32 %v529_v31, %v505_v30  ;;  %v694_v27 = vld [vmem:[%s4135_s4 + $0x428] sm:$0xff]  ;;  %v743_v30 = vld [vmem:[%s4135_s4 + $0x5b0] sm:$0xff]  ;;  %v693_v31 = vld [vmem:[%s4135_s4 + $0x420] sm:$0xff] }
 0x164   :  { %v709_v32 = vld [vmem:[%s4135_s4 + $0x4a0] sm:$0xff] }
 0x165   :  { %v3206_v35 = vrot.slane %v534_v33, 7  ;;  %v726_v33 = vld [vmem:[%s4135_s4 + $0x528] sm:$0xff] }
 0x167   :  { %v539_v36 = vsel %vm538_vm13, %v3204_v34, %v3206_v35  ;;  %v541_v37 = vsel %vm540_vm14, %v3204_v34, %v3206_v35  ;;  %v3222_v43 = vsel %vm555_vm15, %v3204_v34, %v3206_v35  ;;  %v544_v49 = vsel %vm543_vm0, %v3204_v34, %v3206_v35 }
 0x168   :  { %v817_v38 = vperm.slane %v539_v36, 0  ;;  %v818_v39 = vperm.slane %v539_v36, 1  ;;  %v542_v42 = vrot.slane %v541_v37, 1  ;;  %v3241_v52 = vsel %vm558_vm1, %v3206_v35, %v3204_v34  ;;  %v742_v36 = vld [vmem:[%s4135_s4 + $0x5a8] sm:$0xff]  ;;  %v692_v37 = vld [vmem:[%s4135_s4 + $0x418] sm:$0xff] }
 0x169   :  { %v545_v58 = vrot.slane %v544_v49, 2  ;;  %v547_v46 = vsel %vm546_vm2, %v3204_v34, %v3206_v35  ;;  %v706_v49 = vld [vmem:[%s4135_s4 + $0x488] sm:$0xff] }
 0x16a   :  { %837 = vmatmul.f32.vlgmr.msra.gmra.mxu0 %v817_v38  ;;  %857 = vmatmul.f32.vlgmr.msra.gmra.mxu1 %v818_v39  ;;  %v861_v44 = vperm.slane %v542_v42, 0  ;;  %v862_v45 = vperm.slane %v542_v42, 1  ;;  %v548_v62 = vrot.slane %v547_v46, 3  ;;  %v708_v38 = vld [vmem:[%s4135_s4 + $0x498] sm:$0xff]  ;;  %v725_v39 = vld [vmem:[%s4135_s4 + $0x520] sm:$0xff]  ;;  %v707_v42 = vld [vmem:[%s4135_s4 + $0x490] sm:$0xff] }
 0x16b   :  { %997 = vmatpush.msra.mxu0 %v704_v40  ;;  %1017 = vmatpush.msra.mxu1 %v720_v41  ;;  %v905_v63 = vperm.slane %v545_v58, 0  ;;  %v906_v0 = vperm.slane %v545_v58, 1  ;;  %v741_v40 = vld [vmem:[%s4135_s4 + $0x5a0] sm:$0xff]  ;;  %v691_v41 = vld [vmem:[%s4135_s4 + $0x410] sm:$0xff]  ;;  %v722_v58 = vld [vmem:[%s4135_s4 + $0x508] sm:$0xff] }
 0x16c   :  { %881 = vmatmul.f32.vlgmr.msra.gmra.mxu2 %v861_v44  ;;  %901 = vmatmul.f32.vlgmr.msra.gmra.mxu3 %v862_v45  ;;  %v949_v6 = vperm.slane %v548_v62, 0  ;;  %v950_v7 = vperm.slane %v548_v62, 1  ;;  %v550_v44 = vsel %vm549_vm3, %v3204_v34, %v3206_v35  ;;  %v724_v45 = vld [vmem:[%s4135_s4 + $0x518] sm:$0xff]  ;;  %v737_v62 = vld [vmem:[%s4135_s4 + $0x580] sm:$0xff] }
 0x16d   :  { %998 = vmatpush.msra.mxu0 %v703_v47  ;;  %1018 = vmatpush.msra.mxu1 %v719_v48  ;;  %v740_v47 = vld [vmem:[%s4135_s4 + $0x598] sm:$0xff]  ;;  %v690_v48 = vld [vmem:[%s4135_s4 + $0x408] sm:$0xff] }
 0x16e   :  { %1041 = vmatpush.msra.mxu2 %v736_v50  ;;  %1061 = vmatpush.msra.mxu3 %v752_v51  ;;  %v723_v50 = vld [vmem:[%s4135_s4 + $0x510] sm:$0xff] }
 0x16f   :  { %999 = vmatpush.msra.mxu0 %v702_v53  ;;  %1019 = vmatpush.msra.mxu1 %v718_v54  ;;  %v739_v51 = vld [vmem:[%s4135_s4 + $0x590] sm:$0xff]  ;;  %v551_v53 = vrot.slane %v550_v44, 4  ;;  %v553_v54 = vsel %vm552_vm4, %v3204_v34, %v3206_v35  ;;  %v738_v34 = vld [vmem:[%s4135_s4 + $0x588] sm:$0xff]  ;;  %v757_v44 = vld [vmem:[%s4135_s4 + $0x620] sm:$0xff] }
 0x170   :  { %1042 = vmatpush.msra.mxu2 %v735_v55  ;;  %1062 = vmatpush.msra.mxu3 %v751_v57  ;;  %v689_v55 = vld [vmem:[%s4135_s4 + $0x400] sm:$0xff]  ;;  %v554_v35 = vrot.slane %v553_v54, 5  ;;  %v755_v54 = vld [vmem:[%s4135_s4 + $0x610] sm:$0xff] }
 0x171   :  { %1000 = vmatpush.msra.mxu0 %v701_v56  ;;  %1020 = vmatpush.msra.mxu1 %v717_v59  ;;  %v705_v57 = vld [vmem:[%s4135_s4 + $0x480] sm:$0xff]  ;;  %v993_v46 = vperm.slane %v551_v53, 0  ;;  %v994_v56 = vperm.slane %v551_v53, 1  ;;  %v768_v59 = vld [vmem:[%s4135_s4 + $0x678] sm:$0xff] }
 0x172   :  { %1043 = vmatpush.msra.mxu2 %v734_v60  ;;  %1063 = vmatpush.msra.mxu3 %v750_v61  ;;  %v784_v60 = vld [vmem:[%s4135_s4 + $0x6f8] sm:$0xff]  ;;  %v721_v61 = vld [vmem:[%s4135_s4 + $0x500] sm:$0xff] }
 0x173   :  { %925 = vmatmul.f32.vlgmr.msrb.gmra.mxu0 %v905_v63  ;;  %945 = vmatmul.f32.vlgmr.msrb.gmra.mxu1 %v906_v0  ;;  %v1037_v63 = vperm.slane %v554_v35, 0  ;;  %v1038_v0 = vperm.slane %v554_v35, 1  ;;  %v805_v53 = vld [vmem:[%s4135_s4 + $0x7a0] sm:$0xff]  ;;  %v770_v35 = vld [vmem:[%s4135_s4 + $0x688] sm:$0xff] }
 0x174   :  { %1001 = vmatpush.msra.mxu0 %v700_v1  ;;  %1021 = vmatpush.msra.mxu1 %v716_v3  ;;  %v767_v1 = vld [vmem:[%s4135_s4 + $0x670] sm:$0xff] }
 0x175   :  { %1044 = vmatpush.msra.mxu2 %v733_v4  ;;  %1064 = vmatpush.msra.mxu3 %v749_v5  ;;  %v783_v3 = vld [vmem:[%s4135_s4 + $0x6f0] sm:$0xff]  ;;  %v800_v4 = vld [vmem:[%s4135_s4 + $0x778] sm:$0xff] }
 0x176   :  { %969 = vmatmul.f32.vlgmr.msrb.gmra.mxu2 %v949_v6  ;;  %989 = vmatmul.f32.vlgmr.msrb.gmra.mxu3 %v950_v7  ;;  %v816_v5 = vld [vmem:[%s4135_s4 + $0x7f8] sm:$0xff]  ;;  %v766_v6 = vld [vmem:[%s4135_s4 + $0x668] sm:$0xff] }
 0x177   :  { %1002 = vmatpush.msra.mxu0 %v699_v2  ;;  %1022 = vmatpush.msra.mxu1 %v715_v8  ;;  %v782_v7 = vld [vmem:[%s4135_s4 + $0x6e8] sm:$0xff]  ;;  %v799_v2 = vld [vmem:[%s4135_s4 + $0x770] sm:$0xff] }
 0x178   :  { %1045 = vmatpush.msra.mxu2 %v732_v9  ;;  %1065 = vmatpush.msra.mxu3 %v748_v10  ;;  %v815_v8 = vld [vmem:[%s4135_s4 + $0x7f0] sm:$0xff]  ;;  %v765_v9 = vld [vmem:[%s4135_s4 + $0x660] sm:$0xff] }
 0x179   :  { %1003 = vmatpush.msra.mxu0 %v698_v11  ;;  %1023 = vmatpush.msra.mxu1 %v714_v12  ;;  %v781_v10 = vld [vmem:[%s4135_s4 + $0x6e0] sm:$0xff]  ;;  %v798_v11 = vld [vmem:[%s4135_s4 + $0x768] sm:$0xff] }
 0x17a   :  { %1046 = vmatpush.msra.mxu2 %v731_v13  ;;  %1066 = vmatpush.msra.mxu3 %v747_v14  ;;  %v814_v12 = vld [vmem:[%s4135_s4 + $0x7e8] sm:$0xff]  ;;  %v764_v13 = vld [vmem:[%s4135_s4 + $0x658] sm:$0xff] }
 0x17b   :  { %1004 = vmatpush.msra.mxu0 %v697_v15  ;;  %1024 = vmatpush.msra.mxu1 %v713_v16  ;;  %v780_v14 = vld [vmem:[%s4135_s4 + $0x6d8] sm:$0xff]  ;;  %v797_v15 = vld [vmem:[%s4135_s4 + $0x760] sm:$0xff] }
 0x17c   :  { %1047 = vmatpush.msra.mxu2 %v730_v17  ;;  %1067 = vmatpush.msra.mxu3 %v746_v18  ;;  %v813_v16 = vld [vmem:[%s4135_s4 + $0x7e0] sm:$0xff]  ;;  %v763_v17 = vld [vmem:[%s4135_s4 + $0x650] sm:$0xff] }
 0x17d   :  { %1005 = vmatpush.msra.mxu0 %v696_v19  ;;  %1025 = vmatpush.msra.mxu1 %v712_v20  ;;  %v779_v18 = vld [vmem:[%s4135_s4 + $0x6d0] sm:$0xff]  ;;  %v796_v19 = vld [vmem:[%s4135_s4 + $0x758] sm:$0xff] }
 0x17e   :  { %1048 = vmatpush.msra.mxu2 %v729_v21  ;;  %1068 = vmatpush.msra.mxu3 %v745_v22  ;;  %v812_v20 = vld [vmem:[%s4135_s4 + $0x7d8] sm:$0xff]  ;;  %v762_v21 = vld [vmem:[%s4135_s4 + $0x648] sm:$0xff] }
 0x17f   :  { %1006 = vmatpush.msra.mxu0 %v695_v23  ;;  %1026 = vmatpush.msra.mxu1 %v711_v24  ;;  %v778_v22 = vld [vmem:[%s4135_s4 + $0x6c8] sm:$0xff]  ;;  %v795_v23 = vld [vmem:[%s4135_s4 + $0x750] sm:$0xff] }
 0x180   :  { %1049 = vmatpush.msra.mxu2 %v728_v25  ;;  %1069 = vmatpush.msra.mxu3 %v744_v26  ;;  %v811_v24 = vld [vmem:[%s4135_s4 + $0x7d0] sm:$0xff]  ;;  %v761_v25 = vld [vmem:[%s4135_s4 + $0x640] sm:$0xff] }
 0x181   :  { %1007 = vmatpush.msra.mxu0 %v694_v27  ;;  %1027 = vmatpush.msra.mxu1 %v710_v28  ;;  %v777_v26 = vld [vmem:[%s4135_s4 + $0x6c0] sm:$0xff]  ;;  %v794_v27 = vld [vmem:[%s4135_s4 + $0x748] sm:$0xff] }
 0x182   :  { %1050 = vmatpush.msra.mxu2 %v727_v29  ;;  %1070 = vmatpush.msra.mxu3 %v743_v30  ;;  %v810_v28 = vld [vmem:[%s4135_s4 + $0x7c8] sm:$0xff]  ;;  %v760_v29 = vld [vmem:[%s4135_s4 + $0x638] sm:$0xff] }
 0x183   :  { %1008 = vmatpush.msra.mxu0 %v693_v31  ;;  %1028 = vmatpush.msra.mxu1 %v709_v32  ;;  %v776_v30 = vld [vmem:[%s4135_s4 + $0x6b8] sm:$0xff]  ;;  %v793_v31 = vld [vmem:[%s4135_s4 + $0x740] sm:$0xff] }
 0x184   :  { %1051 = vmatpush.msra.mxu2 %v726_v33  ;;  %1071 = vmatpush.msra.mxu3 %v742_v36  ;;  %v809_v32 = vld [vmem:[%s4135_s4 + $0x7c0] sm:$0xff]  ;;  %v759_v33 = vld [vmem:[%s4135_s4 + $0x630] sm:$0xff] }
 0x185   :  { %1009 = vmatpush.msra.mxu0 %v692_v37  ;;  %1029 = vmatpush.msra.mxu1 %v708_v38  ;;  %v775_v36 = vld [vmem:[%s4135_s4 + $0x6b0] sm:$0xff]  ;;  %v792_v37 = vld [vmem:[%s4135_s4 + $0x738] sm:$0xff] }
 0x186   :  { %1052 = vmatpush.msra.mxu2 %v725_v39  ;;  %1072 = vmatpush.msra.mxu3 %v741_v40  ;;  %v808_v38 = vld [vmem:[%s4135_s4 + $0x7b8] sm:$0xff]  ;;  %v758_v39 = vld [vmem:[%s4135_s4 + $0x628] sm:$0xff] }
 0x187   :  { %1010 = vmatpush.msra.mxu0 %v691_v41  ;;  %1030 = vmatpush.msra.mxu1 %v707_v42  ;;  %v774_v40 = vld [vmem:[%s4135_s4 + $0x6a8] sm:$0xff]  ;;  %v791_v41 = vld [vmem:[%s4135_s4 + $0x730] sm:$0xff] }
 0x188   :  { %1053 = vmatpush.msra.mxu2 %v724_v45  ;;  %1073 = vmatpush.msra.mxu3 %v740_v47  ;;  %v807_v42 = vld [vmem:[%s4135_s4 + $0x7b0] sm:$0xff]  ;;  %v773_v45 = vld [vmem:[%s4135_s4 + $0x6a0] sm:$0xff]  ;;  %v790_v47 = vld [vmem:[%s4135_s4 + $0x728] sm:$0xff] }
 0x189   :  { %1011 = vmatpush.msra.mxu0 %v690_v48  ;;  %1031 = vmatpush.msra.mxu1 %v706_v49  ;;  %v806_v48 = vld [vmem:[%s4135_s4 + $0x7a8] sm:$0xff]  ;;  %v756_v49 = vld [vmem:[%s4135_s4 + $0x618] sm:$0xff] }
 0x18a   :  { %1054 = vmatpush.msra.mxu2 %v723_v50  ;;  %1074 = vmatpush.msra.mxu3 %v739_v51  ;;  %v772_v50 = vld [vmem:[%s4135_s4 + $0x698] sm:$0xff]  ;;  %v789_v51 = vld [vmem:[%s4135_s4 + $0x720] sm:$0xff] }
 0x18b   :  { %1012 = vmatpush.msra.mxu0 %v689_v55  ;;  %1032 = vmatpush.msra.mxu1 %v705_v57  ;;  %v771_v55 = vld [vmem:[%s4135_s4 + $0x690] sm:$0xff]  ;;  %v788_v57 = vld [vmem:[%s4135_s4 + $0x718] sm:$0xff] }
 0x18c   :  { %1055 = vmatpush.msra.mxu2 %v722_v58  ;;  %1075 = vmatpush.msra.mxu3 %v738_v34  ;;  %v804_v58 = vld [vmem:[%s4135_s4 + $0x798] sm:$0xff]  ;;  %v754_v34 = vld [vmem:[%s4135_s4 + $0x608] sm:$0xff] }
 0x18d   :  { %1013 = vmatmul.f32.vlgmr.msra.gmra.mxu0 %v993_v46  ;;  %1033 = vmatmul.f32.vlgmr.msra.gmra.mxu1 %v994_v56  ;;  %v787_v46 = vld [vmem:[%s4135_s4 + $0x710] sm:$0xff] }
 0x18e   :  { %1085 = vmatpush.msrb.mxu0 %v768_v59  ;;  %1105 = vmatpush.msrb.mxu1 %v784_v60  ;;  %v803_v56 = vld [vmem:[%s4135_s4 + $0x790] sm:$0xff]  ;;  %v557_v59 = vrot.slane %v3222_v43, 6  ;;  %v753_v60 = vld [vmem:[%s4135_s4 + $0x600] sm:$0xff]  ;;  %v802_v43 = vld [vmem:[%s4135_s4 + $0x788] sm:$0xff] }
 0x18f   :  { %1056 = vmatpush.msra.mxu2 %v721_v61  ;;  %1076 = vmatpush.msra.mxu3 %v737_v62  ;;  %v769_v61 = vld [vmem:[%s4135_s4 + $0x680] sm:$0xff]  ;;  %v786_v62 = vld [vmem:[%s4135_s4 + $0x708] sm:$0xff] }
 0x190   :  { %1057 = vmatmul.f32.vlgmr.msra.gmra.mxu2 %v1037_v63  ;;  %1077 = vmatmul.f32.vlgmr.msra.gmra.mxu3 %v1038_v0  ;;  %v560_v63 = vrot.slane %v3241_v52, 7  ;;  %v1081_v0 = vperm.slane %v557_v59, 0 }
 0x191   :  { %1086 = vmatpush.msrb.mxu0 %v767_v1  ;;  %1106 = vmatpush.msrb.mxu1 %v783_v3  ;;  %v1082_v1 = vperm.slane %v557_v59, 1  ;;  %v785_v3 = vld [vmem:[%s4135_s4 + $0x700] sm:$0xff] }
 0x192   :  { %1129 = vmatpush.msrb.mxu2 %v800_v4  ;;  %1149 = vmatpush.msrb.mxu3 %v816_v5  ;;  %v801_v4 = vld [vmem:[%s4135_s4 + $0x780] sm:$0xff]  ;;  %v1125_v5 = vperm.slane %v560_v63, 0  ;;  %v1126_v52 = vperm.slane %v560_v63, 1 }
 0x193   :  { %1087 = vmatpush.msrb.mxu0 %v766_v6  ;;  %1107 = vmatpush.msrb.mxu1 %v782_v7 }
 0x194   :  { %1130 = vmatpush.msrb.mxu2 %v799_v2  ;;  %1150 = vmatpush.msrb.mxu3 %v815_v8 }
 0x195   :  { %1088 = vmatpush.msrb.mxu0 %v765_v9  ;;  %1108 = vmatpush.msrb.mxu1 %v781_v10 }
 0x196   :  { %1131 = vmatpush.msrb.mxu2 %v798_v11  ;;  %1151 = vmatpush.msrb.mxu3 %v814_v12 }
 0x197   :  { %1089 = vmatpush.msrb.mxu0 %v764_v13  ;;  %1109 = vmatpush.msrb.mxu1 %v780_v14 }
 0x198   :  { %1132 = vmatpush.msrb.mxu2 %v797_v15  ;;  %1152 = vmatpush.msrb.mxu3 %v813_v16 }
 0x199   :  { %1090 = vmatpush.msrb.mxu0 %v763_v17  ;;  %1110 = vmatpush.msrb.mxu1 %v779_v18 }
 0x19a   :  { %1133 = vmatpush.msrb.mxu2 %v796_v19  ;;  %1153 = vmatpush.msrb.mxu3 %v812_v20 }
 0x19b   :  { %1091 = vmatpush.msrb.mxu0 %v762_v21  ;;  %1111 = vmatpush.msrb.mxu1 %v778_v22 }
 0x19c   :  { %1134 = vmatpush.msrb.mxu2 %v795_v23  ;;  %1154 = vmatpush.msrb.mxu3 %v811_v24 }
 0x19d   :  { %1092 = vmatpush.msrb.mxu0 %v761_v25  ;;  %1112 = vmatpush.msrb.mxu1 %v777_v26 }
 0x19e   :  { %1135 = vmatpush.msrb.mxu2 %v794_v27  ;;  %1155 = vmatpush.msrb.mxu3 %v810_v28 }
 0x19f   :  { %1093 = vmatpush.msrb.mxu0 %v760_v29  ;;  %1113 = vmatpush.msrb.mxu1 %v776_v30 }
 0x1a0   :  { %1136 = vmatpush.msrb.mxu2 %v793_v31  ;;  %1156 = vmatpush.msrb.mxu3 %v809_v32 }
 0x1a1   :  { %1094 = vmatpush.msrb.mxu0 %v759_v33  ;;  %1114 = vmatpush.msrb.mxu1 %v775_v36 }
 0x1a2   :  { %1137 = vmatpush.msrb.mxu2 %v792_v37  ;;  %1157 = vmatpush.msrb.mxu3 %v808_v38 }
 0x1a3   :  { %1095 = vmatpush.msrb.mxu0 %v758_v39  ;;  %1115 = vmatpush.msrb.mxu1 %v774_v40 }
 0x1a4   :  { %1138 = vmatpush.msrb.mxu2 %v791_v41  ;;  %1158 = vmatpush.msrb.mxu3 %v807_v42 }
 0x1a5   :  { %1096 = vmatpush.msrb.mxu0 %v757_v44  ;;  %1116 = vmatpush.msrb.mxu1 %v773_v45 }
 0x1a6   :  { %1139 = vmatpush.msrb.mxu2 %v790_v47  ;;  %1159 = vmatpush.msrb.mxu3 %v806_v48 }
 0x1a7   :  { %1097 = vmatpush.msrb.mxu0 %v756_v49  ;;  %1117 = vmatpush.msrb.mxu1 %v772_v50 }
 0x1a8   :  { %1140 = vmatpush.msrb.mxu2 %v789_v51  ;;  %1160 = vmatpush.msrb.mxu3 %v805_v53 }
 0x1a9   :  { %1098 = vmatpush.msrb.mxu0 %v755_v54  ;;  %1118 = vmatpush.msrb.mxu1 %v771_v55 }
 0x1aa   :  { %1141 = vmatpush.msrb.mxu2 %v788_v57  ;;  %1161 = vmatpush.msrb.mxu3 %v804_v58 }
 0x1ab   :  { %1099 = vmatpush.msrb.mxu0 %v754_v34  ;;  %1119 = vmatpush.msrb.mxu1 %v770_v35 }
 0x1ac   :  { %1142 = vmatpush.msrb.mxu2 %v787_v46  ;;  %1162 = vmatpush.msrb.mxu3 %v803_v56 }
 0x1ad   :  { %1100 = vmatpush.msrb.mxu0 %v753_v60  ;;  %1120 = vmatpush.msrb.mxu1 %v769_v61 }
 0x1ae   :  { %1143 = vmatpush.msrb.mxu2 %v786_v62  ;;  %1163 = vmatpush.msrb.mxu3 %v802_v43 }
 0x1af   :  { %1101 = vmatmul.f32.vlgmr.msrb.gmra.mxu0 %v1081_v0  ;;  %1121 = vmatmul.f32.vlgmr.msrb.gmra.mxu1 %v1082_v1 }
 0x1b0   :  { %1144 = vmatpush.msrb.mxu2 %v785_v3  ;;  %1164 = vmatpush.msrb.mxu3 %v801_v4 }
 0x1b1   :  { %1145 = vmatmul.f32.vlgmr.msrb.gmra.mxu2 %v1125_v5  ;;  %1165 = vmatmul.f32.vlgmr.msrb.gmra.mxu3 %v1126_v52 }
 0x1e7   :  { %v838_v6 = vpop.f32.mrf.mxu0  ;;  %v858_v7 = vpop.f32.mrf.mxu1 }
 0x1e8   :  { %v859_v2 = vadd.f32 %v858_v7, %v838_v6 }
 0x1ea   :  { %v1170_v8 = vsel %vm1169_vm5, %v859_v2, -inf }
 0x1eb   :  { %1171 = vmax.xlane.f32.xlu0 %v1170_v8 }
 0x1ef   :  { %v882_v9 = vpop.f32.mrf.mxu2  ;;  %v902_v10 = vpop.f32.mrf.mxu3 }
 0x1f0   :  { %v903_v11 = vadd.f32 %v902_v10, %v882_v9  ;;  %v926_v17 = vpop.f32.mrf.mxu0  ;;  %v946_v18 = vpop.f32.mrf.mxu1 }
 0x1f1   :  { %v947_v19 = vadd.f32 %v946_v18, %v926_v17  ;;  %v1264_v17 = vld [vmem:[%s4134_s3 + $0x30] sm:$0xff]  ;;  %v1265_v18 = vld [vmem:[%s4134_s3 + $0x38] sm:$0xff] }
 0x1f2   :  { %v1173_v12 = vsel %vm1169_vm5, %v903_v11, -inf }
 0x1f3   :  { %1174 = vmax.xlane.f32.xlu0 %v1173_v12  ;;  %v1176_v20 = vsel %vm1169_vm5, %v947_v19, -inf }
 0x1f9   :  { %v970_v13 = vpop.f32.mrf.mxu2  ;;  %v990_v14 = vpop.f32.mrf.mxu3 }
 0x1fa   :  { %v991_v15 = vadd.f32 %v990_v14, %v970_v13  ;;  %v1260_v13 = vld [vmem:[%s4134_s3 + $0x10] sm:$0xff]  ;;  %v1261_v14 = vld [vmem:[%s4134_s3 + $0x18] sm:$0xff] }
 0x1fb   :  { %1308 = vmatpush.msra.mxu2 %v1260_v13  ;;  %1328 = vmatpush.msra.mxu3 %v1261_v14  ;;  %v1679_v13 = vld [vmem:[%s4140_s9 + $0x160] sm:$0xff] }
 0x1fc   :  { %v1179_v16 = vsel %vm1169_vm5, %v991_v15, -inf  ;;  %v1798_v14 = vld [vmem:[%s4140_s9 + $0x1c0] sm:$0xff] }
 0x1fd   :  { %1180 = vmax.xlane.f32.xlu1 %v1179_v16  ;;  %v1259_v16 = vld [vmem:[%s4134_s3 + $0x8] sm:$0xff] }
 0x1fe   :  { %1329 = vmatpush.msra.mxu3 %v1259_v16  ;;  %v1797_v16 = vld [vmem:[%s4140_s9 + $0x1b8] sm:$0xff] }
 0x200   :  { %1371 = vmatpush.msrb.mxu3 %v1265_v18  ;;  %v1677_v18 = vld [vmem:[%s4140_s9 + $0x150] sm:$0xff] }
 0x205   :  { %1177 = vmax.xlane.f32.xlu1 %v1176_v20  ;;  %v1263_v20 = vld [vmem:[%s4134_s3 + $0x28] sm:$0xff] }
 0x206   :  { %1372 = vmatpush.msrb.mxu3 %v1263_v20  ;;  %v1676_v20 = vld [vmem:[%s4140_s9 + $0x148] sm:$0xff] }
 0x20a   :  { %v1014_v25 = vpop.f32.mrf.mxu0  ;;  %v1034_v26 = vpop.f32.mrf.mxu1 }
 0x20b   :  { %v1035_v27 = vadd.f32 %v1034_v26, %v1014_v25  ;;  %v1267_v25 = vld [vmem:[%s4134_s3 + $0x48] sm:$0xff] }
 0x20d   :  { %v1182_v28 = vsel %vm1169_vm5, %v1035_v27, -inf }
 0x213   :  { %v1058_v21 = vpop.f32.mrf.mxu2  ;;  %v1078_v22 = vpop.f32.mrf.mxu3 }
 0x214   :  { %v1079_v23 = vadd.f32 %v1078_v22, %v1058_v21  ;;  %v1268_v22 = vld [vmem:[%s4134_s3 + $0x50] sm:$0xff] }
 0x215   :  { %1394 = vmatpush.msra.mxu0 %v1268_v22  ;;  %v1675_v22 = vld [vmem:[%s4140_s9 + $0x140] sm:$0xff] }
 0x216   :  { %v1185_v24 = vsel %vm1169_vm5, %v1079_v23, -inf }
 0x217   :  { %1186 = vmax.xlane.f32.xlu2 %v1185_v24  ;;  %v1266_v24 = vld [vmem:[%s4134_s3 + $0x40] sm:$0xff] }
 0x218   :  { %1395 = vmatpush.msra.mxu0 %v1266_v24 }
 0x21f   :  { %1183 = vmax.xlane.f32.xlu2 %v1182_v28 }
 0x22c   :  { %v1102_v29 = vpop.f32.mrf.mxu0  ;;  %v1122_v30 = vpop.f32.mrf.mxu1 }
 0x22d   :  { %v1123_v31 = vadd.f32 %v1122_v30, %v1102_v29  ;;  %v1272_v29 = vld [vmem:[%s4134_s3 + $0x70] sm:$0xff]  ;;  %v1273_v30 = vld [vmem:[%s4134_s3 + $0x78] sm:$0xff] }
 0x22f   :  { %v1188_v32 = vsel %vm1169_vm5, %v1123_v31, -inf }
 0x230   :  { %1189 = vmax.xlane.f32.xlu1 %v1188_v32  ;;  %v1271_v32 = vld [vmem:[%s4134_s3 + $0x68] sm:$0xff] }
 0x234   :  { %v1146_v33 = vpop.f32.mrf.mxu2  ;;  %v1166_v36 = vpop.f32.mrf.mxu3 }
 0x235   :  { %v1167_v37 = vadd.f32 %v1166_v36, %v1146_v33 }
 0x237   :  { %v1191_v38 = vsel %vm1169_vm5, %v1167_v37, -inf }
 0x238   :  { %1192 = vmax.xlane.f32.xlu0 %v1191_v38 }
 0x25e   :  { %v1172_v39 = vpop.xlane.xlu0 %1171 }
 0x25f   :  { %v1194_v40 = vsub.f32 %v859_v2, %v1172_v39  ;;  %v1280_v39 = vld [vmem:[%s4134_s3 + $0xb0] sm:$0xff] }
 0x261   :  { %v1202_v41 = vmul.f32 1.442695, %v1194_v40  ;;  %v1281_v40 = vld [vmem:[%s4134_s3 + $0xb8] sm:$0xff] }
 0x263   :  { %2058 = vpow2.f32 %v1202_v41 }
 0x266   :  { %v1175_v42 = vpop.xlane.xlu0 %1174 }
 0x267   :  { %v1195_v44 = vsub.f32 %v903_v11, %v1175_v42  ;;  %v1278_v42 = vld [vmem:[%s4134_s3 + $0xa0] sm:$0xff] }
 0x269   :  { %v3628_v45 = vpop.eup %2058  ;;  %v1204_v47 = vmul.f32 1.442695, %v1195_v44  ;;  %v1279_v44 = vld [vmem:[%s4134_s3 + $0xa8] sm:$0xff] }
 0x26a   :  { %v1218_v48 = vsel %vm1169_vm5, %v3628_v45, 0.0 }
 0x26b   :  { %2060 = vpow2.f32 %v1204_v47  ;;  %1219 = vadd.xlane.f32.xlu2 %v1218_v48  ;;  %v1276_v47 = vld [vmem:[%s4134_s3 + $0x90] sm:$0xff] }
 0x26c   :  { %1480 = vmatpush.msrb.mxu0 %v1276_v47  ;;  %v1670_v47 = vld [vmem:[%s4140_s9 + $0x118] sm:$0xff] }
 0x270   :  { %v1181_v49 = vpop.xlane.xlu1 %1180 }
 0x271   :  { %v3632_v50 = vpop.eup %2060  ;;  %v1197_v51 = vsub.f32 %v991_v15, %v1181_v49  ;;  %v1258_v15 = vld [vmem:[%s4134_s3] sm:$0xff] }
 0x272   :  { %v1221_v53 = vsel %vm1169_vm5, %v3632_v50, 0.0  ;;  %1309 = vmatpush.msra.mxu2 %v1258_v15  ;;  %v1678_v15 = vld [vmem:[%s4140_s9 + $0x158] sm:$0xff] }
 0x273   :  { %v1208_v54 = vmul.f32 1.442695, %v1197_v51  ;;  %1222 = vadd.xlane.f32.xlu0 %v1221_v53  ;;  %v1277_v51 = vld [vmem:[%s4134_s3 + $0x98] sm:$0xff] }
 0x274   :  { %1351 = vmatpush.msrb.mxu2 %v1264_v17  ;;  %v1289_v53 = vld [vmem:[%s4134_s3 + $0xf8] sm:$0xff] }
 0x275   :  { %2062 = vpow2.f32 %v1208_v54  ;;  %v1275_v54 = vld [vmem:[%s4134_s3 + $0x88] sm:$0xff] }
 0x278   :  { %v1178_v55 = vpop.xlane.xlu1 %1177 }
 0x279   :  { %v1196_v57 = vsub.f32 %v947_v19, %v1178_v55  ;;  %v1262_v19 = vld [vmem:[%s4134_s3 + $0x20] sm:$0xff]  ;;  %v1287_v55 = vld [vmem:[%s4134_s3 + $0xe8] sm:$0xff] }
 0x27a   :  { %1352 = vmatpush.msrb.mxu2 %v1262_v19  ;;  %v1796_v19 = vld [vmem:[%s4140_s9 + $0x1b0] sm:$0xff] }
 0x27b   :  { %v3636_v58 = vpop.eup %2062  ;;  %v1206_v34 = vmul.f32 1.442695, %v1196_v57 }
 0x27c   :  { %v1227_v35 = vsel %vm1169_vm5, %v3636_v58, 0.0 }
 0x27d   :  { %2064 = vpow2.f32 %v1206_v34  ;;  %1228 = vadd.xlane.f32.xlu1 %v1227_v35  ;;  %v1284_v34 = vld [vmem:[%s4134_s3 + $0xd0] sm:$0xff]  ;;  %v1282_v35 = vld [vmem:[%s4134_s3 + $0xc0] sm:$0xff] }
 0x283   :  { %v3640_v46 = vpop.eup %2064 }
 0x284   :  { %v1224_v56 = vsel %vm1169_vm5, %v3640_v46, 0.0 }
 0x285   :  { %1225 = vadd.xlane.f32.xlu2 %v1224_v56 }
 0x28a   :  { %v1187_v59 = vpop.xlane.xlu2 %1186 }
 0x28b   :  { %v1199_v60 = vsub.f32 %v1079_v23, %v1187_v59  ;;  %v1269_v23 = vld [vmem:[%s4134_s3 + $0x58] sm:$0xff]  ;;  %v1283_v59 = vld [vmem:[%s4134_s3 + $0xc8] sm:$0xff] }
 0x28c   :  { %1414 = vmatpush.msra.mxu1 %v1269_v23  ;;  %v1794_v23 = vld [vmem:[%s4140_s9 + $0x1a0] sm:$0xff] }
 0x28d   :  { %v1212_v61 = vmul.f32 1.442695, %v1199_v60 }
 0x28e   :  { %1415 = vmatpush.msra.mxu1 %v1267_v25 }
 0x28f   :  { %2066 = vpow2.f32 %v1212_v61  ;;  %v1288_v61 = vld [vmem:[%s4134_s3 + $0xf0] sm:$0xff] }
 0x290   :  { %1500 = vmatpush.msrb.mxu1 %v1277_v51 }
 0x292   :  { %v1184_v62 = vpop.xlane.xlu2 %1183  ;;  %1501 = vmatpush.msrb.mxu1 %v1275_v54 }
 0x293   :  { %v1198_v43 = vsub.f32 %v1035_v27, %v1184_v62 }
 0x295   :  { %v3644_v63 = vpop.eup %2066  ;;  %v1210_v0 = vmul.f32 1.442695, %v1198_v43 }
 0x296   :  { %v1233_v1 = vsel %vm1169_vm5, %v3644_v63, 0.0 }
 0x297   :  { %2068 = vpow2.f32 %v1210_v0  ;;  %1234 = vadd.xlane.f32.xlu0 %v1233_v1  ;;  %v1805_v0 = vld [vmem:[%s4140_s9 + $0x1f8] sm:$0xff]  ;;  %v1286_v1 = vld [vmem:[%s4134_s3 + $0xe0] sm:$0xff] }
 0x29d   :  { %v3648_v3 = vpop.eup %2068 }
 0x29e   :  { %v1230_v4 = vsel %vm1169_vm5, %v3648_v3, 0.0 }
 0x29f   :  { %1231 = vadd.xlane.f32.xlu1 %v1230_v4  ;;  %v1803_v4 = vld [vmem:[%s4140_s9 + $0x1e8] sm:$0xff] }
 0x2a3   :  { %v1190_v5 = vpop.xlane.xlu1 %1189 }
 0x2a4   :  { %v1200_v52 = vsub.f32 %v1123_v31, %v1190_v5  ;;  %v1270_v31 = vld [vmem:[%s4134_s3 + $0x60] sm:$0xff] }
 0x2a5   :  { %v1802_v5 = vld [vmem:[%s4140_s9 + $0x1e0] sm:$0xff] }
 0x2a6   :  { %v1214_v6 = vmul.f32 1.442695, %v1200_v52 }
 0x2a8   :  { %2070 = vpow2.f32 %v1214_v6 }
 0x2ab   :  { %v1193_v7 = vpop.xlane.xlu0 %1192 }
 0x2ac   :  { %v1201_v2 = vsub.f32 %v1167_v37, %v1193_v7  ;;  %v1682_v7 = vld [vmem:[%s4140_s9 + $0x178] sm:$0xff] }
 0x2ae   :  { %v3652_v8 = vpop.eup %2070  ;;  %v1216_v9 = vmul.f32 1.442695, %v1201_v2  ;;  %v1801_v2 = vld [vmem:[%s4140_s9 + $0x1d8] sm:$0xff] }
 0x2af   :  { %v1236_v10 = vsel %vm1169_vm5, %v3652_v8, 0.0 }
 0x2b0   :  { %2072 = vpow2.f32 %v1216_v9  ;;  %1237 = vadd.xlane.f32.xlu0 %v1236_v10  ;;  %v1800_v9 = vld [vmem:[%s4140_s9 + $0x1d0] sm:$0xff]  ;;  %v1680_v10 = vld [vmem:[%s4140_s9 + $0x168] sm:$0xff] }
 0x2b6   :  { %v3656_v11 = vpop.eup %2072 }
 0x2b7   :  { %v1239_v12 = vsel %vm1169_vm5, %v3656_v11, 0.0 }
 0x2b8   :  { %1240 = vadd.xlane.f32.xlu2 %v1239_v12  ;;  %v1799_v12 = vld [vmem:[%s4140_s9 + $0x1c8] sm:$0xff] }
 0x2de   :  { %v1220_v21 = vpop.xlane.xlu2 %1219 }
 0x2df   :  { %2074 = vrcp.f32 %v1220_v21  ;;  %v1795_v21 = vld [vmem:[%s4140_s9 + $0x1a8] sm:$0xff] }
 0x2e5   :  { %v2075_v26 = vpop.eup %2074 }
 0x2e6   :  { %v1250_v27 = vmul.f32 %v2075_v26, %v3628_v45  ;;  %v1223_v28 = vpop.xlane.xlu0 %1222 }
 0x2e7   :  { %2076 = vrcp.f32 %v1223_v28  ;;  %v1674_v28 = vld [vmem:[%s4140_s9 + $0x138] sm:$0xff] }
 0x2e8   :  { %2021 = vmatmul.msk.f32.vlgmr.msra.gmra.mxu2 %vm1290_vm6, %v1250_v27  ;;  %2022 = vmatmul.msk.f32.vlgmr.msra.gmra.mxu3 %vm1290_vm6, %v1250_v27 }
 0x2e9   :  { %1437 = vmatpush.msra.mxu2 %v1272_v29  ;;  %1457 = vmatpush.msra.mxu3 %v1273_v30  ;;  %v1793_v29 = vld [vmem:[%s4140_s9 + $0x198] sm:$0xff]  ;;  %v1792_v30 = vld [vmem:[%s4140_s9 + $0x190] sm:$0xff] }
 0x2eb   :  { %1438 = vmatpush.msra.mxu2 %v1270_v31  ;;  %1458 = vmatpush.msra.mxu3 %v1271_v32 }
 0x2ed   :  { %v2077_v33 = vpop.eup %2076 }
 0x2ee   :  { %v1251_v36 = vmul.f32 %v2077_v33, %v3632_v50  ;;  %v1274_v50 = vld [vmem:[%s4134_s3 + $0x80] sm:$0xff] }
 0x2ef   :  { %1481 = vmatpush.msrb.mxu0 %v1274_v50 }
 0x2f0   :  { %v1929_v37 = vrot.slane %v1251_v36, 7  ;;  %v1229_v38 = vpop.xlane.xlu1 %1228  ;;  %2023 = vmatmul.msk.f32.vlgmr.msrb.gmra.mxu2 %vm1290_vm6, %v1251_v36  ;;  %2024 = vmatmul.msk.f32.vlgmr.msrb.gmra.mxu3 %vm1290_vm6, %v1251_v36  ;;  %v1672_v36 = vld [vmem:[%s4140_s9 + $0x128] sm:$0xff] }
 0x2f1   :  { %2078 = vrcp.f32 %v1229_v38  ;;  %1523 = vmatpush.msrb.mxu2 %v1280_v39  ;;  %1543 = vmatpush.msrb.mxu3 %v1281_v40  ;;  %v1671_v38 = vld [vmem:[%s4140_s9 + $0x120] sm:$0xff] }
 0x2f2   :  { %v3721_v41 = vsel %vm540_vm14, %v1929_v37, %v1250_v27  ;;  %v1791_v37 = vld [vmem:[%s4140_s9 + $0x188] sm:$0xff]  ;;  %v1790_v39 = vld [vmem:[%s4140_s9 + $0x180] sm:$0xff] }
 0x2f3   :  { %1524 = vmatpush.msrb.mxu2 %v1278_v42  ;;  %1544 = vmatpush.msrb.mxu3 %v1279_v44 }
 0x2f7   :  { %v2079_v45 = vpop.eup %2078 }
 0x2f8   :  { %v3733_v48 = vmul.f32 %v2079_v45, %v3636_v58  ;;  %v1226_v49 = vpop.xlane.xlu2 %1225 }
 0x2f9   :  { %2080 = vrcp.f32 %v1226_v49  ;;  %v1669_v49 = vld [vmem:[%s4140_s9 + $0x110] sm:$0xff] }
 0x2fa   :  { %2027 = vmatmul.msk.f32.vlgmr.msra.gmra.mxu2 %vm1290_vm6, %v3733_v48  ;;  %2028 = vmatmul.msk.f32.vlgmr.msra.gmra.mxu3 %vm1290_vm6, %v3733_v48  ;;  %v1933_v33 = vrot.slane %v3733_v48, 5 }
 0x2fb   :  { %1629 = vmatpush.msra.mxu3 %v1289_v53  ;;  %1609 = vmatpush.msra.mxu2 %v1288_v61  ;;  %v1668_v53 = vld [vmem:[%s4140_s9 + $0x108] sm:$0xff]  ;;  %v1647_v61 = vld [vmem:[%s4140_s9 + $0x60] sm:$0xff] }
 0x2fd   :  { %1630 = vmatpush.msra.mxu3 %v1287_v55  ;;  %1610 = vmatpush.msra.mxu2 %v1286_v1  ;;  %v1667_v55 = vld [vmem:[%s4140_s9 + $0x100] sm:$0xff]  ;;  %v1645_v1 = vld [vmem:[%s4140_s9 + $0x50] sm:$0xff] }
 0x2ff   :  { %v2081_v57 = vpop.eup %2080 }
 0x300   :  { %v3755_v58 = vmul.f32 %v2081_v57, %v3640_v46  ;;  %v1285_v46 = vld [vmem:[%s4134_s3 + $0xd8] sm:$0xff] }
 0x301   :  { %v2098_v57 = vld [vmem:[#allocation8] sm:$0xff] }
 0x302   :  { %2025 = vmatmul.msk.f32.vlgmr.msra.gmra.mxu0 %vm1290_vm6, %v3755_v58  ;;  %2026 = vmatmul.msk.f32.vlgmr.msra.gmra.mxu1 %vm1290_vm6, %v3755_v58  ;;  %v1931_v25 = vrot.slane %v3755_v58, 6  ;;  %v2099_v58 = vld [vmem:[#allocation9] sm:$0xff] }
 0x303   :  { %1566 = vmatpush.msra.mxu0 %v1284_v34  ;;  %1586 = vmatpush.msra.mxu1 %v1285_v46  ;;  %v1650_v34 = vld [vmem:[%s4140_s9 + $0x78] sm:$0xff]  ;;  %v1649_v46 = vld [vmem:[%s4140_s9 + $0x70] sm:$0xff] }
 0x304   :  { %v1932_v32 = vsel %vm543_vm0, %v1931_v25, %v3721_v41 }
 0x305   :  { %1567 = vmatpush.msra.mxu0 %v1282_v35  ;;  %1587 = vmatpush.msra.mxu1 %v1283_v59  ;;  %v1934_v40 = vsel %vm546_vm2, %v1933_v33, %v1932_v32  ;;  %v1666_v35 = vld [vmem:[%s4140_s9 + $0xf8] sm:$0xff]  ;;  %v1648_v59 = vld [vmem:[%s4140_s9 + $0x68] sm:$0xff] }
 0x30a   :  { %v1235_v56 = vpop.xlane.xlu0 %1234 }
 0x30b   :  { %2082 = vrcp.f32 %v1235_v56  ;;  %v1665_v56 = vld [vmem:[%s4140_s9 + $0xf0] sm:$0xff] }
 0x311   :  { %v2083_v60 = vpop.eup %2082 }
 0x312   :  { %v3777_v62 = vmul.f32 %v2083_v60, %v3644_v63  ;;  %v1232_v43 = vpop.xlane.xlu1 %1231  ;;  %v1804_v63 = vld [vmem:[%s4140_s9 + $0x1f0] sm:$0xff]  ;;  %v1664_v60 = vld [vmem:[%s4140_s9 + $0xe8] sm:$0xff] }
 0x313   :  { %2084 = vrcp.f32 %v1232_v43  ;;  %v1646_v43 = vld [vmem:[%s4140_s9 + $0x58] sm:$0xff] }
 0x314   :  { %2031 = vmatmul.msk.f32.vlgmr.msrb.gmra.mxu2 %vm1290_vm6, %v3777_v62  ;;  %2032 = vmatmul.msk.f32.vlgmr.msrb.gmra.mxu3 %vm1290_vm6, %v3777_v62  ;;  %v1937_v48 = vrot.slane %v3777_v62, 3  ;;  %v1663_v62 = vld [vmem:[%s4140_s9 + $0xe0] sm:$0xff] }
 0x315   :  { %1806 = vmatpush.msrb.mxu3 %v1805_v0  ;;  %1770 = vmatpush.msrb.mxu2 %v1666_v35  ;;  %v1662_v0 = vld [vmem:[%s4140_s9 + $0xd8] sm:$0xff] }
 0x317   :  { %1807 = vmatpush.msrb.mxu3 %v1804_v63  ;;  %1771 = vmatpush.msrb.mxu2 %v1665_v56  ;;  %v1661_v63 = vld [vmem:[%s4140_s9 + $0xd0] sm:$0xff] }
 0x319   :  { %v2085_v52 = vpop.eup %2084  ;;  %1808 = vmatpush.msrb.mxu3 %v1803_v4  ;;  %1772 = vmatpush.msrb.mxu2 %v1664_v60  ;;  %v1644_v4 = vld [vmem:[%s4140_s9 + $0x48] sm:$0xff] }
 0x31a   :  { %v3799_v6 = vmul.f32 %v2085_v52, %v3648_v3  ;;  %v1681_v3 = vld [vmem:[%s4140_s9 + $0x170] sm:$0xff]  ;;  %v1643_v52 = vld [vmem:[%s4140_s9 + $0x40] sm:$0xff] }
 0x31b   :  { %1809 = vmatpush.msrb.mxu3 %v1802_v5  ;;  %1773 = vmatpush.msrb.mxu2 %v1663_v62  ;;  %v1660_v5 = vld [vmem:[%s4140_s9 + $0xc8] sm:$0xff] }
 0x31c   :  { %2029 = vmatmul.msk.f32.vlgmr.msrb.gmra.mxu0 %vm1290_vm6, %v3799_v6  ;;  %2030 = vmatmul.msk.f32.vlgmr.msrb.gmra.mxu1 %vm1290_vm6, %v3799_v6  ;;  %v1935_v31 = vrot.slane %v3799_v6, 4  ;;  %v1659_v6 = vld [vmem:[%s4140_s9 + $0xc0] sm:$0xff] }
 0x31d   :  { %1683 = vmatpush.msrb.mxu0 %v1682_v7  ;;  %1810 = vmatpush.msrb.mxu3 %v1801_v2  ;;  %v1642_v7 = vld [vmem:[%s4140_s9 + $0x38] sm:$0xff] }
 0x31e   :  { %v1936_v42 = vsel %vm549_vm3, %v1935_v31, %v1934_v40  ;;  %1750 = vmatpush.msrb.mxu1 %v1650_v34  ;;  %1774 = vmatpush.msrb.mxu2 %v1662_v0  ;;  %v1658_v2 = vld [vmem:[%s4140_s9 + $0xb8] sm:$0xff] }
 0x31f   :  { %1684 = vmatpush.msrb.mxu0 %v1681_v3  ;;  %1811 = vmatpush.msrb.mxu3 %v1800_v9  ;;  %v1938_v50 = vsel %vm552_vm4, %v1937_v48, %v1936_v42  ;;  %v1641_v3 = vld [vmem:[%s4140_s9 + $0x30] sm:$0xff]  ;;  %v1860_v31 = vld [vmem:[%s4142_s11 + $0xd8] sm:$0xff]  ;;  %v1853_v42 = vld [vmem:[%s4142_s11 + $0xa0] sm:$0xff] }
 0x320   :  { %1751 = vmatpush.msrb.mxu1 %v1649_v46  ;;  %1775 = vmatpush.msrb.mxu2 %v1661_v63  ;;  %v1657_v9 = vld [vmem:[%s4140_s9 + $0xb0] sm:$0xff] }
 0x321   :  { %1685 = vmatpush.msrb.mxu0 %v1680_v10  ;;  %1812 = vmatpush.msrb.mxu3 %v1799_v12  ;;  %v1640_v10 = vld [vmem:[%s4140_s9 + $0x28] sm:$0xff] }
 0x322   :  { %1752 = vmatpush.msrb.mxu1 %v1648_v59  ;;  %1776 = vmatpush.msrb.mxu2 %v1660_v5  ;;  %v1656_v12 = vld [vmem:[%s4140_s9 + $0xa8] sm:$0xff] }
 0x323   :  { %v1238_v17 = vpop.xlane.xlu0 %1237  ;;  %1686 = vmatpush.msrb.mxu0 %v1679_v13  ;;  %1813 = vmatpush.msrb.mxu3 %v1798_v14  ;;  %v1639_v13 = vld [vmem:[%s4140_s9 + $0x20] sm:$0xff] }
 0x324   :  { %2086 = vrcp.f32 %v1238_v17  ;;  %1753 = vmatpush.msrb.mxu1 %v1647_v61  ;;  %1777 = vmatpush.msrb.mxu2 %v1659_v6  ;;  %v1655_v14 = vld [vmem:[%s4140_s9 + $0xa0] sm:$0xff] }
 0x325   :  { %1687 = vmatpush.msrb.mxu0 %v1678_v15  ;;  %1814 = vmatpush.msrb.mxu3 %v1797_v16  ;;  %v1638_v15 = vld [vmem:[%s4140_s9 + $0x18] sm:$0xff] }
 0x326   :  { %1754 = vmatpush.msrb.mxu1 %v1646_v43  ;;  %1778 = vmatpush.msrb.mxu2 %v1658_v2  ;;  %v1654_v16 = vld [vmem:[%s4140_s9 + $0x98] sm:$0xff] }
 0x327   :  { %1688 = vmatpush.msrb.mxu0 %v1677_v18  ;;  %1815 = vmatpush.msrb.mxu3 %v1796_v19  ;;  %v1637_v19 = vld [vmem:[%s4140_s9 + $0x10] sm:$0xff] }
 0x328   :  { %1755 = vmatpush.msrb.mxu1 %v1645_v1  ;;  %1779 = vmatpush.msrb.mxu2 %v1657_v9 }
 0x329   :  { %1689 = vmatpush.msrb.mxu0 %v1676_v20  ;;  %1816 = vmatpush.msrb.mxu3 %v1795_v21  ;;  %v1653_v20 = vld [vmem:[%s4140_s9 + $0x90] sm:$0xff]  ;;  %v1636_v21 = vld [vmem:[%s4140_s9 + $0x8] sm:$0xff] }
 0x32a   :  { %v2087_v24 = vpop.eup %2086  ;;  %1756 = vmatpush.msrb.mxu1 %v1644_v4  ;;  %1780 = vmatpush.msrb.mxu2 %v1656_v12 }
 0x32b   :  { %v1256_v26 = vmul.f32 %v2087_v24, %v3652_v8  ;;  %v1241_v27 = vpop.xlane.xlu2 %1240  ;;  %1690 = vmatpush.msrb.mxu0 %v1675_v22  ;;  %1817 = vmatpush.msrb.mxu3 %v1794_v23  ;;  %v1673_v8 = vld [vmem:[%s4140_s9 + $0x130] sm:$0xff]  ;;  %v1652_v22 = vld [vmem:[%s4140_s9 + $0x88] sm:$0xff]  ;;  %v1635_v23 = vld [vmem:[%s4140_s9] sm:$0xff] }
 0x32c   :  { %2088 = vrcp.f32 %v1241_v27  ;;  %1757 = vmatpush.msrb.mxu1 %v1643_v52  ;;  %1781 = vmatpush.msrb.mxu2 %v1655_v14  ;;  %v1651_v24 = vld [vmem:[%s4140_s9 + $0x80] sm:$0xff]  ;;  %v1863_v27 = vld [vmem:[%s4142_s11 + $0xf0] sm:$0xff]  ;;  %s1989_s9 = sshll.u32 %s2204_s26, 4  ;;  %s1990_s9 = int_to_ptr.vmem [resolvable:$true] %s1989_s9 }
 0x32d   :  { %2033 = vmatmul.msk.f32.vlgmr.msra.gmra.mxu0 %vm1290_vm6, %v1256_v26  ;;  %2034 = vmatmul.msk.f32.vlgmr.msra.gmra.mxu1 %vm1290_vm6, %v1256_v26  ;;  %v1939_v44 = vrot.slane %v1256_v26, 2  ;;  %1994 = dma.vmem_to_hbm [thread:$0]  %s1990_s9, 128, %s1992_s25, [#allocation10]  }
 0x32e   :  { %1691 = vmatpush.msrb.mxu0 %v1674_v28  ;;  %1818 = vmatpush.msrb.mxu3 %v1793_v29  ;;  %v1864_v28 = vld [vmem:[%s4142_s11 + $0xf8] sm:$0xff]  ;;  %v1861_v29 = vld [vmem:[%s4142_s11 + $0xe0] sm:$0xff] }
 0x32f   :  { %v1940_v51 = vsel %vm555_vm15, %v1939_v44, %v1938_v50  ;;  %1758 = vmatpush.msrb.mxu1 %v1642_v7  ;;  %1782 = vmatpush.msrb.mxu2 %v1654_v16  ;;  %v1854_v44 = vld [vmem:[%s4142_s11 + $0xa8] sm:$0xff]  ;;  %v1852_v16 = vld [vmem:[%s4142_s11 + $0x98] sm:$0xff] }
 0x330   :  { %1692 = vmatpush.msrb.mxu0 %v1673_v8  ;;  %1819 = vmatpush.msrb.mxu3 %v1792_v30  ;;  %v1862_v8 = vld [vmem:[%s4142_s11 + $0xe8] sm:$0xff]  ;;  %v1859_v30 = vld [vmem:[%s4142_s11 + $0xd0] sm:$0xff] }
 0x331   :  { %1759 = vmatpush.msrb.mxu1 %v1641_v3  ;;  %1783 = vmatpush.msrb.mxu2 %v1653_v20  ;;  %v1848_v20 = vld [vmem:[%s4142_s11 + $0x78] sm:$0xff] }
 0x332   :  { %v2089_v41 = vpop.eup %2088  ;;  %1693 = vmatpush.msrb.mxu0 %v1672_v36  ;;  %1820 = vmatpush.msrb.mxu3 %v1791_v37  ;;  %v1857_v36 = vld [vmem:[%s4142_s11 + $0xc0] sm:$0xff]  ;;  %v1858_v37 = vld [vmem:[%s4142_s11 + $0xc8] sm:$0xff] }
 0x333   :  { %v1257_v45 = vmul.f32 %v2089_v41, %v3656_v11  ;;  %1760 = vmatpush.msrb.mxu1 %v1640_v10  ;;  %1784 = vmatpush.msrb.mxu2 %v1652_v22  ;;  %v1846_v22 = vld [vmem:[%s4142_s11 + $0x68] sm:$0xff] }
 0x334   :  { %1694 = vmatpush.msrb.mxu0 %v1671_v38  ;;  %1821 = vmatpush.msrb.mxu3 %v1790_v39  ;;  %v1855_v38 = vld [vmem:[%s4142_s11 + $0xb0] sm:$0xff]  ;;  %v1856_v39 = vld [vmem:[%s4142_s11 + $0xb8] sm:$0xff] }
 0x335   :  { %2035 = vmatmul.msk.f32.vlgmr.msra.gmra.mxu2 %vm1290_vm6, %v1257_v45  ;;  %2036 = vmatmul.msk.f32.vlgmr.msra.gmra.mxu3 %vm1290_vm6, %v1257_v45  ;;  %v1941_v11 = vrot.slane %v1257_v45, 1 }
 0x336   :  { %1695 = vmatpush.msrb.mxu0 %v1670_v47  ;;  %1761 = vmatpush.msrb.mxu1 %v1639_v13 }
 0x337   :  { %v1942_v54 = vsel %vm1732_vm7, %v1941_v11, %v1940_v51  ;;  %1785 = vmatpush.msrb.mxu2 %v1651_v24  ;;  %v1844_v24 = vld [vmem:[%s4142_s11 + $0x58] sm:$0xff] }
 0x338   :  { %1696 = vmatpush.msrb.mxu0 %v1669_v49  ;;  %1944 = vst.msk [vmem:[#allocation6] sm:$0xff] %vm1290_vm6, %v1942_v54  ;;  %1762 = vmatpush.msrb.mxu1 %v1638_v15  ;;  %v1851_v15 = vld [vmem:[%s4142_s11 + $0x90] sm:$0xff] }
 0x33a   :  { %1697 = vmatpush.msrb.mxu0 %v1668_v53  ;;  %1763 = vmatpush.msrb.mxu1 %v1637_v19  ;;  %v1847_v19 = vld [vmem:[%s4142_s11 + $0x70] sm:$0xff] }
 0x33c   :  { %1698 = vmatpush.msrb.mxu0 %v1667_v55  ;;  %1764 = vmatpush.msrb.mxu1 %v1636_v21  ;;  %v1845_v21 = vld [vmem:[%s4142_s11 + $0x60] sm:$0xff] }
 0x33d   :  { %1699 = vmatmul.f32.vlgmr.msrb.gmra.mxu0 %v2098_v57  ;;  %1822 = vmatmul.f32.vlgmr.msrb.gmra.mxu3 %v2099_v58 }
 0x33e   :  { %1765 = vmatpush.msrb.mxu1 %v1635_v23  ;;  %1871 = vmatpush.msra.mxu0 %v1863_v27  ;;  %v1843_v23 = vld [vmem:[%s4142_s11 + $0x50] sm:$0xff] }
 0x33f   :  { %v1839_v27 = vld [vmem:[%s4142_s11 + $0x30] sm:$0xff] }
 0x340   :  { %1891 = vmatpush.msra.mxu1 %v1864_v28  ;;  %1872 = vmatpush.msra.mxu0 %v1861_v29  ;;  %v1840_v28 = vld [vmem:[%s4142_s11 + $0x38] sm:$0xff]  ;;  %v1837_v29 = vld [vmem:[%s4142_s11 + $0x20] sm:$0xff] }
 0x342   :  { %1892 = vmatpush.msra.mxu1 %v1862_v8  ;;  %1873 = vmatpush.msra.mxu0 %v1859_v30  ;;  %v1838_v8 = vld [vmem:[%s4142_s11 + $0x28] sm:$0xff]  ;;  %v1835_v30 = vld [vmem:[%s4142_s11 + $0x10] sm:$0xff] }
 0x344   :  { %1893 = vmatpush.msra.mxu1 %v1860_v31  ;;  %1874 = vmatpush.msra.mxu0 %v1857_v36  ;;  %v1836_v31 = vld [vmem:[%s4142_s11 + $0x18] sm:$0xff] }
 0x346   :  { %1894 = vmatpush.msra.mxu1 %v1858_v37  ;;  %1875 = vmatpush.msra.mxu0 %v1855_v38 }
 0x348   :  { %1895 = vmatpush.msra.mxu1 %v1856_v39  ;;  %1876 = vmatpush.msra.mxu0 %v1853_v42 }
 0x34a   :  { %1896 = vmatpush.msra.mxu1 %v1854_v44  ;;  %1877 = vmatpush.msra.mxu0 %v1851_v15 }
 0x34c   :  { %1897 = vmatpush.msra.mxu1 %v1852_v16 }
 0x36b   :  { %v1311_v17 = vpop.f32.mrf.mxu2  ;;  %v1331_v18 = vpop.f32.mrf.mxu3 }
 0x373   :  { %v1354_v25 = vpop.f32.mrf.mxu2  ;;  %v1374_v26 = vpop.f32.mrf.mxu3 }
 0x374   :  { %v1719_v48 = vrot.slane %v1354_v25, 7  ;;  %v1734_v49 = vrot.slane %v1374_v26, 7  ;;  %v1841_v25 = vld [vmem:[%s4142_s11 + $0x40] sm:$0xff]  ;;  %v1842_v26 = vld [vmem:[%s4142_s11 + $0x48] sm:$0xff] }
 0x376   :  { %v1720_v54 = vsel %vm540_vm14, %v1719_v48, %v1311_v17  ;;  %v1735_v55 = vsel %vm540_vm14, %v1734_v49, %v1331_v18  ;;  %v1849_v17 = vld [vmem:[%s4142_s11 + $0x80] sm:$0xff]  ;;  %v1850_v18 = vld [vmem:[%s4142_s11 + $0x88] sm:$0xff] }
 0x377   :  { %1878 = vmatpush.msra.mxu0 %v1849_v17  ;;  %1898 = vmatpush.msra.mxu1 %v1850_v18  ;;  %v1865_v48 = vld [vmem:[%s4143_s12] sm:$0x3] }
 0x378   :  { %v1867_v49 = vperm.slane %v1865_v48, 0 }
 0x379   :  { %1879 = vmatpush.msra.mxu0 %v1847_v19  ;;  %1899 = vmatpush.msra.mxu1 %v1848_v20 }
 0x37b   :  { %1880 = vmatpush.msra.mxu0 %v1845_v21  ;;  %1900 = vmatpush.msra.mxu1 %v1846_v22 }
 0x37d   :  { %v1440_v40 = vpop.f32.mrf.mxu2  ;;  %v1460_v41 = vpop.f32.mrf.mxu3  ;;  %1881 = vmatpush.msra.mxu0 %v1843_v23  ;;  %1901 = vmatpush.msra.mxu1 %v1844_v24 }
 0x37e   :  { %v1723_v46 = vrot.slane %v1440_v40, 5  ;;  %v1738_v56 = vrot.slane %v1460_v41, 5  ;;  %v2041_v41 = vld [vmem:[%s4141_s10] ss:$0 sm:$0xff]  ;;  %s2202_s10 = smov [#allocation6]  }
 0x37f   :  { %v1397_v32 = vpop.f32.mrf.mxu0  ;;  %v1417_v33 = vpop.f32.mrf.mxu1  ;;  %1882 = vmatpush.msra.mxu0 %v1841_v25  ;;  %1902 = vmatpush.msra.mxu1 %v1842_v26  ;;  %s1967_s12 = sshll.u32 %s2202_s10, 4  ;;  %s1968_s12 = int_to_ptr.vmem [resolvable:$true] %s1967_s12 }
 0x380   :  { %v1721_v50 = vrot.slane %v1397_v32, 6  ;;  %v1736_v11 = vrot.slane %v1417_v33, 6  ;;  %v1833_v32 = vld [vmem:[%s4142_s11] sm:$0xff]  ;;  %v1834_v33 = vld [vmem:[%s4142_s11 + $0x8] sm:$0xff]  ;;  %1972 = dma.vmem_to_hbm [thread:$0]  %s1968_s12, 128, %s1970_s19, [#allocation7]  }
 0x381   :  { %1883 = vmatpush.msra.mxu0 %v1839_v27  ;;  %1903 = vmatpush.msra.mxu1 %v1840_v28  ;;  %1983 = dma.vmem_to_hbm [thread:$0]  %s1979_s20, 128, %s1981_s5, [#allocation7]  }
 0x382   :  { %v1722_v57 = vsel %vm543_vm0, %v1721_v50, %v1720_v54  ;;  %v1737_v58 = vsel %vm543_vm0, %v1736_v11, %v1735_v55  ;;  %v1868_v50 = vperm.slane %v1865_v48, 1 }
 0x383   :  { %v1724_v61 = vsel %vm546_vm2, %v1723_v46, %v1722_v57  ;;  %v1739_v62 = vsel %vm546_vm2, %v1738_v56, %v1737_v58  ;;  %1884 = vmatpush.msra.mxu0 %v1837_v29  ;;  %1904 = vmatpush.msra.mxu1 %v1838_v8 }
 0x385   :  { %1885 = vmatpush.msra.mxu0 %v1835_v30  ;;  %1905 = vmatpush.msra.mxu1 %v1836_v31 }
 0x387   :  { %1886 = vmatpush.msra.mxu0 %v1833_v32  ;;  %1906 = vmatpush.msra.mxu1 %v1834_v33 }
 0x397   :  { %v1526_v51 = vpop.f32.mrf.mxu2  ;;  %v1546_v53 = vpop.f32.mrf.mxu3 }
 0x398   :  { %v1727_v4 = vrot.slane %v1526_v51, 3  ;;  %v1742_v5 = vrot.slane %v1546_v53, 3 }
 0x399   :  { %v1483_v45 = vpop.f32.mrf.mxu0  ;;  %v1503_v47 = vpop.f32.mrf.mxu1 }
 0x39a   :  { %v1725_v34 = vrot.slane %v1483_v45, 4  ;;  %v1740_v35 = vrot.slane %v1503_v47, 4 }
 0x39c   :  { %v1726_v43 = vsel %vm549_vm3, %v1725_v34, %v1724_v61  ;;  %v1741_v0 = vsel %vm549_vm3, %v1740_v35, %v1739_v62 }
 0x39d   :  { %v1728_v7 = vsel %vm552_vm4, %v1727_v4, %v1726_v43  ;;  %v1743_v2 = vsel %vm552_vm4, %v1742_v5, %v1741_v0 }
 0x3aa   :  { %v1569_v59 = vpop.f32.mrf.mxu0  ;;  %v1589_v60 = vpop.f32.mrf.mxu1 }
 0x3ab   :  { %v1729_v1 = vrot.slane %v1569_v59, 2  ;;  %v1744_v63 = vrot.slane %v1589_v60, 2 }
 0x3ad   :  { %v1730_v10 = vsel %vm555_vm15, %v1729_v1, %v1728_v7  ;;  %v1745_v12 = vsel %vm555_vm15, %v1744_v63, %v1743_v2 }
 0x3b8   :  { %v1612_v52 = vpop.f32.mrf.mxu2  ;;  %v1632_v6 = vpop.f32.mrf.mxu3 }
 0x3b9   :  { %v1731_v3 = vrot.slane %v1612_v52, 1  ;;  %v1746_v9 = vrot.slane %v1632_v6, 1 }
 0x3ba   :  { %v1700_v37 = vpop.f32.mrf.mxu0 }
 0x3bb   :  { %v1733_v13 = vsel %vm1732_vm7, %v1731_v3, %v1730_v10  ;;  %v1747_v14 = vsel %vm1732_vm7, %v1746_v9, %v1745_v12 }
 0x3bc   :  { %1766 = vmatmul.f32.vlgmr.msrb.gmra.mxu1 %v1733_v13  ;;  %1786 = vmatmul.f32.vlgmr.msrb.gmra.mxu2 %v1747_v14 }
 0x3c0   :  { %v1823_v42 = vpop.f32.mrf.mxu3 }
 0x439   :  { %v1767_v36 = vpop.f32.mrf.mxu1 }
 0x43a   :  { %v1768_v38 = vadd.f32 %v1767_v36, %v1700_v37 }
 0x43f   :  { %v1787_v39 = vpop.f32.mrf.mxu2 }
 0x440   :  { %v1788_v40 = vadd.f32 %v1787_v39, %v1768_v38 }
 0x442   :  { %v1826_v44 = vadd.f32 %v1823_v42, %v1788_v40 }
 0x444   :  { %v1831_v45 = vadd.f32 %v2041_v41, %v1826_v44 }
 0x446   :  { %2090 = vtanh.f32 %v1831_v45 }
 0x44c   :  { %v2091_v47 = vpop.eup %2090 }
 0x44d   :  { %1887 = vmatmul.f32.vlgmr.msra.gmra.mxu0 %v2091_v47  ;;  %1907 = vmatmul.f32.vlgmr.msra.gmra.mxu1 %v2091_v47 }
 0x4ca   :  { %v1888_v11 = vpop.f32.mrf.mxu0  ;;  %v1908_v51 = vpop.f32.mrf.mxu1 }
 0x4cb   :  { %v1889_v53 = vadd.f32 %v1888_v11, %v1867_v49  ;;  %v1909_v54 = vadd.f32 %v1908_v51, %v1868_v50 }
 0x4cd   :  { %v1911_v55 = vmax.f32 %v1889_v53, %v1909_v54 }
 0x4cf   :  { %1912 = vmax.xlane.f32.xlu1 %v1911_v55 }
 0x542   :  { %v1913_v57 = vpop.xlane.xlu1 %1912 }
 0x543   :  { %v1914_v58 = vsub.f32 %v1889_v53, %v1913_v57  ;;  %v1915_v34 = vsub.f32 %v1909_v54, %v1913_v57 }
 0x545   :  { %v1916_v35 = vmul.f32 1.442695, %v1914_v58  ;;  %v1918_v46 = vmul.f32 1.442695, %v1915_v34 }
 0x547   :  { %2092 = vpow2.f32 %v1916_v35 }
 0x548   :  { %2094 = vpow2.f32 %v1918_v46 }
 0x54d   :  { %v2093_v56 = vpop.eup %2092 }
 0x54e   :  { %v2095_v59 = vpop.eup %2094 }
 0x54f   :  { %v1920_v60 = vadd.f32 %v2095_v59, %v2093_v56 }
 0x551   :  { %1921 = vadd.xlane.f32.xlu2 %v1920_v60 }
 0x5c4   :  { %v1922_v61 = vpop.xlane.xlu2 %1921 }
 0x5c5   :  { %2096 = vlog2.f32 %v1922_v61 }
 0x5cb   :  { %v2097_v62 = vpop.eup %2096 }
 0x5cc   :  { %v1924_v43 = vmul.f32 0.6931472, %v2097_v62 }
 0x5ce   :  { %v1925_v0 = vsub.f32 %v1914_v58, %v1924_v43  ;;  %v1926_v1 = vsub.f32 %v1915_v34, %v1924_v43 }
 0x5d0   :  { %1927 = vst [vmem:[#allocation4] sm:$0xff] %v1925_v0 }
 0x5d1   :  { %1928 = vst [vmem:[#allocation4 + $0x8] sm:$0xff] %v1926_v1 }
 0x5d2   :  { %1961 = dma.vmem_to_hbm [thread:$0]  %s1957_s1, 256, %s1959_s27, [#allocation5]  }
 0x5d3   :  { %2196 = dma.done.wait [#allocation5], 256  }
 0x5d4   :  { %2197 = vsyncadd [#allocation5], 4294967040 }
 0x5d5   :  { %2198 = dma.done.wait [#allocation7], 256  }
 0x5d6   :  { %2199 = vsyncadd [#allocation7], 4294967040 }
 0x5d7   :  { %2200 = dma.done.wait [#allocation10], 128  }
 0x5d8   :  { %2201 = vsyncadd [#allocation10], 4294967168 }
 0x5d9   :  { %2011 = vsyncpa [#allocation5], 1 }
 0x5da   :  { %2012 = vsyncpa [#allocation7], 1 }
 0x5db   :  { %2013 = vsyncpa [#allocation10], 1 }

</bundles_post_ra>
